<compile_context>
chip_gen: v7x
topology: tpu7x:2x2x1
jax: 0.10.0
libtpu: 0.0.40
codegen_flags: <defaults>
</compile_context>

<pallas_src>
import jax
import jax.numpy as jnp
from jax import lax
from jax.experimental import pallas as pl
from jax.experimental.pallas import tpu as pltpu


# ----------------------------------------------------------------------------
# Fused kernel: num_layers x (bidirectional LSTM layer) + Linear head.
# Kernel-side layouts (PyTorch gate order i, f, g, o):
#   x_ref        : (T*B, D_in)   time-major input, flattened over (T, B)
#   per layer    : wih (D_l, 8H) = [W_ih_f^T | W_ih_b^T]
#                  whh (H,   8H) = [W_hh_f^T | W_hh_b^T]
#                  b   (1,   8H) = [b_ih_f+b_hh_f | b_ih_b+b_hh_b]
#   fcw (2H, O), fcb (1, O)
# Scratch:
#   ig_sc  (T*B, 8H) : per-layer input-gate pre-activations for all timesteps
#   seq_sc (T*B, 2H) : previous layer's [fwd | bwd] hidden sequence (reused)
#   h_sc, c_sc (2B, H): stacked carries, rows [:B] = fwd, rows [B:] = bwd
# ----------------------------------------------------------------------------
def _make_bilstm_kernel(num_layers, T, B, H):
    G4 = 4 * H

    def kernel(*refs):
        x_ref = refs[0]
        layer_refs = refs[1:1 + 3 * num_layers]
        fcw_ref = refs[1 + 3 * num_layers]
        fcb_ref = refs[2 + 3 * num_layers]
        out_ref = refs[3 + 3 * num_layers]
        ig_sc, seq_sc, h_sc, c_sc = refs[4 + 3 * num_layers:]

        # Selects the fwd gate block (rows [:B] -> cols [:4H]) vs the bwd gate
        # block (rows [B:] -> cols [4H:]) of the recurrent pre-activation.
        # Built once and hoisted out of every time loop.
        row_is_fwd = lax.broadcasted_iota(jnp.int32, (2 * B, G4), 0) < B

        def run_layer(x_in, wih_ref, whh_ref, b_ref, store_seq):
            # ---- phase 1: input projection for ALL timesteps in ONE matmul.
            # x_in: (T*B, D_l); wih: (D_l, 8H).  Bias folded in here so the
            # recurrence below never touches it again.
            ig_sc[...] = (jnp.dot(x_in, wih_ref[...],
                                  preferred_element_type=jnp.float32)
                          + b_ref[...])                          # (T*B, 8H)

            # ---- phase 2: sequential recurrence (only h @ W_hh remains).
            h_sc[...] = jnp.zeros_like(h_sc)
            c_sc[...] = jnp.zeros_like(c_sc)

            def step(t, carry):
                rt = T - 1 - t
                hg = jnp.dot(h_sc[...], whh_ref[...],
                             preferred_element_type=jnp.float32)  # (2B, 8H)
                # fwd rows use input gates of x[t], bwd rows those of x[T-1-t]
                g_x = jnp.concatenate(
                    [ig_sc[pl.ds(t * B, B), :G4],
                     ig_sc[pl.ds(rt * B, B), G4:]], axis=0)       # (2B, 4H)
                gates = g_x + jnp.where(row_is_fwd, hg[:, :G4], hg[:, G4:])
                i_g = jax.nn.sigmoid(gates[:, 0 * H:1 * H])
                f_g = jax.nn.sigmoid(gates[:, 1 * H:2 * H])
                g_g = jnp.tanh(gates[:, 2 * H:3 * H])
                o_g = jax.nn.sigmoid(gates[:, 3 * H:4 * H])
                c_new = f_g * c_sc[...] + i_g * g_g
                h_new = o_g * jnp.tanh(c_new)
                c_sc[...] = c_new
                h_sc[...] = h_new
                if store_seq:                     # skipped for the last layer
                    seq_sc[pl.ds(t * B, B), :H] = h_new[:B]    # fwd h at t
                    seq_sc[pl.ds(rt * B, B), H:] = h_new[B:]   # bwd h at T-1-t
                return carry

            lax.fori_loop(0, T, step, 0, unroll=True)

        # ---- layer 0 consumes the flattened external input ----
        wih0, whh0, b0 = layer_refs[0:3]
        run_layer(x_ref[...], wih0, whh0, b0, store_seq=(num_layers > 1))

        # ---- layers 1..L-1 consume the previous layer's full sequence.
        # seq_sc is read entirely into the input projection before this
        # layer's recurrence starts rewriting it, so one buffer suffices. ----
        for l in range(1, num_layers):
            wih, whh, b = layer_refs[3 * l:3 * l + 3]
            run_layer(seq_sc[...], wih, whh, b,
                      store_seq=(l < num_layers - 1))

        # ---- FC head on the final hidden states (h_n[-2] | h_n[-1]) ----
        h_fin = h_sc[...]                                         # (2B, H)
        h_cat = jnp.concatenate([h_fin[:B], h_fin[B:]], axis=1)   # (B, 2H)
        out_ref[...] = (jnp.dot(h_cat, fcw_ref[...],
                                preferred_element_type=jnp.float32)
                        + fcb_ref[...]).astype(out_ref.dtype)

    return kernel


# ----------------------------------------------------------------------------
# Wrapper: one pallas_call, no grid, everything resident in VMEM.
# ----------------------------------------------------------------------------
def bilstm_model_forward(x_btd, kparams):
    """x_btd: (B, T, input_size), batch-first like the PyTorch module."""
    x_tbd = jnp.transpose(x_btd.astype(jnp.float32), (1, 0, 2))   # (T, B, D)
    T, B, D = x_tbd.shape
    x_flat = x_tbd.reshape(T * B, D)                              # (T*B, D)

    layers = kparams["layers"]
    num_layers = len(layers)
    H = layers[0][1].shape[0]              # whh: (H, 8H)
    O = kparams["fc_w"].shape[1]           # fc_w: (2H, O)

    args = [x_flat]
    for (wih, whh, b) in layers:
        args.extend([wih, whh, b])
    args.extend([kparams["fc_w"], kparams["fc_b"]])

    return pl.pallas_call(
        _make_bilstm_kernel(num_layers, T, B, H),
        out_shape=jax.ShapeDtypeStruct((B, O), jnp.float32),
        scratch_shapes=[
            pltpu.VMEM((T * B, 8 * H), jnp.float32),   # ig_sc: input gates
            pltpu.VMEM((T * B, 2 * H), jnp.float32),   # seq_sc: layer output
            pltpu.VMEM((2 * B, H), jnp.float32),       # h carry (fwd|bwd)
            pltpu.VMEM((2 * B, H), jnp.float32),       # c carry
        ],
    )(*args)


bilstm_model_forward_jit = jax.jit(bilstm_model_forward)


# ----------------------------------------------------------------------------
# Parameters (PyTorch layout) and one-time conversion to kernel layout.
# ----------------------------------------------------------------------------
def make_params(key, input_size, hidden_size, output_size, num_layers=2):
    H = hidden_size
    bound = 1.0 / jnp.sqrt(jnp.float32(H))
    layers = []
    for layer in range(num_layers):
        d_in = input_size if layer == 0 else 2 * H
        lp = {}
        for dir_tag in ("f", "b"):
            key, k1, k2, k3, k4 = jax.random.split(key, 5)
            lp[f"w_ih_{dir_tag}"] = jax.random.uniform(
                k1, (4 * H, d_in), jnp.float32, -bound, bound)
            lp[f"w_hh_{dir_tag}"] = jax.random.uniform(
                k2, (4 * H, H), jnp.float32, -bound, bound)
            lp[f"b_ih_{dir_tag}"] = jax.random.uniform(
                k3, (4 * H,), jnp.float32, -bound, bound)
            lp[f"b_hh_{dir_tag}"] = jax.random.uniform(
                k4, (4 * H,), jnp.float32, -bound, bound)
        layers.append(lp)
    key, kw, kb = jax.random.split(key, 3)
    fc_bound = 1.0 / jnp.sqrt(jnp.float32(2 * H))
    return {
        "layers": layers,
        "fc_w": jax.random.uniform(kw, (output_size, 2 * H), jnp.float32,
                                   -fc_bound, fc_bound),
        "fc_b": jax.random.uniform(kb, (output_size,), jnp.float32,
                                   -fc_bound, fc_bound),
    }


def prepare_kernel_params(params):
    """One-time layout prep (outside jit): transpose weights, concat the two
    directions along N, pre-sum biases."""
    layers = []
    for lp in params["layers"]:
        wih = jnp.concatenate([lp["w_ih_f"].T, lp["w_ih_b"].T], axis=1)
        whh = jnp.concatenate([lp["w_hh_f"].T, lp["w_hh_b"].T], axis=1)
        b = jnp.concatenate([lp["b_ih_f"] + lp["b_hh_f"],
                             lp["b_ih_b"] + lp["b_hh_b"]], axis=0).reshape(1, -1)
        layers.append((jnp.asarray(wih, jnp.float32),
                       jnp.asarray(whh, jnp.float32),
                       jnp.asarray(b, jnp.float32)))
    return {
        "layers": layers,
        "fc_w": jnp.asarray(params["fc_w"].T, jnp.float32),
        "fc_b": jnp.asarray(params["fc_b"].reshape(1, -1), jnp.float32),
    }


# ----------------------------------------------------------------------------
# Pure-JAX reference (mirrors PyTorch BiLSTMModel.forward) for a sanity check.
# ----------------------------------------------------------------------------
def _lstm_direction_ref(x_tbd, w_ih, w_hh, b_ih, b_hh):
    H = w_hh.shape[1]
    B = x_tbd.shape[1]

    def step(carry, x_t):
        h, c = carry
        g = x_t @ w_ih.T + h @ w_hh.T + b_ih + b_hh
        i = jax.nn.sigmoid(g[:, :H])
        f = jax.nn.sigmoid(g[:, H:2 * H])
        gg = jnp.tanh(g[:, 2 * H:3 * H])
        o = jax.nn.sigmoid(g[:, 3 * H:])
        c = f * c + i * gg
        h = o * jnp.tanh(c)
        return (h, c), h

    init = (jnp.zeros((B, H), jnp.float32), jnp.zeros((B, H), jnp.float32))
    (h_fin, _), h_seq = lax.scan(step, init, x_tbd)
    return h_seq, h_fin


def bilstm_reference(x_btd, params):
    layer_in = jnp.transpose(x_btd.astype(jnp.float32), (1, 0, 2))
    h_f = h_b = None
    for lp in params["layers"]:
        hs_f, h_f = _lstm_direction_ref(layer_in, lp["w_ih_f"], lp["w_hh_f"],
                                        lp["b_ih_f"], lp["b_hh_f"])
        hs_b_rev, h_b = _lstm_direction_ref(layer_in[::-1], lp["w_ih_b"],
                                            lp["w_hh_b"], lp["b_ih_b"],
                                            lp["b_hh_b"])
        layer_in = jnp.concatenate([hs_f, hs_b_rev[::-1]], axis=-1)
    h_cat = jnp.concatenate([h_f, h_b], axis=-1)
    return h_cat @ params["fc_w"].T + params["fc_b"]


if __name__ == "__main__":
    # batch=2, seq_len=8, input_size=16, hidden_size=32, output_size=4, 2 layers
    B, T, INPUT, HIDDEN, OUTPUT = 2, 8, 16, 32, 4

    key = jax.random.PRNGKey(0)
    key, kx, kp = jax.random.split(key, 3)
    x = jax.random.normal(kx, (B, T, INPUT), jnp.float32)
    params = make_params(kp, INPUT, HIDDEN, OUTPUT, num_layers=2)
    kparams = prepare_kernel_params(params)   # one-time kernel-layout prep

    out = bilstm_model_forward_jit(x, kparams)
    out = jax.block_until_ready(out)

    assert out.shape == (B, OUTPUT), out.shape
    assert out.dtype == jnp.float32
    assert bool(jnp.all(jnp.isfinite(out)))

    ref = jax.block_until_ready(bilstm_reference(x, params))
    max_err = float(jnp.max(jnp.abs(out - ref)))
    assert max_err < 5e-2, f"max abs err vs reference: {max_err}"

    print("KERNEL_OK")
</pallas_src>

<mosaic_0001>
module attributes {stable_mosaic.version = 11 : i64} {
  func.func @kernel(%arg0: memref<16x16xf32, #tpu.memory_space<vmem>>, %arg1: memref<16x256xf32, #tpu.memory_space<vmem>>, %arg2: memref<32x256xf32, #tpu.memory_space<vmem>>, %arg3: memref<1x256xf32, #tpu.memory_space<vmem>>, %arg4: memref<64x256xf32, #tpu.memory_space<vmem>>, %arg5: memref<32x256xf32, #tpu.memory_space<vmem>>, %arg6: memref<1x256xf32, #tpu.memory_space<vmem>>, %arg7: memref<64x4xf32, #tpu.memory_space<vmem>>, %arg8: memref<1x4xf32, #tpu.memory_space<vmem>>, %arg9: memref<2x4xf32, #tpu.memory_space<vmem>>, %arg10: memref<16x256xf32, #tpu.memory_space<vmem>>, %arg11: memref<16x64xf32, #tpu.memory_space<vmem>>, %arg12: memref<4x32xf32, #tpu.memory_space<vmem>>, %arg13: memref<4x32xf32, #tpu.memory_space<vmem>>) attributes {dimension_semantics = [], scalar_prefetch = 0 : i64, scratch_operands = 4 : i64, tpu.core_type = #tpu.core_type<tc>} {
    %0 = tpu.iota {dimensions = array<i32: 0>} : vector<4x128xi32>
    %c2_i32 = arith.constant 2 : i32
    %1 = vector.broadcast %c2_i32 : i32 to vector<4x128xi32>
    %2 = arith.cmpi slt, %0, %1 : vector<4x128xi32>
    %c0 = arith.constant 0 : index
    %c0_0 = arith.constant 0 : index
    %3 = vector.load %arg0[%c0, %c0_0] : memref<16x16xf32, #tpu.memory_space<vmem>>, vector<16x16xf32>
    %c0_1 = arith.constant 0 : index
    %c0_2 = arith.constant 0 : index
    %4 = vector.load %arg1[%c0_1, %c0_2] : memref<16x256xf32, #tpu.memory_space<vmem>>, vector<16x256xf32>
    %cst = arith.constant dense<0.000000e+00> : vector<16x256xf32>
    %5 = tpu.matmul %3, %4, %cst {dimension_numbers = #tpu.dot_dimension_numbers<[1], [0], [0], [1], [0, 0, 1, 1], [], []>} : vector<16x16xf32>, vector<16x256xf32>, vector<16x256xf32> -> vector<16x256xf32>
    %c0_3 = arith.constant 0 : index
    %c0_4 = arith.constant 0 : index
    %6 = vector.load %arg3[%c0_3, %c0_4] : memref<1x256xf32, #tpu.memory_space<vmem>>, vector<1x256xf32>
    %7 = vector.broadcast %6 : vector<1x256xf32> to vector<16x256xf32>
    %8 = arith.addf %5, %7 : vector<16x256xf32>
    %c0_5 = arith.constant 0 : index
    %c0_6 = arith.constant 0 : index
    %9 = vector.load %arg10[%c0_5, %c0_6] : memref<16x256xf32, #tpu.memory_space<vmem>>, vector<16x256xf32>
    tpu.vector_store %arg10[%c0_5, %c0_6], %8 {strides = array<i32>} : memref<16x256xf32, #tpu.memory_space<vmem>>, vector<16x256xf32>,
    %cst_7 = arith.constant 0.000000e+00 : f32
    %10 = vector.broadcast %cst_7 : f32 to vector<4x32xf32>
    %c0_8 = arith.constant 0 : index
    %c0_9 = arith.constant 0 : index
    %11 = vector.load %arg12[%c0_8, %c0_9] : memref<4x32xf32, #tpu.memory_space<vmem>>, vector<4x32xf32>
    tpu.vector_store %arg12[%c0_8, %c0_9], %10 {strides = array<i32>} : memref<4x32xf32, #tpu.memory_space<vmem>>, vector<4x32xf32>,
    %cst_10 = arith.constant 0.000000e+00 : f32
    %12 = vector.broadcast %cst_10 : f32 to vector<4x32xf32>
    %c0_11 = arith.constant 0 : index
    %c0_12 = arith.constant 0 : index
    %13 = vector.load %arg13[%c0_11, %c0_12] : memref<4x32xf32, #tpu.memory_space<vmem>>, vector<4x32xf32>
    tpu.vector_store %arg13[%c0_11, %c0_12], %12 {strides = array<i32>} : memref<4x32xf32, #tpu.memory_space<vmem>>, vector<4x32xf32>,
    %c0_i32 = arith.constant 0 : i32
    %c7_i32 = arith.constant 7 : i32
    %14 = arith.subi %c7_i32, %c0_i32 : i32
    %c0_13 = arith.constant 0 : index
    %c0_14 = arith.constant 0 : index
    %15 = vector.load %arg12[%c0_13, %c0_14] : memref<4x32xf32, #tpu.memory_space<vmem>>, vector<4x32xf32>
    %c0_15 = arith.constant 0 : index
    %c0_16 = arith.constant 0 : index
    %16 = vector.load %arg2[%c0_15, %c0_16] : memref<32x256xf32, #tpu.memory_space<vmem>>, vector<32x256xf32>
    %cst_17 = arith.constant dense<0.000000e+00> : vector<4x256xf32>
    %17 = tpu.matmul %15, %16, %cst_17 {dimension_numbers = #tpu.dot_dimension_numbers<[1], [0], [0], [1], [0, 0, 1, 1], [], []>} : vector<4x32xf32>, vector<32x256xf32>, vector<4x256xf32> -> vector<4x256xf32>
    %c2_i32_18 = arith.constant 2 : i32
    %18 = arith.muli %c0_i32, %c2_i32_18 : i32
    %19 = arith.index_cast %18 : i32 to index
    %c0_19 = arith.constant 0 : index
    %20 = vector.load %arg10[%19, %c0_19] : memref<16x256xf32, #tpu.memory_space<vmem>>, vector<2x128xf32>
    %c2_i32_20 = arith.constant 2 : i32
    %21 = arith.muli %14, %c2_i32_20 : i32
    %22 = arith.index_cast %21 : i32 to index
    %c128 = arith.constant 128 : index
    %23 = vector.load %arg10[%22, %c128] : memref<16x256xf32, #tpu.memory_space<vmem>>, vector<2x128xf32>
    %24 = tpu.concatenate %20, %23 in 0 : vector<2x128xf32>, vector<2x128xf32> -> vector<4x128xf32>
    %25 = vector.extract_strided_slice %17 {offsets = [0, 0], sizes = [4, 128], strides = [1, 1]} : vector<4x256xf32> to vector<4x128xf32>
    %26 = vector.extract_strided_slice %17 {offsets = [0, 128], sizes = [4, 128], strides = [1, 1]} : vector<4x256xf32> to vector<4x128xf32>
    %27 = arith.select %2, %25, %26 : vector<4x128xi1>, vector<4x128xf32>
    %28 = arith.addf %24, %27 : vector<4x128xf32>
    %29 = vector.extract_strided_slice %28 {offsets = [0, 0], sizes = [4, 32], strides = [1, 1]} : vector<4x128xf32> to vector<4x32xf32>
    %30 = arith.negf %29 : vector<4x32xf32>
    %31 = math.exp %30 : vector<4x32xf32>
    %cst_21 = arith.constant 1.000000e+00 : f32
    %32 = vector.broadcast %cst_21 : f32 to vector<4x32xf32>
    %33 = arith.addf %32, %31 : vector<4x32xf32>
    %34 = arith.divf %32, %33 : vector<4x32xf32>
    %35 = vector.extract_strided_slice %28 {offsets = [0, 32], sizes = [4, 32], strides = [1, 1]} : vector<4x128xf32> to vector<4x32xf32>
    %36 = arith.negf %35 : vector<4x32xf32>
    %37 = math.exp %36 : vector<4x32xf32>
    %cst_22 = arith.constant 1.000000e+00 : f32
    %38 = vector.broadcast %cst_22 : f32 to vector<4x32xf32>
    %39 = arith.addf %38, %37 : vector<4x32xf32>
    %40 = arith.divf %38, %39 : vector<4x32xf32>
    %41 = vector.extract_strided_slice %28 {offsets = [0, 64], sizes = [4, 32], strides = [1, 1]} : vector<4x128xf32> to vector<4x32xf32>
    %42 = math.tanh %41 : vector<4x32xf32>
    %43 = vector.extract_strided_slice %28 {offsets = [0, 96], sizes = [4, 32], strides = [1, 1]} : vector<4x128xf32> to vector<4x32xf32>
    %44 = arith.negf %43 : vector<4x32xf32>
    %45 = math.exp %44 : vector<4x32xf32>
    %cst_23 = arith.constant 1.000000e+00 : f32
    %46 = vector.broadcast %cst_23 : f32 to vector<4x32xf32>
    %47 = arith.addf %46, %45 : vector<4x32xf32>
    %48 = arith.divf %46, %47 : vector<4x32xf32>
    %c0_24 = arith.constant 0 : index
    %c0_25 = arith.constant 0 : index
    %49 = vector.load %arg13[%c0_24, %c0_25] : memref<4x32xf32, #tpu.memory_space<vmem>>, vector<4x32xf32>
    %50 = arith.mulf %40, %49 : vector<4x32xf32>
    %51 = arith.mulf %34, %42 : vector<4x32xf32>
    %52 = arith.addf %50, %51 : vector<4x32xf32>
    %53 = math.tanh %52 : vector<4x32xf32>
    %54 = arith.mulf %48, %53 : vector<4x32xf32>
    %c0_26 = arith.constant 0 : index
    %c0_27 = arith.constant 0 : index
    %55 = vector.load %arg13[%c0_26, %c0_27] : memref<4x32xf32, #tpu.memory_space<vmem>>, vector<4x32xf32>
    tpu.vector_store %arg13[%c0_26, %c0_27], %52 {strides = array<i32>} : memref<4x32xf32, #tpu.memory_space<vmem>>, vector<4x32xf32>,
    %c0_28 = arith.constant 0 : index
    %c0_29 = arith.constant 0 : index
    %56 = vector.load %arg12[%c0_28, %c0_29] : memref<4x32xf32, #tpu.memory_space<vmem>>, vector<4x32xf32>
    tpu.vector_store %arg12[%c0_28, %c0_29], %54 {strides = array<i32>} : memref<4x32xf32, #tpu.memory_space<vmem>>, vector<4x32xf32>,
    %57 = vector.extract_strided_slice %54 {offsets = [0, 0], sizes = [2, 32], strides = [1, 1]} : vector<4x32xf32> to vector<2x32xf32>
    %c2_i32_30 = arith.constant 2 : i32
    %58 = arith.muli %c0_i32, %c2_i32_30 : i32
    %59 = arith.index_cast %58 : i32 to index
    %c0_31 = arith.constant 0 : index
    %60 = vector.load %arg11[%59, %c0_31] : memref<16x64xf32, #tpu.memory_space<vmem>>, vector<2x32xf32>
    tpu.vector_store %arg11[%59, %c0_31], %57 {strides = array<i32>} : memref<16x64xf32, #tpu.memory_space<vmem>>, vector<2x32xf32>,
    %61 = vector.extract_strided_slice %54 {offsets = [2, 0], sizes = [2, 32], strides = [1, 1]} : vector<4x32xf32> to vector<2x32xf32>
    %c2_i32_32 = arith.constant 2 : i32
    %62 = arith.muli %14, %c2_i32_32 : i32
    %63 = arith.index_cast %62 : i32 to index
    %c32 = arith.constant 32 : index
    %64 = vector.load %arg11[%63, %c32] : memref<16x64xf32, #tpu.memory_space<vmem>>, vector<2x32xf32>
    tpu.vector_store %arg11[%63, %c32], %61 {strides = array<i32>} : memref<16x64xf32, #tpu.memory_space<vmem>>, vector<2x32xf32>,
    %c1_i32 = arith.constant 1 : i32
    %c7_i32_33 = arith.constant 7 : i32
    %65 = arith.subi %c7_i32_33, %c1_i32 : i32
    %c0_34 = arith.constant 0 : index
    %c0_35 = arith.constant 0 : index
    %66 = vector.load %arg12[%c0_34, %c0_35] : memref<4x32xf32, #tpu.memory_space<vmem>>, vector<4x32xf32>
    %c0_36 = arith.constant 0 : index
    %c0_37 = arith.constant 0 : index
    %67 = vector.load %arg2[%c0_36, %c0_37] : memref<32x256xf32, #tpu.memory_space<vmem>>, vector<32x256xf32>
    %cst_38 = arith.constant dense<0.000000e+00> : vector<4x256xf32>
    %68 = tpu.matmul %66, %67, %cst_38 {dimension_numbers = #tpu.dot_dimension_numbers<[1], [0], [0], [1], [0, 0, 1, 1], [], []>} : vector<4x32xf32>, vector<32x256xf32>, vector<4x256xf32> -> vector<4x256xf32>
    %c2_i32_39 = arith.constant 2 : i32
    %69 = arith.muli %c1_i32, %c2_i32_39 : i32
    %70 = arith.index_cast %69 : i32 to index
    %c0_40 = arith.constant 0 : index
    %71 = vector.load %arg10[%70, %c0_40] : memref<16x256xf32, #tpu.memory_space<vmem>>, vector<2x128xf32>
    %c2_i32_41 = arith.constant 2 : i32
    %72 = arith.muli %65, %c2_i32_41 : i32
    %73 = arith.index_cast %72 : i32 to index
    %c128_42 = arith.constant 128 : index
    %74 = vector.load %arg10[%73, %c128_42] : memref<16x256xf32, #tpu.memory_space<vmem>>, vector<2x128xf32>
    %75 = tpu.concatenate %71, %74 in 0 : vector<2x128xf32>, vector<2x128xf32> -> vector<4x128xf32>
    %76 = vector.extract_strided_slice %68 {offsets = [0, 0], sizes = [4, 128], strides = [1, 1]} : vector<4x256xf32> to vector<4x128xf32>
    %77 = vector.extract_strided_slice %68 {offsets = [0, 128], sizes = [4, 128], strides = [1, 1]} : vector<4x256xf32> to vector<4x128xf32>
    %78 = arith.select %2, %76, %77 : vector<4x128xi1>, vector<4x128xf32>
    %79 = arith.addf %75, %78 : vector<4x128xf32>
    %80 = vector.extract_strided_slice %79 {offsets = [0, 0], sizes = [4, 32], strides = [1, 1]} : vector<4x128xf32> to vector<4x32xf32>
    %81 = arith.negf %80 : vector<4x32xf32>
    %82 = math.exp %81 : vector<4x32xf32>
    %cst_43 = arith.constant 1.000000e+00 : f32
    %83 = vector.broadcast %cst_43 : f32 to vector<4x32xf32>
    %84 = arith.addf %83, %82 : vector<4x32xf32>
    %85 = arith.divf %83, %84 : vector<4x32xf32>
    %86 = vector.extract_strided_slice %79 {offsets = [0, 32], sizes = [4, 32], strides = [1, 1]} : vector<4x128xf32> to vector<4x32xf32>
    %87 = arith.negf %86 : vector<4x32xf32>
    %88 = math.exp %87 : vector<4x32xf32>
    %cst_44 = arith.constant 1.000000e+00 : f32
    %89 = vector.broadcast %cst_44 : f32 to vector<4x32xf32>
    %90 = arith.addf %89, %88 : vector<4x32xf32>
    %91 = arith.divf %89, %90 : vector<4x32xf32>
    %92 = vector.extract_strided_slice %79 {offsets = [0, 64], sizes = [4, 32], strides = [1, 1]} : vector<4x128xf32> to vector<4x32xf32>
    %93 = math.tanh %92 : vector<4x32xf32>
    %94 = vector.extract_strided_slice %79 {offsets = [0, 96], sizes = [4, 32], strides = [1, 1]} : vector<4x128xf32> to vector<4x32xf32>
    %95 = arith.negf %94 : vector<4x32xf32>
    %96 = math.exp %95 : vector<4x32xf32>
    %cst_45 = arith.constant 1.000000e+00 : f32
    %97 = vector.broadcast %cst_45 : f32 to vector<4x32xf32>
    %98 = arith.addf %97, %96 : vector<4x32xf32>
    %99 = arith.divf %97, %98 : vector<4x32xf32>
    %c0_46 = arith.constant 0 : index
    %c0_47 = arith.constant 0 : index
    %100 = vector.load %arg13[%c0_46, %c0_47] : memref<4x32xf32, #tpu.memory_space<vmem>>, vector<4x32xf32>
    %101 = arith.mulf %91, %100 : vector<4x32xf32>
    %102 = arith.mulf %85, %93 : vector<4x32xf32>
    %103 = arith.addf %101, %102 : vector<4x32xf32>
    %104 = math.tanh %103 : vector<4x32xf32>
    %105 = arith.mulf %99, %104 : vector<4x32xf32>
    %c0_48 = arith.constant 0 : index
    %c0_49 = arith.constant 0 : index
    %106 = vector.load %arg13[%c0_48, %c0_49] : memref<4x32xf32, #tpu.memory_space<vmem>>, vector<4x32xf32>
    tpu.vector_store %arg13[%c0_48, %c0_49], %103 {strides = array<i32>} : memref<4x32xf32, #tpu.memory_space<vmem>>, vector<4x32xf32>,
    %c0_50 = arith.constant 0 : index
    %c0_51 = arith.constant 0 : index
    %107 = vector.load %arg12[%c0_50, %c0_51] : memref<4x32xf32, #tpu.memory_space<vmem>>, vector<4x32xf32>
    tpu.vector_store %arg12[%c0_50, %c0_51], %105 {strides = array<i32>} : memref<4x32xf32, #tpu.memory_space<vmem>>, vector<4x32xf32>,
    %108 = vector.extract_strided_slice %105 {offsets = [0, 0], sizes = [2, 32], strides = [1, 1]} : vector<4x32xf32> to vector<2x32xf32>
    %c2_i32_52 = arith.constant 2 : i32
    %109 = arith.muli %c1_i32, %c2_i32_52 : i32
    %110 = arith.index_cast %109 : i32 to index
    %c0_53 = arith.constant 0 : index
    %111 = vector.load %arg11[%110, %c0_53] : memref<16x64xf32, #tpu.memory_space<vmem>>, vector<2x32xf32>
    tpu.vector_store %arg11[%110, %c0_53], %108 {strides = array<i32>} : memref<16x64xf32, #tpu.memory_space<vmem>>, vector<2x32xf32>,
    %112 = vector.extract_strided_slice %105 {offsets = [2, 0], sizes = [2, 32], strides = [1, 1]} : vector<4x32xf32> to vector<2x32xf32>
    %c2_i32_54 = arith.constant 2 : i32
    %113 = arith.muli %65, %c2_i32_54 : i32
    %114 = arith.index_cast %113 : i32 to index
    %c32_55 = arith.constant 32 : index
    %115 = vector.load %arg11[%114, %c32_55] : memref<16x64xf32, #tpu.memory_space<vmem>>, vector<2x32xf32>
    tpu.vector_store %arg11[%114, %c32_55], %112 {strides = array<i32>} : memref<16x64xf32, #tpu.memory_space<vmem>>, vector<2x32xf32>,
    %c2_i32_56 = arith.constant 2 : i32
    %c7_i32_57 = arith.constant 7 : i32
    %116 = arith.subi %c7_i32_57, %c2_i32_56 : i32
    %c0_58 = arith.constant 0 : index
    %c0_59 = arith.constant 0 : index
    %117 = vector.load %arg12[%c0_58, %c0_59] : memref<4x32xf32, #tpu.memory_space<vmem>>, vector<4x32xf32>
    %c0_60 = arith.constant 0 : index
    %c0_61 = arith.constant 0 : index
    %118 = vector.load %arg2[%c0_60, %c0_61] : memref<32x256xf32, #tpu.memory_space<vmem>>, vector<32x256xf32>
    %cst_62 = arith.constant dense<0.000000e+00> : vector<4x256xf32>
    %119 = tpu.matmul %117, %118, %cst_62 {dimension_numbers = #tpu.dot_dimension_numbers<[1], [0], [0], [1], [0, 0, 1, 1], [], []>} : vector<4x32xf32>, vector<32x256xf32>, vector<4x256xf32> -> vector<4x256xf32>
    %c2_i32_63 = arith.constant 2 : i32
    %120 = arith.muli %c2_i32_56, %c2_i32_63 : i32
    %121 = arith.index_cast %120 : i32 to index
    %c0_64 = arith.constant 0 : index
    %122 = vector.load %arg10[%121, %c0_64] : memref<16x256xf32, #tpu.memory_space<vmem>>, vector<2x128xf32>
    %c2_i32_65 = arith.constant 2 : i32
    %123 = arith.muli %116, %c2_i32_65 : i32
    %124 = arith.index_cast %123 : i32 to index
    %c128_66 = arith.constant 128 : index
    %125 = vector.load %arg10[%124, %c128_66] : memref<16x256xf32, #tpu.memory_space<vmem>>, vector<2x128xf32>
    %126 = tpu.concatenate %122, %125 in 0 : vector<2x128xf32>, vector<2x128xf32> -> vector<4x128xf32>
    %127 = vector.extract_strided_slice %119 {offsets = [0, 0], sizes = [4, 128], strides = [1, 1]} : vector<4x256xf32> to vector<4x128xf32>
    %128 = vector.extract_strided_slice %119 {offsets = [0, 128], sizes = [4, 128], strides = [1, 1]} : vector<4x256xf32> to vector<4x128xf32>
    %129 = arith.select %2, %127, %128 : vector<4x128xi1>, vector<4x128xf32>
    %130 = arith.addf %126, %129 : vector<4x128xf32>
    %131 = vector.extract_strided_slice %130 {offsets = [0, 0], sizes = [4, 32], strides = [1, 1]} : vector<4x128xf32> to vector<4x32xf32>
    %132 = arith.negf %131 : vector<4x32xf32>
    %133 = math.exp %132 : vector<4x32xf32>
    %cst_67 = arith.constant 1.000000e+00 : f32
    %134 = vector.broadcast %cst_67 : f32 to vector<4x32xf32>
    %135 = arith.addf %134, %133 : vector<4x32xf32>
    %136 = arith.divf %134, %135 : vector<4x32xf32>
    %137 = vector.extract_strided_slice %130 {offsets = [0, 32], sizes = [4, 32], strides = [1, 1]} : vector<4x128xf32> to vector<4x32xf32>
    %138 = arith.negf %137 : vector<4x32xf32>
    %139 = math.exp %138 : vector<4x32xf32>
    %cst_68 = arith.constant 1.000000e+00 : f32
    %140 = vector.broadcast %cst_68 : f32 to vector<4x32xf32>
    %141 = arith.addf %140, %139 : vector<4x32xf32>
    %142 = arith.divf %140, %141 : vector<4x32xf32>
    %143 = vector.extract_strided_slice %130 {offsets = [0, 64], sizes = [4, 32], strides = [1, 1]} : vector<4x128xf32> to vector<4x32xf32>
    %144 = math.tanh %143 : vector<4x32xf32>
    %145 = vector.extract_strided_slice %130 {offsets = [0, 96], sizes = [4, 32], strides = [1, 1]} : vector<4x128xf32> to vector<4x32xf32>
    %146 = arith.negf %145 : vector<4x32xf32>
    %147 = math.exp %146 : vector<4x32xf32>
    %cst_69 = arith.constant 1.000000e+00 : f32
    %148 = vector.broadcast %cst_69 : f32 to vector<4x32xf32>
    %149 = arith.addf %148, %147 : vector<4x32xf32>
    %150 = arith.divf %148, %149 : vector<4x32xf32>
    %c0_70 = arith.constant 0 : index
    %c0_71 = arith.constant 0 : index
    %151 = vector.load %arg13[%c0_70, %c0_71] : memref<4x32xf32, #tpu.memory_space<vmem>>, vector<4x32xf32>
    %152 = arith.mulf %142, %151 : vector<4x32xf32>
    %153 = arith.mulf %136, %144 : vector<4x32xf32>
    %154 = arith.addf %152, %153 : vector<4x32xf32>
    %155 = math.tanh %154 : vector<4x32xf32>
    %156 = arith.mulf %150, %155 : vector<4x32xf32>
    %c0_72 = arith.constant 0 : index
    %c0_73 = arith.constant 0 : index
    %157 = vector.load %arg13[%c0_72, %c0_73] : memref<4x32xf32, #tpu.memory_space<vmem>>, vector<4x32xf32>
    tpu.vector_store %arg13[%c0_72, %c0_73], %154 {strides = array<i32>} : memref<4x32xf32, #tpu.memory_space<vmem>>, vector<4x32xf32>,
    %c0_74 = arith.constant 0 : index
    %c0_75 = arith.constant 0 : index
    %158 = vector.load %arg12[%c0_74, %c0_75] : memref<4x32xf32, #tpu.memory_space<vmem>>, vector<4x32xf32>
    tpu.vector_store %arg12[%c0_74, %c0_75], %156 {strides = array<i32>} : memref<4x32xf32, #tpu.memory_space<vmem>>, vector<4x32xf32>,
    %159 = vector.extract_strided_slice %156 {offsets = [0, 0], sizes = [2, 32], strides = [1, 1]} : vector<4x32xf32> to vector<2x32xf32>
    %c2_i32_76 = arith.constant 2 : i32
    %160 = arith.muli %c2_i32_56, %c2_i32_76 : i32
    %161 = arith.index_cast %160 : i32 to index
    %c0_77 = arith.constant 0 : index
    %162 = vector.load %arg11[%161, %c0_77] : memref<16x64xf32, #tpu.memory_space<vmem>>, vector<2x32xf32>
    tpu.vector_store %arg11[%161, %c0_77], %159 {strides = array<i32>} : memref<16x64xf32, #tpu.memory_space<vmem>>, vector<2x32xf32>,
    %163 = vector.extract_strided_slice %156 {offsets = [2, 0], sizes = [2, 32], strides = [1, 1]} : vector<4x32xf32> to vector<2x32xf32>
    %c2_i32_78 = arith.constant 2 : i32
    %164 = arith.muli %116, %c2_i32_78 : i32
    %165 = arith.index_cast %164 : i32 to index
    %c32_79 = arith.constant 32 : index
    %166 = vector.load %arg11[%165, %c32_79] : memref<16x64xf32, #tpu.memory_space<vmem>>, vector<2x32xf32>
    tpu.vector_store %arg11[%165, %c32_79], %163 {strides = array<i32>} : memref<16x64xf32, #tpu.memory_space<vmem>>, vector<2x32xf32>,
    %c3_i32 = arith.constant 3 : i32
    %c7_i32_80 = arith.constant 7 : i32
    %167 = arith.subi %c7_i32_80, %c3_i32 : i32
    %c0_81 = arith.constant 0 : index
    %c0_82 = arith.constant 0 : index
    %168 = vector.load %arg12[%c0_81, %c0_82] : memref<4x32xf32, #tpu.memory_space<vmem>>, vector<4x32xf32>
    %c0_83 = arith.constant 0 : index
    %c0_84 = arith.constant 0 : index
    %169 = vector.load %arg2[%c0_83, %c0_84] : memref<32x256xf32, #tpu.memory_space<vmem>>, vector<32x256xf32>
    %cst_85 = arith.constant dense<0.000000e+00> : vector<4x256xf32>
    %170 = tpu.matmul %168, %169, %cst_85 {dimension_numbers = #tpu.dot_dimension_numbers<[1], [0], [0], [1], [0, 0, 1, 1], [], []>} : vector<4x32xf32>, vector<32x256xf32>, vector<4x256xf32> -> vector<4x256xf32>
    %c2_i32_86 = arith.constant 2 : i32
    %171 = arith.muli %c3_i32, %c2_i32_86 : i32
    %172 = arith.index_cast %171 : i32 to index
    %c0_87 = arith.constant 0 : index
    %173 = vector.load %arg10[%172, %c0_87] : memref<16x256xf32, #tpu.memory_space<vmem>>, vector<2x128xf32>
    %c2_i32_88 = arith.constant 2 : i32
    %174 = arith.muli %167, %c2_i32_88 : i32
    %175 = arith.index_cast %174 : i32 to index
    %c128_89 = arith.constant 128 : index
    %176 = vector.load %arg10[%175, %c128_89] : memref<16x256xf32, #tpu.memory_space<vmem>>, vector<2x128xf32>
    %177 = tpu.concatenate %173, %176 in 0 : vector<2x128xf32>, vector<2x128xf32> -> vector<4x128xf32>
    %178 = vector.extract_strided_slice %170 {offsets = [0, 0], sizes = [4, 128], strides = [1, 1]} : vector<4x256xf32> to vector<4x128xf32>
    %179 = vector.extract_strided_slice %170 {offsets = [0, 128], sizes = [4, 128], strides = [1, 1]} : vector<4x256xf32> to vector<4x128xf32>
    %180 = arith.select %2, %178, %179 : vector<4x128xi1>, vector<4x128xf32>
    %181 = arith.addf %177, %180 : vector<4x128xf32>
    %182 = vector.extract_strided_slice %181 {offsets = [0, 0], sizes = [4, 32], strides = [1, 1]} : vector<4x128xf32> to vector<4x32xf32>
    %183 = arith.negf %182 : vector<4x32xf32>
    %184 = math.exp %183 : vector<4x32xf32>
    %cst_90 = arith.constant 1.000000e+00 : f32
    %185 = vector.broadcast %cst_90 : f32 to vector<4x32xf32>
    %186 = arith.addf %185, %184 : vector<4x32xf32>
    %187 = arith.divf %185, %186 : vector<4x32xf32>
    %188 = vector.extract_strided_slice %181 {offsets = [0, 32], sizes = [4, 32], strides = [1, 1]} : vector<4x128xf32> to vector<4x32xf32>
    %189 = arith.negf %188 : vector<4x32xf32>
    %190 = math.exp %189 : vector<4x32xf32>
    %cst_91 = arith.constant 1.000000e+00 : f32
    %191 = vector.broadcast %cst_91 : f32 to vector<4x32xf32>
    %192 = arith.addf %191, %190 : vector<4x32xf32>
    %193 = arith.divf %191, %192 : vector<4x32xf32>
    %194 = vector.extract_strided_slice %181 {offsets = [0, 64], sizes = [4, 32], strides = [1, 1]} : vector<4x128xf32> to vector<4x32xf32>
    %195 = math.tanh %194 : vector<4x32xf32>
    %196 = vector.extract_strided_slice %181 {offsets = [0, 96], sizes = [4, 32], strides = [1, 1]} : vector<4x128xf32> to vector<4x32xf32>
    %197 = arith.negf %196 : vector<4x32xf32>
    %198 = math.exp %197 : vector<4x32xf32>
    %cst_92 = arith.constant 1.000000e+00 : f32
    %199 = vector.broadcast %cst_92 : f32 to vector<4x32xf32>
    %200 = arith.addf %199, %198 : vector<4x32xf32>
    %201 = arith.divf %199, %200 : vector<4x32xf32>
    %c0_93 = arith.constant 0 : index
    %c0_94 = arith.constant 0 : index
    %202 = vector.load %arg13[%c0_93, %c0_94] : memref<4x32xf32, #tpu.memory_space<vmem>>, vector<4x32xf32>
    %203 = arith.mulf %193, %202 : vector<4x32xf32>
    %204 = arith.mulf %187, %195 : vector<4x32xf32>
    %205 = arith.addf %203, %204 : vector<4x32xf32>
    %206 = math.tanh %205 : vector<4x32xf32>
    %207 = arith.mulf %201, %206 : vector<4x32xf32>
    %c0_95 = arith.constant 0 : index
    %c0_96 = arith.constant 0 : index
    %208 = vector.load %arg13[%c0_95, %c0_96] : memref<4x32xf32, #tpu.memory_space<vmem>>, vector<4x32xf32>
    tpu.vector_store %arg13[%c0_95, %c0_96], %205 {strides = array<i32>} : memref<4x32xf32, #tpu.memory_space<vmem>>, vector<4x32xf32>,
    %c0_97 = arith.constant 0 : index
    %c0_98 = arith.constant 0 : index
    %209 = vector.load %arg12[%c0_97, %c0_98] : memref<4x32xf32, #tpu.memory_space<vmem>>, vector<4x32xf32>
    tpu.vector_store %arg12[%c0_97, %c0_98], %207 {strides = array<i32>} : memref<4x32xf32, #tpu.memory_space<vmem>>, vector<4x32xf32>,
    %210 = vector.extract_strided_slice %207 {offsets = [0, 0], sizes = [2, 32], strides = [1, 1]} : vector<4x32xf32> to vector<2x32xf32>
    %c2_i32_99 = arith.constant 2 : i32
    %211 = arith.muli %c3_i32, %c2_i32_99 : i32
    %212 = arith.index_cast %211 : i32 to index
    %c0_100 = arith.constant 0 : index
    %213 = vector.load %arg11[%212, %c0_100] : memref<16x64xf32, #tpu.memory_space<vmem>>, vector<2x32xf32>
    tpu.vector_store %arg11[%212, %c0_100], %210 {strides = array<i32>} : memref<16x64xf32, #tpu.memory_space<vmem>>, vector<2x32xf32>,
    %214 = vector.extract_strided_slice %207 {offsets = [2, 0], sizes = [2, 32], strides = [1, 1]} : vector<4x32xf32> to vector<2x32xf32>
    %c2_i32_101 = arith.constant 2 : i32
    %215 = arith.muli %167, %c2_i32_101 : i32
    %216 = arith.index_cast %215 : i32 to index
    %c32_102 = arith.constant 32 : index
    %217 = vector.load %arg11[%216, %c32_102] : memref<16x64xf32, #tpu.memory_space<vmem>>, vector<2x32xf32>
    tpu.vector_store %arg11[%216, %c32_102], %214 {strides = array<i32>} : memref<16x64xf32, #tpu.memory_space<vmem>>, vector<2x32xf32>,
    %c4_i32 = arith.constant 4 : i32
    %c7_i32_103 = arith.constant 7 : i32
    %218 = arith.subi %c7_i32_103, %c4_i32 : i32
    %c0_104 = arith.constant 0 : index
    %c0_105 = arith.constant 0 : index
    %219 = vector.load %arg12[%c0_104, %c0_105] : memref<4x32xf32, #tpu.memory_space<vmem>>, vector<4x32xf32>
    %c0_106 = arith.constant 0 : index
    %c0_107 = arith.constant 0 : index
    %220 = vector.load %arg2[%c0_106, %c0_107] : memref<32x256xf32, #tpu.memory_space<vmem>>, vector<32x256xf32>
    %cst_108 = arith.constant dense<0.000000e+00> : vector<4x256xf32>
    %221 = tpu.matmul %219, %220, %cst_108 {dimension_numbers = #tpu.dot_dimension_numbers<[1], [0], [0], [1], [0, 0, 1, 1], [], []>} : vector<4x32xf32>, vector<32x256xf32>, vector<4x256xf32> -> vector<4x256xf32>
    %c2_i32_109 = arith.constant 2 : i32
    %222 = arith.muli %c4_i32, %c2_i32_109 : i32
    %223 = arith.index_cast %222 : i32 to index
    %c0_110 = arith.constant 0 : index
    %224 = vector.load %arg10[%223, %c0_110] : memref<16x256xf32, #tpu.memory_space<vmem>>, vector<2x128xf32>
    %c2_i32_111 = arith.constant 2 : i32
    %225 = arith.muli %218, %c2_i32_111 : i32
    %226 = arith.index_cast %225 : i32 to index
    %c128_112 = arith.constant 128 : index
    %227 = vector.load %arg10[%226, %c128_112] : memref<16x256xf32, #tpu.memory_space<vmem>>, vector<2x128xf32>
    %228 = tpu.concatenate %224, %227 in 0 : vector<2x128xf32>, vector<2x128xf32> -> vector<4x128xf32>
    %229 = vector.extract_strided_slice %221 {offsets = [0, 0], sizes = [4, 128], strides = [1, 1]} : vector<4x256xf32> to vector<4x128xf32>
    %230 = vector.extract_strided_slice %221 {offsets = [0, 128], sizes = [4, 128], strides = [1, 1]} : vector<4x256xf32> to vector<4x128xf32>
    %231 = arith.select %2, %229, %230 : vector<4x128xi1>, vector<4x128xf32>
    %232 = arith.addf %228, %231 : vector<4x128xf32>
    %233 = vector.extract_strided_slice %232 {offsets = [0, 0], sizes = [4, 32], strides = [1, 1]} : vector<4x128xf32> to vector<4x32xf32>
    %234 = arith.negf %233 : vector<4x32xf32>
    %235 = math.exp %234 : vector<4x32xf32>
    %cst_113 = arith.constant 1.000000e+00 : f32
    %236 = vector.broadcast %cst_113 : f32 to vector<4x32xf32>
    %237 = arith.addf %236, %235 : vector<4x32xf32>
    %238 = arith.divf %236, %237 : vector<4x32xf32>
    %239 = vector.extract_strided_slice %232 {offsets = [0, 32], sizes = [4, 32], strides = [1, 1]} : vector<4x128xf32> to vector<4x32xf32>
    %240 = arith.negf %239 : vector<4x32xf32>
    %241 = math.exp %240 : vector<4x32xf32>
    %cst_114 = arith.constant 1.000000e+00 : f32
    %242 = vector.broadcast %cst_114 : f32 to vector<4x32xf32>
    %243 = arith.addf %242, %241 : vector<4x32xf32>
    %244 = arith.divf %242, %243 : vector<4x32xf32>
    %245 = vector.extract_strided_slice %232 {offsets = [0, 64], sizes = [4, 32], strides = [1, 1]} : vector<4x128xf32> to vector<4x32xf32>
    %246 = math.tanh %245 : vector<4x32xf32>
    %247 = vector.extract_strided_slice %232 {offsets = [0, 96], sizes = [4, 32], strides = [1, 1]} : vector<4x128xf32> to vector<4x32xf32>
    %248 = arith.negf %247 : vector<4x32xf32>
    %249 = math.exp %248 : vector<4x32xf32>
    %cst_115 = arith.constant 1.000000e+00 : f32
    %250 = vector.broadcast %cst_115 : f32 to vector<4x32xf32>
    %251 = arith.addf %250, %249 : vector<4x32xf32>
    %252 = arith.divf %250, %251 : vector<4x32xf32>
    %c0_116 = arith.constant 0 : index
    %c0_117 = arith.constant 0 : index
    %253 = vector.load %arg13[%c0_116, %c0_117] : memref<4x32xf32, #tpu.memory_space<vmem>>, vector<4x32xf32>
    %254 = arith.mulf %244, %253 : vector<4x32xf32>
    %255 = arith.mulf %238, %246 : vector<4x32xf32>
    %256 = arith.addf %254, %255 : vector<4x32xf32>
    %257 = math.tanh %256 : vector<4x32xf32>
    %258 = arith.mulf %252, %257 : vector<4x32xf32>
    %c0_118 = arith.constant 0 : index
    %c0_119 = arith.constant 0 : index
    %259 = vector.load %arg13[%c0_118, %c0_119] : memref<4x32xf32, #tpu.memory_space<vmem>>, vector<4x32xf32>
    tpu.vector_store %arg13[%c0_118, %c0_119], %256 {strides = array<i32>} : memref<4x32xf32, #tpu.memory_space<vmem>>, vector<4x32xf32>,
    %c0_120 = arith.constant 0 : index
    %c0_121 = arith.constant 0 : index
    %260 = vector.load %arg12[%c0_120, %c0_121] : memref<4x32xf32, #tpu.memory_space<vmem>>, vector<4x32xf32>
    tpu.vector_store %arg12[%c0_120, %c0_121], %258 {strides = array<i32>} : memref<4x32xf32, #tpu.memory_space<vmem>>, vector<4x32xf32>,
    %261 = vector.extract_strided_slice %258 {offsets = [0, 0], sizes = [2, 32], strides = [1, 1]} : vector<4x32xf32> to vector<2x32xf32>
    %c2_i32_122 = arith.constant 2 : i32
    %262 = arith.muli %c4_i32, %c2_i32_122 : i32
    %263 = arith.index_cast %262 : i32 to index
    %c0_123 = arith.constant 0 : index
    %264 = vector.load %arg11[%263, %c0_123] : memref<16x64xf32, #tpu.memory_space<vmem>>, vector<2x32xf32>
    tpu.vector_store %arg11[%263, %c0_123], %261 {strides = array<i32>} : memref<16x64xf32, #tpu.memory_space<vmem>>, vector<2x32xf32>,
    %265 = vector.extract_strided_slice %258 {offsets = [2, 0], sizes = [2, 32], strides = [1, 1]} : vector<4x32xf32> to vector<2x32xf32>
    %c2_i32_124 = arith.constant 2 : i32
    %266 = arith.muli %218, %c2_i32_124 : i32
    %267 = arith.index_cast %266 : i32 to index
    %c32_125 = arith.constant 32 : index
    %268 = vector.load %arg11[%267, %c32_125] : memref<16x64xf32, #tpu.memory_space<vmem>>, vector<2x32xf32>
    tpu.vector_store %arg11[%267, %c32_125], %265 {strides = array<i32>} : memref<16x64xf32, #tpu.memory_space<vmem>>, vector<2x32xf32>,
    %c5_i32 = arith.constant 5 : i32
    %c7_i32_126 = arith.constant 7 : i32
    %269 = arith.subi %c7_i32_126, %c5_i32 : i32
    %c0_127 = arith.constant 0 : index
    %c0_128 = arith.constant 0 : index
    %270 = vector.load %arg12[%c0_127, %c0_128] : memref<4x32xf32, #tpu.memory_space<vmem>>, vector<4x32xf32>
    %c0_129 = arith.constant 0 : index
    %c0_130 = arith.constant 0 : index
    %271 = vector.load %arg2[%c0_129, %c0_130] : memref<32x256xf32, #tpu.memory_space<vmem>>, vector<32x256xf32>
    %cst_131 = arith.constant dense<0.000000e+00> : vector<4x256xf32>
    %272 = tpu.matmul %270, %271, %cst_131 {dimension_numbers = #tpu.dot_dimension_numbers<[1], [0], [0], [1], [0, 0, 1, 1], [], []>} : vector<4x32xf32>, vector<32x256xf32>, vector<4x256xf32> -> vector<4x256xf32>
    %c2_i32_132 = arith.constant 2 : i32
    %273 = arith.muli %c5_i32, %c2_i32_132 : i32
    %274 = arith.index_cast %273 : i32 to index
    %c0_133 = arith.constant 0 : index
    %275 = vector.load %arg10[%274, %c0_133] : memref<16x256xf32, #tpu.memory_space<vmem>>, vector<2x128xf32>
    %c2_i32_134 = arith.constant 2 : i32
    %276 = arith.muli %269, %c2_i32_134 : i32
    %277 = arith.index_cast %276 : i32 to index
    %c128_135 = arith.constant 128 : index
    %278 = vector.load %arg10[%277, %c128_135] : memref<16x256xf32, #tpu.memory_space<vmem>>, vector<2x128xf32>
    %279 = tpu.concatenate %275, %278 in 0 : vector<2x128xf32>, vector<2x128xf32> -> vector<4x128xf32>
    %280 = vector.extract_strided_slice %272 {offsets = [0, 0], sizes = [4, 128], strides = [1, 1]} : vector<4x256xf32> to vector<4x128xf32>
    %281 = vector.extract_strided_slice %272 {offsets = [0, 128], sizes = [4, 128], strides = [1, 1]} : vector<4x256xf32> to vector<4x128xf32>
    %282 = arith.select %2, %280, %281 : vector<4x128xi1>, vector<4x128xf32>
    %283 = arith.addf %279, %282 : vector<4x128xf32>
    %284 = vector.extract_strided_slice %283 {offsets = [0, 0], sizes = [4, 32], strides = [1, 1]} : vector<4x128xf32> to vector<4x32xf32>
    %285 = arith.negf %284 : vector<4x32xf32>
    %286 = math.exp %285 : vector<4x32xf32>
    %cst_136 = arith.constant 1.000000e+00 : f32
    %287 = vector.broadcast %cst_136 : f32 to vector<4x32xf32>
    %288 = arith.addf %287, %286 : vector<4x32xf32>
    %289 = arith.divf %287, %288 : vector<4x32xf32>
    %290 = vector.extract_strided_slice %283 {offsets = [0, 32], sizes = [4, 32], strides = [1, 1]} : vector<4x128xf32> to vector<4x32xf32>
    %291 = arith.negf %290 : vector<4x32xf32>
    %292 = math.exp %291 : vector<4x32xf32>
    %cst_137 = arith.constant 1.000000e+00 : f32
    %293 = vector.broadcast %cst_137 : f32 to vector<4x32xf32>
    %294 = arith.addf %293, %292 : vector<4x32xf32>
    %295 = arith.divf %293, %294 : vector<4x32xf32>
    %296 = vector.extract_strided_slice %283 {offsets = [0, 64], sizes = [4, 32], strides = [1, 1]} : vector<4x128xf32> to vector<4x32xf32>
    %297 = math.tanh %296 : vector<4x32xf32>
    %298 = vector.extract_strided_slice %283 {offsets = [0, 96], sizes = [4, 32], strides = [1, 1]} : vector<4x128xf32> to vector<4x32xf32>
    %299 = arith.negf %298 : vector<4x32xf32>
    %300 = math.exp %299 : vector<4x32xf32>
    %cst_138 = arith.constant 1.000000e+00 : f32
    %301 = vector.broadcast %cst_138 : f32 to vector<4x32xf32>
    %302 = arith.addf %301, %300 : vector<4x32xf32>
    %303 = arith.divf %301, %302 : vector<4x32xf32>
    %c0_139 = arith.constant 0 : index
    %c0_140 = arith.constant 0 : index
    %304 = vector.load %arg13[%c0_139, %c0_140] : memref<4x32xf32, #tpu.memory_space<vmem>>, vector<4x32xf32>
    %305 = arith.mulf %295, %304 : vector<4x32xf32>
    %306 = arith.mulf %289, %297 : vector<4x32xf32>
    %307 = arith.addf %305, %306 : vector<4x32xf32>
    %308 = math.tanh %307 : vector<4x32xf32>
    %309 = arith.mulf %303, %308 : vector<4x32xf32>
    %c0_141 = arith.constant 0 : index
    %c0_142 = arith.constant 0 : index
    %310 = vector.load %arg13[%c0_141, %c0_142] : memref<4x32xf32, #tpu.memory_space<vmem>>, vector<4x32xf32>
    tpu.vector_store %arg13[%c0_141, %c0_142], %307 {strides = array<i32>} : memref<4x32xf32, #tpu.memory_space<vmem>>, vector<4x32xf32>,
    %c0_143 = arith.constant 0 : index
    %c0_144 = arith.constant 0 : index
    %311 = vector.load %arg12[%c0_143, %c0_144] : memref<4x32xf32, #tpu.memory_space<vmem>>, vector<4x32xf32>
    tpu.vector_store %arg12[%c0_143, %c0_144], %309 {strides = array<i32>} : memref<4x32xf32, #tpu.memory_space<vmem>>, vector<4x32xf32>,
    %312 = vector.extract_strided_slice %309 {offsets = [0, 0], sizes = [2, 32], strides = [1, 1]} : vector<4x32xf32> to vector<2x32xf32>
    %c2_i32_145 = arith.constant 2 : i32
    %313 = arith.muli %c5_i32, %c2_i32_145 : i32
    %314 = arith.index_cast %313 : i32 to index
    %c0_146 = arith.constant 0 : index
    %315 = vector.load %arg11[%314, %c0_146] : memref<16x64xf32, #tpu.memory_space<vmem>>, vector<2x32xf32>
    tpu.vector_store %arg11[%314, %c0_146], %312 {strides = array<i32>} : memref<16x64xf32, #tpu.memory_space<vmem>>, vector<2x32xf32>,
    %316 = vector.extract_strided_slice %309 {offsets = [2, 0], sizes = [2, 32], strides = [1, 1]} : vector<4x32xf32> to vector<2x32xf32>
    %c2_i32_147 = arith.constant 2 : i32
    %317 = arith.muli %269, %c2_i32_147 : i32
    %318 = arith.index_cast %317 : i32 to index
    %c32_148 = arith.constant 32 : index
    %319 = vector.load %arg11[%318, %c32_148] : memref<16x64xf32, #tpu.memory_space<vmem>>, vector<2x32xf32>
    tpu.vector_store %arg11[%318, %c32_148], %316 {strides = array<i32>} : memref<16x64xf32, #tpu.memory_space<vmem>>, vector<2x32xf32>,
    %c6_i32 = arith.constant 6 : i32
    %c7_i32_149 = arith.constant 7 : i32
    %320 = arith.subi %c7_i32_149, %c6_i32 : i32
    %c0_150 = arith.constant 0 : index
    %c0_151 = arith.constant 0 : index
    %321 = vector.load %arg12[%c0_150, %c0_151] : memref<4x32xf32, #tpu.memory_space<vmem>>, vector<4x32xf32>
    %c0_152 = arith.constant 0 : index
    %c0_153 = arith.constant 0 : index
    %322 = vector.load %arg2[%c0_152, %c0_153] : memref<32x256xf32, #tpu.memory_space<vmem>>, vector<32x256xf32>
    %cst_154 = arith.constant dense<0.000000e+00> : vector<4x256xf32>
    %323 = tpu.matmul %321, %322, %cst_154 {dimension_numbers = #tpu.dot_dimension_numbers<[1], [0], [0], [1], [0, 0, 1, 1], [], []>} : vector<4x32xf32>, vector<32x256xf32>, vector<4x256xf32> -> vector<4x256xf32>
    %c2_i32_155 = arith.constant 2 : i32
    %324 = arith.muli %c6_i32, %c2_i32_155 : i32
    %325 = arith.index_cast %324 : i32 to index
    %c0_156 = arith.constant 0 : index
    %326 = vector.load %arg10[%325, %c0_156] : memref<16x256xf32, #tpu.memory_space<vmem>>, vector<2x128xf32>
    %c2_i32_157 = arith.constant 2 : i32
    %327 = arith.muli %320, %c2_i32_157 : i32
    %328 = arith.index_cast %327 : i32 to index
    %c128_158 = arith.constant 128 : index
    %329 = vector.load %arg10[%328, %c128_158] : memref<16x256xf32, #tpu.memory_space<vmem>>, vector<2x128xf32>
    %330 = tpu.concatenate %326, %329 in 0 : vector<2x128xf32>, vector<2x128xf32> -> vector<4x128xf32>
    %331 = vector.extract_strided_slice %323 {offsets = [0, 0], sizes = [4, 128], strides = [1, 1]} : vector<4x256xf32> to vector<4x128xf32>
    %332 = vector.extract_strided_slice %323 {offsets = [0, 128], sizes = [4, 128], strides = [1, 1]} : vector<4x256xf32> to vector<4x128xf32>
    %333 = arith.select %2, %331, %332 : vector<4x128xi1>, vector<4x128xf32>
    %334 = arith.addf %330, %333 : vector<4x128xf32>
    %335 = vector.extract_strided_slice %334 {offsets = [0, 0], sizes = [4, 32], strides = [1, 1]} : vector<4x128xf32> to vector<4x32xf32>
    %336 = arith.negf %335 : vector<4x32xf32>
    %337 = math.exp %336 : vector<4x32xf32>
    %cst_159 = arith.constant 1.000000e+00 : f32
    %338 = vector.broadcast %cst_159 : f32 to vector<4x32xf32>
    %339 = arith.addf %338, %337 : vector<4x32xf32>
    %340 = arith.divf %338, %339 : vector<4x32xf32>
    %341 = vector.extract_strided_slice %334 {offsets = [0, 32], sizes = [4, 32], strides = [1, 1]} : vector<4x128xf32> to vector<4x32xf32>
    %342 = arith.negf %341 : vector<4x32xf32>
    %343 = math.exp %342 : vector<4x32xf32>
    %cst_160 = arith.constant 1.000000e+00 : f32
    %344 = vector.broadcast %cst_160 : f32 to vector<4x32xf32>
    %345 = arith.addf %344, %343 : vector<4x32xf32>
    %346 = arith.divf %344, %345 : vector<4x32xf32>
    %347 = vector.extract_strided_slice %334 {offsets = [0, 64], sizes = [4, 32], strides = [1, 1]} : vector<4x128xf32> to vector<4x32xf32>
    %348 = math.tanh %347 : vector<4x32xf32>
    %349 = vector.extract_strided_slice %334 {offsets = [0, 96], sizes = [4, 32], strides = [1, 1]} : vector<4x128xf32> to vector<4x32xf32>
    %350 = arith.negf %349 : vector<4x32xf32>
    %351 = math.exp %350 : vector<4x32xf32>
    %cst_161 = arith.constant 1.000000e+00 : f32
    %352 = vector.broadcast %cst_161 : f32 to vector<4x32xf32>
    %353 = arith.addf %352, %351 : vector<4x32xf32>
    %354 = arith.divf %352, %353 : vector<4x32xf32>
    %c0_162 = arith.constant 0 : index
    %c0_163 = arith.constant 0 : index
    %355 = vector.load %arg13[%c0_162, %c0_163] : memref<4x32xf32, #tpu.memory_space<vmem>>, vector<4x32xf32>
    %356 = arith.mulf %346, %355 : vector<4x32xf32>
    %357 = arith.mulf %340, %348 : vector<4x32xf32>
    %358 = arith.addf %356, %357 : vector<4x32xf32>
    %359 = math.tanh %358 : vector<4x32xf32>
    %360 = arith.mulf %354, %359 : vector<4x32xf32>
    %c0_164 = arith.constant 0 : index
    %c0_165 = arith.constant 0 : index
    %361 = vector.load %arg13[%c0_164, %c0_165] : memref<4x32xf32, #tpu.memory_space<vmem>>, vector<4x32xf32>
    tpu.vector_store %arg13[%c0_164, %c0_165], %358 {strides = array<i32>} : memref<4x32xf32, #tpu.memory_space<vmem>>, vector<4x32xf32>,
    %c0_166 = arith.constant 0 : index
    %c0_167 = arith.constant 0 : index
    %362 = vector.load %arg12[%c0_166, %c0_167] : memref<4x32xf32, #tpu.memory_space<vmem>>, vector<4x32xf32>
    tpu.vector_store %arg12[%c0_166, %c0_167], %360 {strides = array<i32>} : memref<4x32xf32, #tpu.memory_space<vmem>>, vector<4x32xf32>,
    %363 = vector.extract_strided_slice %360 {offsets = [0, 0], sizes = [2, 32], strides = [1, 1]} : vector<4x32xf32> to vector<2x32xf32>
    %c2_i32_168 = arith.constant 2 : i32
    %364 = arith.muli %c6_i32, %c2_i32_168 : i32
    %365 = arith.index_cast %364 : i32 to index
    %c0_169 = arith.constant 0 : index
    %366 = vector.load %arg11[%365, %c0_169] : memref<16x64xf32, #tpu.memory_space<vmem>>, vector<2x32xf32>
    tpu.vector_store %arg11[%365, %c0_169], %363 {strides = array<i32>} : memref<16x64xf32, #tpu.memory_space<vmem>>, vector<2x32xf32>,
    %367 = vector.extract_strided_slice %360 {offsets = [2, 0], sizes = [2, 32], strides = [1, 1]} : vector<4x32xf32> to vector<2x32xf32>
    %c2_i32_170 = arith.constant 2 : i32
    %368 = arith.muli %320, %c2_i32_170 : i32
    %369 = arith.index_cast %368 : i32 to index
    %c32_171 = arith.constant 32 : index
    %370 = vector.load %arg11[%369, %c32_171] : memref<16x64xf32, #tpu.memory_space<vmem>>, vector<2x32xf32>
    tpu.vector_store %arg11[%369, %c32_171], %367 {strides = array<i32>} : memref<16x64xf32, #tpu.memory_space<vmem>>, vector<2x32xf32>,
    %c7_i32_172 = arith.constant 7 : i32
    %c7_i32_173 = arith.constant 7 : i32
    %371 = arith.subi %c7_i32_173, %c7_i32_172 : i32
    %c0_174 = arith.constant 0 : index
    %c0_175 = arith.constant 0 : index
    %372 = vector.load %arg12[%c0_174, %c0_175] : memref<4x32xf32, #tpu.memory_space<vmem>>, vector<4x32xf32>
    %c0_176 = arith.constant 0 : index
    %c0_177 = arith.constant 0 : index
    %373 = vector.load %arg2[%c0_176, %c0_177] : memref<32x256xf32, #tpu.memory_space<vmem>>, vector<32x256xf32>
    %cst_178 = arith.constant dense<0.000000e+00> : vector<4x256xf32>
    %374 = tpu.matmul %372, %373, %cst_178 {dimension_numbers = #tpu.dot_dimension_numbers<[1], [0], [0], [1], [0, 0, 1, 1], [], []>} : vector<4x32xf32>, vector<32x256xf32>, vector<4x256xf32> -> vector<4x256xf32>
    %c2_i32_179 = arith.constant 2 : i32
    %375 = arith.muli %c7_i32_172, %c2_i32_179 : i32
    %376 = arith.index_cast %375 : i32 to index
    %c0_180 = arith.constant 0 : index
    %377 = vector.load %arg10[%376, %c0_180] : memref<16x256xf32, #tpu.memory_space<vmem>>, vector<2x128xf32>
    %c2_i32_181 = arith.constant 2 : i32
    %378 = arith.muli %371, %c2_i32_181 : i32
    %379 = arith.index_cast %378 : i32 to index
    %c128_182 = arith.constant 128 : index
    %380 = vector.load %arg10[%379, %c128_182] : memref<16x256xf32, #tpu.memory_space<vmem>>, vector<2x128xf32>
    %381 = tpu.concatenate %377, %380 in 0 : vector<2x128xf32>, vector<2x128xf32> -> vector<4x128xf32>
    %382 = vector.extract_strided_slice %374 {offsets = [0, 0], sizes = [4, 128], strides = [1, 1]} : vector<4x256xf32> to vector<4x128xf32>
    %383 = vector.extract_strided_slice %374 {offsets = [0, 128], sizes = [4, 128], strides = [1, 1]} : vector<4x256xf32> to vector<4x128xf32>
    %384 = arith.select %2, %382, %383 : vector<4x128xi1>, vector<4x128xf32>
    %385 = arith.addf %381, %384 : vector<4x128xf32>
    %386 = vector.extract_strided_slice %385 {offsets = [0, 0], sizes = [4, 32], strides = [1, 1]} : vector<4x128xf32> to vector<4x32xf32>
    %387 = arith.negf %386 : vector<4x32xf32>
    %388 = math.exp %387 : vector<4x32xf32>
    %cst_183 = arith.constant 1.000000e+00 : f32
    %389 = vector.broadcast %cst_183 : f32 to vector<4x32xf32>
    %390 = arith.addf %389, %388 : vector<4x32xf32>
    %391 = arith.divf %389, %390 : vector<4x32xf32>
    %392 = vector.extract_strided_slice %385 {offsets = [0, 32], sizes = [4, 32], strides = [1, 1]} : vector<4x128xf32> to vector<4x32xf32>
    %393 = arith.negf %392 : vector<4x32xf32>
    %394 = math.exp %393 : vector<4x32xf32>
    %cst_184 = arith.constant 1.000000e+00 : f32
    %395 = vector.broadcast %cst_184 : f32 to vector<4x32xf32>
    %396 = arith.addf %395, %394 : vector<4x32xf32>
    %397 = arith.divf %395, %396 : vector<4x32xf32>
    %398 = vector.extract_strided_slice %385 {offsets = [0, 64], sizes = [4, 32], strides = [1, 1]} : vector<4x128xf32> to vector<4x32xf32>
    %399 = math.tanh %398 : vector<4x32xf32>
    %400 = vector.extract_strided_slice %385 {offsets = [0, 96], sizes = [4, 32], strides = [1, 1]} : vector<4x128xf32> to vector<4x32xf32>
    %401 = arith.negf %400 : vector<4x32xf32>
    %402 = math.exp %401 : vector<4x32xf32>
    %cst_185 = arith.constant 1.000000e+00 : f32
    %403 = vector.broadcast %cst_185 : f32 to vector<4x32xf32>
    %404 = arith.addf %403, %402 : vector<4x32xf32>
    %405 = arith.divf %403, %404 : vector<4x32xf32>
    %c0_186 = arith.constant 0 : index
    %c0_187 = arith.constant 0 : index
    %406 = vector.load %arg13[%c0_186, %c0_187] : memref<4x32xf32, #tpu.memory_space<vmem>>, vector<4x32xf32>
    %407 = arith.mulf %397, %406 : vector<4x32xf32>
    %408 = arith.mulf %391, %399 : vector<4x32xf32>
    %409 = arith.addf %407, %408 : vector<4x32xf32>
    %410 = math.tanh %409 : vector<4x32xf32>
    %411 = arith.mulf %405, %410 : vector<4x32xf32>
    %c0_188 = arith.constant 0 : index
    %c0_189 = arith.constant 0 : index
    %412 = vector.load %arg13[%c0_188, %c0_189] : memref<4x32xf32, #tpu.memory_space<vmem>>, vector<4x32xf32>
    tpu.vector_store %arg13[%c0_188, %c0_189], %409 {strides = array<i32>} : memref<4x32xf32, #tpu.memory_space<vmem>>, vector<4x32xf32>,
    %c0_190 = arith.constant 0 : index
    %c0_191 = arith.constant 0 : index
    %413 = vector.load %arg12[%c0_190, %c0_191] : memref<4x32xf32, #tpu.memory_space<vmem>>, vector<4x32xf32>
    tpu.vector_store %arg12[%c0_190, %c0_191], %411 {strides = array<i32>} : memref<4x32xf32, #tpu.memory_space<vmem>>, vector<4x32xf32>,
    %414 = vector.extract_strided_slice %411 {offsets = [0, 0], sizes = [2, 32], strides = [1, 1]} : vector<4x32xf32> to vector<2x32xf32>
    %c2_i32_192 = arith.constant 2 : i32
    %415 = arith.muli %c7_i32_172, %c2_i32_192 : i32
    %416 = arith.index_cast %415 : i32 to index
    %c0_193 = arith.constant 0 : index
    %417 = vector.load %arg11[%416, %c0_193] : memref<16x64xf32, #tpu.memory_space<vmem>>, vector<2x32xf32>
    tpu.vector_store %arg11[%416, %c0_193], %414 {strides = array<i32>} : memref<16x64xf32, #tpu.memory_space<vmem>>, vector<2x32xf32>,
    %418 = vector.extract_strided_slice %411 {offsets = [2, 0], sizes = [2, 32], strides = [1, 1]} : vector<4x32xf32> to vector<2x32xf32>
    %c2_i32_194 = arith.constant 2 : i32
    %419 = arith.muli %371, %c2_i32_194 : i32
    %420 = arith.index_cast %419 : i32 to index
    %c32_195 = arith.constant 32 : index
    %421 = vector.load %arg11[%420, %c32_195] : memref<16x64xf32, #tpu.memory_space<vmem>>, vector<2x32xf32>
    tpu.vector_store %arg11[%420, %c32_195], %418 {strides = array<i32>} : memref<16x64xf32, #tpu.memory_space<vmem>>, vector<2x32xf32>,
    %c8_i32 = arith.constant 8 : i32
    %c0_196 = arith.constant 0 : index
    %c0_197 = arith.constant 0 : index
    %422 = vector.load %arg11[%c0_196, %c0_197] : memref<16x64xf32, #tpu.memory_space<vmem>>, vector<16x64xf32>
    %c0_198 = arith.constant 0 : index
    %c0_199 = arith.constant 0 : index
    %423 = vector.load %arg4[%c0_198, %c0_199] : memref<64x256xf32, #tpu.memory_space<vmem>>, vector<64x256xf32>
    %cst_200 = arith.constant dense<0.000000e+00> : vector<16x256xf32>
    %424 = tpu.matmul %422, %423, %cst_200 {dimension_numbers = #tpu.dot_dimension_numbers<[1], [0], [0], [1], [0, 0, 1, 1], [], []>} : vector<16x64xf32>, vector<64x256xf32>, vector<16x256xf32> -> vector<16x256xf32>
    %c0_201 = arith.constant 0 : index
    %c0_202 = arith.constant 0 : index
    %425 = vector.load %arg6[%c0_201, %c0_202] : memref<1x256xf32, #tpu.memory_space<vmem>>, vector<1x256xf32>
    %426 = vector.broadcast %425 : vector<1x256xf32> to vector<16x256xf32>
    %427 = arith.addf %424, %426 : vector<16x256xf32>
    %c0_203 = arith.constant 0 : index
    %c0_204 = arith.constant 0 : index
    %428 = vector.load %arg10[%c0_203, %c0_204] : memref<16x256xf32, #tpu.memory_space<vmem>>, vector<16x256xf32>
    tpu.vector_store %arg10[%c0_203, %c0_204], %427 {strides = array<i32>} : memref<16x256xf32, #tpu.memory_space<vmem>>, vector<16x256xf32>,
    %cst_205 = arith.constant 0.000000e+00 : f32
    %429 = vector.broadcast %cst_205 : f32 to vector<4x32xf32>
    %c0_206 = arith.constant 0 : index
    %c0_207 = arith.constant 0 : index
    %430 = vector.load %arg12[%c0_206, %c0_207] : memref<4x32xf32, #tpu.memory_space<vmem>>, vector<4x32xf32>
    tpu.vector_store %arg12[%c0_206, %c0_207], %429 {strides = array<i32>} : memref<4x32xf32, #tpu.memory_space<vmem>>, vector<4x32xf32>,
    %cst_208 = arith.constant 0.000000e+00 : f32
    %431 = vector.broadcast %cst_208 : f32 to vector<4x32xf32>
    %c0_209 = arith.constant 0 : index
    %c0_210 = arith.constant 0 : index
    %432 = vector.load %arg13[%c0_209, %c0_210] : memref<4x32xf32, #tpu.memory_space<vmem>>, vector<4x32xf32>
    tpu.vector_store %arg13[%c0_209, %c0_210], %431 {strides = array<i32>} : memref<4x32xf32, #tpu.memory_space<vmem>>, vector<4x32xf32>,
    %c0_i32_211 = arith.constant 0 : i32
    %c7_i32_212 = arith.constant 7 : i32
    %433 = arith.subi %c7_i32_212, %c0_i32_211 : i32
    %c0_213 = arith.constant 0 : index
    %c0_214 = arith.constant 0 : index
    %434 = vector.load %arg12[%c0_213, %c0_214] : memref<4x32xf32, #tpu.memory_space<vmem>>, vector<4x32xf32>
    %c0_215 = arith.constant 0 : index
    %c0_216 = arith.constant 0 : index
    %435 = vector.load %arg5[%c0_215, %c0_216] : memref<32x256xf32, #tpu.memory_space<vmem>>, vector<32x256xf32>
    %cst_217 = arith.constant dense<0.000000e+00> : vector<4x256xf32>
    %436 = tpu.matmul %434, %435, %cst_217 {dimension_numbers = #tpu.dot_dimension_numbers<[1], [0], [0], [1], [0, 0, 1, 1], [], []>} : vector<4x32xf32>, vector<32x256xf32>, vector<4x256xf32> -> vector<4x256xf32>
    %c2_i32_218 = arith.constant 2 : i32
    %437 = arith.muli %c0_i32_211, %c2_i32_218 : i32
    %438 = arith.index_cast %437 : i32 to index
    %c0_219 = arith.constant 0 : index
    %439 = vector.load %arg10[%438, %c0_219] : memref<16x256xf32, #tpu.memory_space<vmem>>, vector<2x128xf32>
    %c2_i32_220 = arith.constant 2 : i32
    %440 = arith.muli %433, %c2_i32_220 : i32
    %441 = arith.index_cast %440 : i32 to index
    %c128_221 = arith.constant 128 : index
    %442 = vector.load %arg10[%441, %c128_221] : memref<16x256xf32, #tpu.memory_space<vmem>>, vector<2x128xf32>
    %443 = tpu.concatenate %439, %442 in 0 : vector<2x128xf32>, vector<2x128xf32> -> vector<4x128xf32>
    %444 = vector.extract_strided_slice %436 {offsets = [0, 0], sizes = [4, 128], strides = [1, 1]} : vector<4x256xf32> to vector<4x128xf32>
    %445 = vector.extract_strided_slice %436 {offsets = [0, 128], sizes = [4, 128], strides = [1, 1]} : vector<4x256xf32> to vector<4x128xf32>
    %446 = arith.select %2, %444, %445 : vector<4x128xi1>, vector<4x128xf32>
    %447 = arith.addf %443, %446 : vector<4x128xf32>
    %448 = vector.extract_strided_slice %447 {offsets = [0, 0], sizes = [4, 32], strides = [1, 1]} : vector<4x128xf32> to vector<4x32xf32>
    %449 = arith.negf %448 : vector<4x32xf32>
    %450 = math.exp %449 : vector<4x32xf32>
    %cst_222 = arith.constant 1.000000e+00 : f32
    %451 = vector.broadcast %cst_222 : f32 to vector<4x32xf32>
    %452 = arith.addf %451, %450 : vector<4x32xf32>
    %453 = arith.divf %451, %452 : vector<4x32xf32>
    %454 = vector.extract_strided_slice %447 {offsets = [0, 32], sizes = [4, 32], strides = [1, 1]} : vector<4x128xf32> to vector<4x32xf32>
    %455 = arith.negf %454 : vector<4x32xf32>
    %456 = math.exp %455 : vector<4x32xf32>
    %cst_223 = arith.constant 1.000000e+00 : f32
    %457 = vector.broadcast %cst_223 : f32 to vector<4x32xf32>
    %458 = arith.addf %457, %456 : vector<4x32xf32>
    %459 = arith.divf %457, %458 : vector<4x32xf32>
    %460 = vector.extract_strided_slice %447 {offsets = [0, 64], sizes = [4, 32], strides = [1, 1]} : vector<4x128xf32> to vector<4x32xf32>
    %461 = math.tanh %460 : vector<4x32xf32>
    %462 = vector.extract_strided_slice %447 {offsets = [0, 96], sizes = [4, 32], strides = [1, 1]} : vector<4x128xf32> to vector<4x32xf32>
    %463 = arith.negf %462 : vector<4x32xf32>
    %464 = math.exp %463 : vector<4x32xf32>
    %cst_224 = arith.constant 1.000000e+00 : f32
    %465 = vector.broadcast %cst_224 : f32 to vector<4x32xf32>
    %466 = arith.addf %465, %464 : vector<4x32xf32>
    %467 = arith.divf %465, %466 : vector<4x32xf32>
    %c0_225 = arith.constant 0 : index
    %c0_226 = arith.constant 0 : index
    %468 = vector.load %arg13[%c0_225, %c0_226] : memref<4x32xf32, #tpu.memory_space<vmem>>, vector<4x32xf32>
    %469 = arith.mulf %459, %468 : vector<4x32xf32>
    %470 = arith.mulf %453, %461 : vector<4x32xf32>
    %471 = arith.addf %469, %470 : vector<4x32xf32>
    %472 = math.tanh %471 : vector<4x32xf32>
    %473 = arith.mulf %467, %472 : vector<4x32xf32>
    %c0_227 = arith.constant 0 : index
    %c0_228 = arith.constant 0 : index
    %474 = vector.load %arg13[%c0_227, %c0_228] : memref<4x32xf32, #tpu.memory_space<vmem>>, vector<4x32xf32>
    tpu.vector_store %arg13[%c0_227, %c0_228], %471 {strides = array<i32>} : memref<4x32xf32, #tpu.memory_space<vmem>>, vector<4x32xf32>,
    %c0_229 = arith.constant 0 : index
    %c0_230 = arith.constant 0 : index
    %475 = vector.load %arg12[%c0_229, %c0_230] : memref<4x32xf32, #tpu.memory_space<vmem>>, vector<4x32xf32>
    tpu.vector_store %arg12[%c0_229, %c0_230], %473 {strides = array<i32>} : memref<4x32xf32, #tpu.memory_space<vmem>>, vector<4x32xf32>,
    %c1_i32_231 = arith.constant 1 : i32
    %c7_i32_232 = arith.constant 7 : i32
    %476 = arith.subi %c7_i32_232, %c1_i32_231 : i32
    %c0_233 = arith.constant 0 : index
    %c0_234 = arith.constant 0 : index
    %477 = vector.load %arg12[%c0_233, %c0_234] : memref<4x32xf32, #tpu.memory_space<vmem>>, vector<4x32xf32>
    %c0_235 = arith.constant 0 : index
    %c0_236 = arith.constant 0 : index
    %478 = vector.load %arg5[%c0_235, %c0_236] : memref<32x256xf32, #tpu.memory_space<vmem>>, vector<32x256xf32>
    %cst_237 = arith.constant dense<0.000000e+00> : vector<4x256xf32>
    %479 = tpu.matmul %477, %478, %cst_237 {dimension_numbers = #tpu.dot_dimension_numbers<[1], [0], [0], [1], [0, 0, 1, 1], [], []>} : vector<4x32xf32>, vector<32x256xf32>, vector<4x256xf32> -> vector<4x256xf32>
    %c2_i32_238 = arith.constant 2 : i32
    %480 = arith.muli %c1_i32_231, %c2_i32_238 : i32
    %481 = arith.index_cast %480 : i32 to index
    %c0_239 = arith.constant 0 : index
    %482 = vector.load %arg10[%481, %c0_239] : memref<16x256xf32, #tpu.memory_space<vmem>>, vector<2x128xf32>
    %c2_i32_240 = arith.constant 2 : i32
    %483 = arith.muli %476, %c2_i32_240 : i32
    %484 = arith.index_cast %483 : i32 to index
    %c128_241 = arith.constant 128 : index
    %485 = vector.load %arg10[%484, %c128_241] : memref<16x256xf32, #tpu.memory_space<vmem>>, vector<2x128xf32>
    %486 = tpu.concatenate %482, %485 in 0 : vector<2x128xf32>, vector<2x128xf32> -> vector<4x128xf32>
    %487 = vector.extract_strided_slice %479 {offsets = [0, 0], sizes = [4, 128], strides = [1, 1]} : vector<4x256xf32> to vector<4x128xf32>
    %488 = vector.extract_strided_slice %479 {offsets = [0, 128], sizes = [4, 128], strides = [1, 1]} : vector<4x256xf32> to vector<4x128xf32>
    %489 = arith.select %2, %487, %488 : vector<4x128xi1>, vector<4x128xf32>
    %490 = arith.addf %486, %489 : vector<4x128xf32>
    %491 = vector.extract_strided_slice %490 {offsets = [0, 0], sizes = [4, 32], strides = [1, 1]} : vector<4x128xf32> to vector<4x32xf32>
    %492 = arith.negf %491 : vector<4x32xf32>
    %493 = math.exp %492 : vector<4x32xf32>
    %cst_242 = arith.constant 1.000000e+00 : f32
    %494 = vector.broadcast %cst_242 : f32 to vector<4x32xf32>
    %495 = arith.addf %494, %493 : vector<4x32xf32>
    %496 = arith.divf %494, %495 : vector<4x32xf32>
    %497 = vector.extract_strided_slice %490 {offsets = [0, 32], sizes = [4, 32], strides = [1, 1]} : vector<4x128xf32> to vector<4x32xf32>
    %498 = arith.negf %497 : vector<4x32xf32>
    %499 = math.exp %498 : vector<4x32xf32>
    %cst_243 = arith.constant 1.000000e+00 : f32
    %500 = vector.broadcast %cst_243 : f32 to vector<4x32xf32>
    %501 = arith.addf %500, %499 : vector<4x32xf32>
    %502 = arith.divf %500, %501 : vector<4x32xf32>
    %503 = vector.extract_strided_slice %490 {offsets = [0, 64], sizes = [4, 32], strides = [1, 1]} : vector<4x128xf32> to vector<4x32xf32>
    %504 = math.tanh %503 : vector<4x32xf32>
    %505 = vector.extract_strided_slice %490 {offsets = [0, 96], sizes = [4, 32], strides = [1, 1]} : vector<4x128xf32> to vector<4x32xf32>
    %506 = arith.negf %505 : vector<4x32xf32>
    %507 = math.exp %506 : vector<4x32xf32>
    %cst_244 = arith.constant 1.000000e+00 : f32
    %508 = vector.broadcast %cst_244 : f32 to vector<4x32xf32>
    %509 = arith.addf %508, %507 : vector<4x32xf32>
    %510 = arith.divf %508, %509 : vector<4x32xf32>
    %c0_245 = arith.constant 0 : index
    %c0_246 = arith.constant 0 : index
    %511 = vector.load %arg13[%c0_245, %c0_246] : memref<4x32xf32, #tpu.memory_space<vmem>>, vector<4x32xf32>
    %512 = arith.mulf %502, %511 : vector<4x32xf32>
    %513 = arith.mulf %496, %504 : vector<4x32xf32>
    %514 = arith.addf %512, %513 : vector<4x32xf32>
    %515 = math.tanh %514 : vector<4x32xf32>
    %516 = arith.mulf %510, %515 : vector<4x32xf32>
    %c0_247 = arith.constant 0 : index
    %c0_248 = arith.constant 0 : index
    %517 = vector.load %arg13[%c0_247, %c0_248] : memref<4x32xf32, #tpu.memory_space<vmem>>, vector<4x32xf32>
    tpu.vector_store %arg13[%c0_247, %c0_248], %514 {strides = array<i32>} : memref<4x32xf32, #tpu.memory_space<vmem>>, vector<4x32xf32>,
    %c0_249 = arith.constant 0 : index
    %c0_250 = arith.constant 0 : index
    %518 = vector.load %arg12[%c0_249, %c0_250] : memref<4x32xf32, #tpu.memory_space<vmem>>, vector<4x32xf32>
    tpu.vector_store %arg12[%c0_249, %c0_250], %516 {strides = array<i32>} : memref<4x32xf32, #tpu.memory_space<vmem>>, vector<4x32xf32>,
    %c2_i32_251 = arith.constant 2 : i32
    %c7_i32_252 = arith.constant 7 : i32
    %519 = arith.subi %c7_i32_252, %c2_i32_251 : i32
    %c0_253 = arith.constant 0 : index
    %c0_254 = arith.constant 0 : index
    %520 = vector.load %arg12[%c0_253, %c0_254] : memref<4x32xf32, #tpu.memory_space<vmem>>, vector<4x32xf32>
    %c0_255 = arith.constant 0 : index
    %c0_256 = arith.constant 0 : index
    %521 = vector.load %arg5[%c0_255, %c0_256] : memref<32x256xf32, #tpu.memory_space<vmem>>, vector<32x256xf32>
    %cst_257 = arith.constant dense<0.000000e+00> : vector<4x256xf32>
    %522 = tpu.matmul %520, %521, %cst_257 {dimension_numbers = #tpu.dot_dimension_numbers<[1], [0], [0], [1], [0, 0, 1, 1], [], []>} : vector<4x32xf32>, vector<32x256xf32>, vector<4x256xf32> -> vector<4x256xf32>
    %c2_i32_258 = arith.constant 2 : i32
    %523 = arith.muli %c2_i32_251, %c2_i32_258 : i32
    %524 = arith.index_cast %523 : i32 to index
    %c0_259 = arith.constant 0 : index
    %525 = vector.load %arg10[%524, %c0_259] : memref<16x256xf32, #tpu.memory_space<vmem>>, vector<2x128xf32>
    %c2_i32_260 = arith.constant 2 : i32
    %526 = arith.muli %519, %c2_i32_260 : i32
    %527 = arith.index_cast %526 : i32 to index
    %c128_261 = arith.constant 128 : index
    %528 = vector.load %arg10[%527, %c128_261] : memref<16x256xf32, #tpu.memory_space<vmem>>, vector<2x128xf32>
    %529 = tpu.concatenate %525, %528 in 0 : vector<2x128xf32>, vector<2x128xf32> -> vector<4x128xf32>
    %530 = vector.extract_strided_slice %522 {offsets = [0, 0], sizes = [4, 128], strides = [1, 1]} : vector<4x256xf32> to vector<4x128xf32>
    %531 = vector.extract_strided_slice %522 {offsets = [0, 128], sizes = [4, 128], strides = [1, 1]} : vector<4x256xf32> to vector<4x128xf32>
    %532 = arith.select %2, %530, %531 : vector<4x128xi1>, vector<4x128xf32>
    %533 = arith.addf %529, %532 : vector<4x128xf32>
    %534 = vector.extract_strided_slice %533 {offsets = [0, 0], sizes = [4, 32], strides = [1, 1]} : vector<4x128xf32> to vector<4x32xf32>
    %535 = arith.negf %534 : vector<4x32xf32>
    %536 = math.exp %535 : vector<4x32xf32>
    %cst_262 = arith.constant 1.000000e+00 : f32
    %537 = vector.broadcast %cst_262 : f32 to vector<4x32xf32>
    %538 = arith.addf %537, %536 : vector<4x32xf32>
    %539 = arith.divf %537, %538 : vector<4x32xf32>
    %540 = vector.extract_strided_slice %533 {offsets = [0, 32], sizes = [4, 32], strides = [1, 1]} : vector<4x128xf32> to vector<4x32xf32>
    %541 = arith.negf %540 : vector<4x32xf32>
    %542 = math.exp %541 : vector<4x32xf32>
    %cst_263 = arith.constant 1.000000e+00 : f32
    %543 = vector.broadcast %cst_263 : f32 to vector<4x32xf32>
    %544 = arith.addf %543, %542 : vector<4x32xf32>
    %545 = arith.divf %543, %544 : vector<4x32xf32>
    %546 = vector.extract_strided_slice %533 {offsets = [0, 64], sizes = [4, 32], strides = [1, 1]} : vector<4x128xf32> to vector<4x32xf32>
    %547 = math.tanh %546 : vector<4x32xf32>
    %548 = vector.extract_strided_slice %533 {offsets = [0, 96], sizes = [4, 32], strides = [1, 1]} : vector<4x128xf32> to vector<4x32xf32>
    %549 = arith.negf %548 : vector<4x32xf32>
    %550 = math.exp %549 : vector<4x32xf32>
    %cst_264 = arith.constant 1.000000e+00 : f32
    %551 = vector.broadcast %cst_264 : f32 to vector<4x32xf32>
    %552 = arith.addf %551, %550 : vector<4x32xf32>
    %553 = arith.divf %551, %552 : vector<4x32xf32>
    %c0_265 = arith.constant 0 : index
    %c0_266 = arith.constant 0 : index
    %554 = vector.load %arg13[%c0_265, %c0_266] : memref<4x32xf32, #tpu.memory_space<vmem>>, vector<4x32xf32>
    %555 = arith.mulf %545, %554 : vector<4x32xf32>
    %556 = arith.mulf %539, %547 : vector<4x32xf32>
    %557 = arith.addf %555, %556 : vector<4x32xf32>
    %558 = math.tanh %557 : vector<4x32xf32>
    %559 = arith.mulf %553, %558 : vector<4x32xf32>
    %c0_267 = arith.constant 0 : index
    %c0_268 = arith.constant 0 : index
    %560 = vector.load %arg13[%c0_267, %c0_268] : memref<4x32xf32, #tpu.memory_space<vmem>>, vector<4x32xf32>
    tpu.vector_store %arg13[%c0_267, %c0_268], %557 {strides = array<i32>} : memref<4x32xf32, #tpu.memory_space<vmem>>, vector<4x32xf32>,
    %c0_269 = arith.constant 0 : index
    %c0_270 = arith.constant 0 : index
    %561 = vector.load %arg12[%c0_269, %c0_270] : memref<4x32xf32, #tpu.memory_space<vmem>>, vector<4x32xf32>
    tpu.vector_store %arg12[%c0_269, %c0_270], %559 {strides = array<i32>} : memref<4x32xf32, #tpu.memory_space<vmem>>, vector<4x32xf32>,
    %c3_i32_271 = arith.constant 3 : i32
    %c7_i32_272 = arith.constant 7 : i32
    %562 = arith.subi %c7_i32_272, %c3_i32_271 : i32
    %c0_273 = arith.constant 0 : index
    %c0_274 = arith.constant 0 : index
    %563 = vector.load %arg12[%c0_273, %c0_274] : memref<4x32xf32, #tpu.memory_space<vmem>>, vector<4x32xf32>
    %c0_275 = arith.constant 0 : index
    %c0_276 = arith.constant 0 : index
    %564 = vector.load %arg5[%c0_275, %c0_276] : memref<32x256xf32, #tpu.memory_space<vmem>>, vector<32x256xf32>
    %cst_277 = arith.constant dense<0.000000e+00> : vector<4x256xf32>
    %565 = tpu.matmul %563, %564, %cst_277 {dimension_numbers = #tpu.dot_dimension_numbers<[1], [0], [0], [1], [0, 0, 1, 1], [], []>} : vector<4x32xf32>, vector<32x256xf32>, vector<4x256xf32> -> vector<4x256xf32>
    %c2_i32_278 = arith.constant 2 : i32
    %566 = arith.muli %c3_i32_271, %c2_i32_278 : i32
    %567 = arith.index_cast %566 : i32 to index
    %c0_279 = arith.constant 0 : index
    %568 = vector.load %arg10[%567, %c0_279] : memref<16x256xf32, #tpu.memory_space<vmem>>, vector<2x128xf32>
    %c2_i32_280 = arith.constant 2 : i32
    %569 = arith.muli %562, %c2_i32_280 : i32
    %570 = arith.index_cast %569 : i32 to index
    %c128_281 = arith.constant 128 : index
    %571 = vector.load %arg10[%570, %c128_281] : memref<16x256xf32, #tpu.memory_space<vmem>>, vector<2x128xf32>
    %572 = tpu.concatenate %568, %571 in 0 : vector<2x128xf32>, vector<2x128xf32> -> vector<4x128xf32>
    %573 = vector.extract_strided_slice %565 {offsets = [0, 0], sizes = [4, 128], strides = [1, 1]} : vector<4x256xf32> to vector<4x128xf32>
    %574 = vector.extract_strided_slice %565 {offsets = [0, 128], sizes = [4, 128], strides = [1, 1]} : vector<4x256xf32> to vector<4x128xf32>
    %575 = arith.select %2, %573, %574 : vector<4x128xi1>, vector<4x128xf32>
    %576 = arith.addf %572, %575 : vector<4x128xf32>
    %577 = vector.extract_strided_slice %576 {offsets = [0, 0], sizes = [4, 32], strides = [1, 1]} : vector<4x128xf32> to vector<4x32xf32>
    %578 = arith.negf %577 : vector<4x32xf32>
    %579 = math.exp %578 : vector<4x32xf32>
    %cst_282 = arith.constant 1.000000e+00 : f32
    %580 = vector.broadcast %cst_282 : f32 to vector<4x32xf32>
    %581 = arith.addf %580, %579 : vector<4x32xf32>
    %582 = arith.divf %580, %581 : vector<4x32xf32>
    %583 = vector.extract_strided_slice %576 {offsets = [0, 32], sizes = [4, 32], strides = [1, 1]} : vector<4x128xf32> to vector<4x32xf32>
    %584 = arith.negf %583 : vector<4x32xf32>
    %585 = math.exp %584 : vector<4x32xf32>
    %cst_283 = arith.constant 1.000000e+00 : f32
    %586 = vector.broadcast %cst_283 : f32 to vector<4x32xf32>
    %587 = arith.addf %586, %585 : vector<4x32xf32>
    %588 = arith.divf %586, %587 : vector<4x32xf32>
    %589 = vector.extract_strided_slice %576 {offsets = [0, 64], sizes = [4, 32], strides = [1, 1]} : vector<4x128xf32> to vector<4x32xf32>
    %590 = math.tanh %589 : vector<4x32xf32>
    %591 = vector.extract_strided_slice %576 {offsets = [0, 96], sizes = [4, 32], strides = [1, 1]} : vector<4x128xf32> to vector<4x32xf32>
    %592 = arith.negf %591 : vector<4x32xf32>
    %593 = math.exp %592 : vector<4x32xf32>
    %cst_284 = arith.constant 1.000000e+00 : f32
    %594 = vector.broadcast %cst_284 : f32 to vector<4x32xf32>
    %595 = arith.addf %594, %593 : vector<4x32xf32>
    %596 = arith.divf %594, %595 : vector<4x32xf32>
    %c0_285 = arith.constant 0 : index
    %c0_286 = arith.constant 0 : index
    %597 = vector.load %arg13[%c0_285, %c0_286] : memref<4x32xf32, #tpu.memory_space<vmem>>, vector<4x32xf32>
    %598 = arith.mulf %588, %597 : vector<4x32xf32>
    %599 = arith.mulf %582, %590 : vector<4x32xf32>
    %600 = arith.addf %598, %599 : vector<4x32xf32>
    %601 = math.tanh %600 : vector<4x32xf32>
    %602 = arith.mulf %596, %601 : vector<4x32xf32>
    %c0_287 = arith.constant 0 : index
    %c0_288 = arith.constant 0 : index
    %603 = vector.load %arg13[%c0_287, %c0_288] : memref<4x32xf32, #tpu.memory_space<vmem>>, vector<4x32xf32>
    tpu.vector_store %arg13[%c0_287, %c0_288], %600 {strides = array<i32>} : memref<4x32xf32, #tpu.memory_space<vmem>>, vector<4x32xf32>,
    %c0_289 = arith.constant 0 : index
    %c0_290 = arith.constant 0 : index
    %604 = vector.load %arg12[%c0_289, %c0_290] : memref<4x32xf32, #tpu.memory_space<vmem>>, vector<4x32xf32>
    tpu.vector_store %arg12[%c0_289, %c0_290], %602 {strides = array<i32>} : memref<4x32xf32, #tpu.memory_space<vmem>>, vector<4x32xf32>,
    %c4_i32_291 = arith.constant 4 : i32
    %c7_i32_292 = arith.constant 7 : i32
    %605 = arith.subi %c7_i32_292, %c4_i32_291 : i32
    %c0_293 = arith.constant 0 : index
    %c0_294 = arith.constant 0 : index
    %606 = vector.load %arg12[%c0_293, %c0_294] : memref<4x32xf32, #tpu.memory_space<vmem>>, vector<4x32xf32>
    %c0_295 = arith.constant 0 : index
    %c0_296 = arith.constant 0 : index
    %607 = vector.load %arg5[%c0_295, %c0_296] : memref<32x256xf32, #tpu.memory_space<vmem>>, vector<32x256xf32>
    %cst_297 = arith.constant dense<0.000000e+00> : vector<4x256xf32>
    %608 = tpu.matmul %606, %607, %cst_297 {dimension_numbers = #tpu.dot_dimension_numbers<[1], [0], [0], [1], [0, 0, 1, 1], [], []>} : vector<4x32xf32>, vector<32x256xf32>, vector<4x256xf32> -> vector<4x256xf32>
    %c2_i32_298 = arith.constant 2 : i32
    %609 = arith.muli %c4_i32_291, %c2_i32_298 : i32
    %610 = arith.index_cast %609 : i32 to index
    %c0_299 = arith.constant 0 : index
    %611 = vector.load %arg10[%610, %c0_299] : memref<16x256xf32, #tpu.memory_space<vmem>>, vector<2x128xf32>
    %c2_i32_300 = arith.constant 2 : i32
    %612 = arith.muli %605, %c2_i32_300 : i32
    %613 = arith.index_cast %612 : i32 to index
    %c128_301 = arith.constant 128 : index
    %614 = vector.load %arg10[%613, %c128_301] : memref<16x256xf32, #tpu.memory_space<vmem>>, vector<2x128xf32>
    %615 = tpu.concatenate %611, %614 in 0 : vector<2x128xf32>, vector<2x128xf32> -> vector<4x128xf32>
    %616 = vector.extract_strided_slice %608 {offsets = [0, 0], sizes = [4, 128], strides = [1, 1]} : vector<4x256xf32> to vector<4x128xf32>
    %617 = vector.extract_strided_slice %608 {offsets = [0, 128], sizes = [4, 128], strides = [1, 1]} : vector<4x256xf32> to vector<4x128xf32>
    %618 = arith.select %2, %616, %617 : vector<4x128xi1>, vector<4x128xf32>
    %619 = arith.addf %615, %618 : vector<4x128xf32>
    %620 = vector.extract_strided_slice %619 {offsets = [0, 0], sizes = [4, 32], strides = [1, 1]} : vector<4x128xf32> to vector<4x32xf32>
    %621 = arith.negf %620 : vector<4x32xf32>
    %622 = math.exp %621 : vector<4x32xf32>
    %cst_302 = arith.constant 1.000000e+00 : f32
    %623 = vector.broadcast %cst_302 : f32 to vector<4x32xf32>
    %624 = arith.addf %623, %622 : vector<4x32xf32>
    %625 = arith.divf %623, %624 : vector<4x32xf32>
    %626 = vector.extract_strided_slice %619 {offsets = [0, 32], sizes = [4, 32], strides = [1, 1]} : vector<4x128xf32> to vector<4x32xf32>
    %627 = arith.negf %626 : vector<4x32xf32>
    %628 = math.exp %627 : vector<4x32xf32>
    %cst_303 = arith.constant 1.000000e+00 : f32
    %629 = vector.broadcast %cst_303 : f32 to vector<4x32xf32>
    %630 = arith.addf %629, %628 : vector<4x32xf32>
    %631 = arith.divf %629, %630 : vector<4x32xf32>
    %632 = vector.extract_strided_slice %619 {offsets = [0, 64], sizes = [4, 32], strides = [1, 1]} : vector<4x128xf32> to vector<4x32xf32>
    %633 = math.tanh %632 : vector<4x32xf32>
    %634 = vector.extract_strided_slice %619 {offsets = [0, 96], sizes = [4, 32], strides = [1, 1]} : vector<4x128xf32> to vector<4x32xf32>
    %635 = arith.negf %634 : vector<4x32xf32>
    %636 = math.exp %635 : vector<4x32xf32>
    %cst_304 = arith.constant 1.000000e+00 : f32
    %637 = vector.broadcast %cst_304 : f32 to vector<4x32xf32>
    %638 = arith.addf %637, %636 : vector<4x32xf32>
    %639 = arith.divf %637, %638 : vector<4x32xf32>
    %c0_305 = arith.constant 0 : index
    %c0_306 = arith.constant 0 : index
    %640 = vector.load %arg13[%c0_305, %c0_306] : memref<4x32xf32, #tpu.memory_space<vmem>>, vector<4x32xf32>
    %641 = arith.mulf %631, %640 : vector<4x32xf32>
    %642 = arith.mulf %625, %633 : vector<4x32xf32>
    %643 = arith.addf %641, %642 : vector<4x32xf32>
    %644 = math.tanh %643 : vector<4x32xf32>
    %645 = arith.mulf %639, %644 : vector<4x32xf32>
    %c0_307 = arith.constant 0 : index
    %c0_308 = arith.constant 0 : index
    %646 = vector.load %arg13[%c0_307, %c0_308] : memref<4x32xf32, #tpu.memory_space<vmem>>, vector<4x32xf32>
    tpu.vector_store %arg13[%c0_307, %c0_308], %643 {strides = array<i32>} : memref<4x32xf32, #tpu.memory_space<vmem>>, vector<4x32xf32>,
    %c0_309 = arith.constant 0 : index
    %c0_310 = arith.constant 0 : index
    %647 = vector.load %arg12[%c0_309, %c0_310] : memref<4x32xf32, #tpu.memory_space<vmem>>, vector<4x32xf32>
    tpu.vector_store %arg12[%c0_309, %c0_310], %645 {strides = array<i32>} : memref<4x32xf32, #tpu.memory_space<vmem>>, vector<4x32xf32>,
    %c5_i32_311 = arith.constant 5 : i32
    %c7_i32_312 = arith.constant 7 : i32
    %648 = arith.subi %c7_i32_312, %c5_i32_311 : i32
    %c0_313 = arith.constant 0 : index
    %c0_314 = arith.constant 0 : index
    %649 = vector.load %arg12[%c0_313, %c0_314] : memref<4x32xf32, #tpu.memory_space<vmem>>, vector<4x32xf32>
    %c0_315 = arith.constant 0 : index
    %c0_316 = arith.constant 0 : index
    %650 = vector.load %arg5[%c0_315, %c0_316] : memref<32x256xf32, #tpu.memory_space<vmem>>, vector<32x256xf32>
    %cst_317 = arith.constant dense<0.000000e+00> : vector<4x256xf32>
    %651 = tpu.matmul %649, %650, %cst_317 {dimension_numbers = #tpu.dot_dimension_numbers<[1], [0], [0], [1], [0, 0, 1, 1], [], []>} : vector<4x32xf32>, vector<32x256xf32>, vector<4x256xf32> -> vector<4x256xf32>
    %c2_i32_318 = arith.constant 2 : i32
    %652 = arith.muli %c5_i32_311, %c2_i32_318 : i32
    %653 = arith.index_cast %652 : i32 to index
    %c0_319 = arith.constant 0 : index
    %654 = vector.load %arg10[%653, %c0_319] : memref<16x256xf32, #tpu.memory_space<vmem>>, vector<2x128xf32>
    %c2_i32_320 = arith.constant 2 : i32
    %655 = arith.muli %648, %c2_i32_320 : i32
    %656 = arith.index_cast %655 : i32 to index
    %c128_321 = arith.constant 128 : index
    %657 = vector.load %arg10[%656, %c128_321] : memref<16x256xf32, #tpu.memory_space<vmem>>, vector<2x128xf32>
    %658 = tpu.concatenate %654, %657 in 0 : vector<2x128xf32>, vector<2x128xf32> -> vector<4x128xf32>
    %659 = vector.extract_strided_slice %651 {offsets = [0, 0], sizes = [4, 128], strides = [1, 1]} : vector<4x256xf32> to vector<4x128xf32>
    %660 = vector.extract_strided_slice %651 {offsets = [0, 128], sizes = [4, 128], strides = [1, 1]} : vector<4x256xf32> to vector<4x128xf32>
    %661 = arith.select %2, %659, %660 : vector<4x128xi1>, vector<4x128xf32>
    %662 = arith.addf %658, %661 : vector<4x128xf32>
    %663 = vector.extract_strided_slice %662 {offsets = [0, 0], sizes = [4, 32], strides = [1, 1]} : vector<4x128xf32> to vector<4x32xf32>
    %664 = arith.negf %663 : vector<4x32xf32>
    %665 = math.exp %664 : vector<4x32xf32>
    %cst_322 = arith.constant 1.000000e+00 : f32
    %666 = vector.broadcast %cst_322 : f32 to vector<4x32xf32>
    %667 = arith.addf %666, %665 : vector<4x32xf32>
    %668 = arith.divf %666, %667 : vector<4x32xf32>
    %669 = vector.extract_strided_slice %662 {offsets = [0, 32], sizes = [4, 32], strides = [1, 1]} : vector<4x128xf32> to vector<4x32xf32>
    %670 = arith.negf %669 : vector<4x32xf32>
    %671 = math.exp %670 : vector<4x32xf32>
    %cst_323 = arith.constant 1.000000e+00 : f32
    %672 = vector.broadcast %cst_323 : f32 to vector<4x32xf32>
    %673 = arith.addf %672, %671 : vector<4x32xf32>
    %674 = arith.divf %672, %673 : vector<4x32xf32>
    %675 = vector.extract_strided_slice %662 {offsets = [0, 64], sizes = [4, 32], strides = [1, 1]} : vector<4x128xf32> to vector<4x32xf32>
    %676 = math.tanh %675 : vector<4x32xf32>
    %677 = vector.extract_strided_slice %662 {offsets = [0, 96], sizes = [4, 32], strides = [1, 1]} : vector<4x128xf32> to vector<4x32xf32>
    %678 = arith.negf %677 : vector<4x32xf32>
    %679 = math.exp %678 : vector<4x32xf32>
    %cst_324 = arith.constant 1.000000e+00 : f32
    %680 = vector.broadcast %cst_324 : f32 to vector<4x32xf32>
    %681 = arith.addf %680, %679 : vector<4x32xf32>
    %682 = arith.divf %680, %681 : vector<4x32xf32>
    %c0_325 = arith.constant 0 : index
    %c0_326 = arith.constant 0 : index
    %683 = vector.load %arg13[%c0_325, %c0_326] : memref<4x32xf32, #tpu.memory_space<vmem>>, vector<4x32xf32>
    %684 = arith.mulf %674, %683 : vector<4x32xf32>
    %685 = arith.mulf %668, %676 : vector<4x32xf32>
    %686 = arith.addf %684, %685 : vector<4x32xf32>
    %687 = math.tanh %686 : vector<4x32xf32>
    %688 = arith.mulf %682, %687 : vector<4x32xf32>
    %c0_327 = arith.constant 0 : index
    %c0_328 = arith.constant 0 : index
    %689 = vector.load %arg13[%c0_327, %c0_328] : memref<4x32xf32, #tpu.memory_space<vmem>>, vector<4x32xf32>
    tpu.vector_store %arg13[%c0_327, %c0_328], %686 {strides = array<i32>} : memref<4x32xf32, #tpu.memory_space<vmem>>, vector<4x32xf32>,
    %c0_329 = arith.constant 0 : index
    %c0_330 = arith.constant 0 : index
    %690 = vector.load %arg12[%c0_329, %c0_330] : memref<4x32xf32, #tpu.memory_space<vmem>>, vector<4x32xf32>
    tpu.vector_store %arg12[%c0_329, %c0_330], %688 {strides = array<i32>} : memref<4x32xf32, #tpu.memory_space<vmem>>, vector<4x32xf32>,
    %c6_i32_331 = arith.constant 6 : i32
    %c7_i32_332 = arith.constant 7 : i32
    %691 = arith.subi %c7_i32_332, %c6_i32_331 : i32
    %c0_333 = arith.constant 0 : index
    %c0_334 = arith.constant 0 : index
    %692 = vector.load %arg12[%c0_333, %c0_334] : memref<4x32xf32, #tpu.memory_space<vmem>>, vector<4x32xf32>
    %c0_335 = arith.constant 0 : index
    %c0_336 = arith.constant 0 : index
    %693 = vector.load %arg5[%c0_335, %c0_336] : memref<32x256xf32, #tpu.memory_space<vmem>>, vector<32x256xf32>
    %cst_337 = arith.constant dense<0.000000e+00> : vector<4x256xf32>
    %694 = tpu.matmul %692, %693, %cst_337 {dimension_numbers = #tpu.dot_dimension_numbers<[1], [0], [0], [1], [0, 0, 1, 1], [], []>} : vector<4x32xf32>, vector<32x256xf32>, vector<4x256xf32> -> vector<4x256xf32>
    %c2_i32_338 = arith.constant 2 : i32
    %695 = arith.muli %c6_i32_331, %c2_i32_338 : i32
    %696 = arith.index_cast %695 : i32 to index
    %c0_339 = arith.constant 0 : index
    %697 = vector.load %arg10[%696, %c0_339] : memref<16x256xf32, #tpu.memory_space<vmem>>, vector<2x128xf32>
    %c2_i32_340 = arith.constant 2 : i32
    %698 = arith.muli %691, %c2_i32_340 : i32
    %699 = arith.index_cast %698 : i32 to index
    %c128_341 = arith.constant 128 : index
    %700 = vector.load %arg10[%699, %c128_341] : memref<16x256xf32, #tpu.memory_space<vmem>>, vector<2x128xf32>
    %701 = tpu.concatenate %697, %700 in 0 : vector<2x128xf32>, vector<2x128xf32> -> vector<4x128xf32>
    %702 = vector.extract_strided_slice %694 {offsets = [0, 0], sizes = [4, 128], strides = [1, 1]} : vector<4x256xf32> to vector<4x128xf32>
    %703 = vector.extract_strided_slice %694 {offsets = [0, 128], sizes = [4, 128], strides = [1, 1]} : vector<4x256xf32> to vector<4x128xf32>
    %704 = arith.select %2, %702, %703 : vector<4x128xi1>, vector<4x128xf32>
    %705 = arith.addf %701, %704 : vector<4x128xf32>
    %706 = vector.extract_strided_slice %705 {offsets = [0, 0], sizes = [4, 32], strides = [1, 1]} : vector<4x128xf32> to vector<4x32xf32>
    %707 = arith.negf %706 : vector<4x32xf32>
    %708 = math.exp %707 : vector<4x32xf32>
    %cst_342 = arith.constant 1.000000e+00 : f32
    %709 = vector.broadcast %cst_342 : f32 to vector<4x32xf32>
    %710 = arith.addf %709, %708 : vector<4x32xf32>
    %711 = arith.divf %709, %710 : vector<4x32xf32>
    %712 = vector.extract_strided_slice %705 {offsets = [0, 32], sizes = [4, 32], strides = [1, 1]} : vector<4x128xf32> to vector<4x32xf32>
    %713 = arith.negf %712 : vector<4x32xf32>
    %714 = math.exp %713 : vector<4x32xf32>
    %cst_343 = arith.constant 1.000000e+00 : f32
    %715 = vector.broadcast %cst_343 : f32 to vector<4x32xf32>
    %716 = arith.addf %715, %714 : vector<4x32xf32>
    %717 = arith.divf %715, %716 : vector<4x32xf32>
    %718 = vector.extract_strided_slice %705 {offsets = [0, 64], sizes = [4, 32], strides = [1, 1]} : vector<4x128xf32> to vector<4x32xf32>
    %719 = math.tanh %718 : vector<4x32xf32>
    %720 = vector.extract_strided_slice %705 {offsets = [0, 96], sizes = [4, 32], strides = [1, 1]} : vector<4x128xf32> to vector<4x32xf32>
    %721 = arith.negf %720 : vector<4x32xf32>
    %722 = math.exp %721 : vector<4x32xf32>
    %cst_344 = arith.constant 1.000000e+00 : f32
    %723 = vector.broadcast %cst_344 : f32 to vector<4x32xf32>
    %724 = arith.addf %723, %722 : vector<4x32xf32>
    %725 = arith.divf %723, %724 : vector<4x32xf32>
    %c0_345 = arith.constant 0 : index
    %c0_346 = arith.constant 0 : index
    %726 = vector.load %arg13[%c0_345, %c0_346] : memref<4x32xf32, #tpu.memory_space<vmem>>, vector<4x32xf32>
    %727 = arith.mulf %717, %726 : vector<4x32xf32>
    %728 = arith.mulf %711, %719 : vector<4x32xf32>
    %729 = arith.addf %727, %728 : vector<4x32xf32>
    %730 = math.tanh %729 : vector<4x32xf32>
    %731 = arith.mulf %725, %730 : vector<4x32xf32>
    %c0_347 = arith.constant 0 : index
    %c0_348 = arith.constant 0 : index
    %732 = vector.load %arg13[%c0_347, %c0_348] : memref<4x32xf32, #tpu.memory_space<vmem>>, vector<4x32xf32>
    tpu.vector_store %arg13[%c0_347, %c0_348], %729 {strides = array<i32>} : memref<4x32xf32, #tpu.memory_space<vmem>>, vector<4x32xf32>,
    %c0_349 = arith.constant 0 : index
    %c0_350 = arith.constant 0 : index
    %733 = vector.load %arg12[%c0_349, %c0_350] : memref<4x32xf32, #tpu.memory_space<vmem>>, vector<4x32xf32>
    tpu.vector_store %arg12[%c0_349, %c0_350], %731 {strides = array<i32>} : memref<4x32xf32, #tpu.memory_space<vmem>>, vector<4x32xf32>,
    %c7_i32_351 = arith.constant 7 : i32
    %c7_i32_352 = arith.constant 7 : i32
    %734 = arith.subi %c7_i32_352, %c7_i32_351 : i32
    %c0_353 = arith.constant 0 : index
    %c0_354 = arith.constant 0 : index
    %735 = vector.load %arg12[%c0_353, %c0_354] : memref<4x32xf32, #tpu.memory_space<vmem>>, vector<4x32xf32>
    %c0_355 = arith.constant 0 : index
    %c0_356 = arith.constant 0 : index
    %736 = vector.load %arg5[%c0_355, %c0_356] : memref<32x256xf32, #tpu.memory_space<vmem>>, vector<32x256xf32>
    %cst_357 = arith.constant dense<0.000000e+00> : vector<4x256xf32>
    %737 = tpu.matmul %735, %736, %cst_357 {dimension_numbers = #tpu.dot_dimension_numbers<[1], [0], [0], [1], [0, 0, 1, 1], [], []>} : vector<4x32xf32>, vector<32x256xf32>, vector<4x256xf32> -> vector<4x256xf32>
    %c2_i32_358 = arith.constant 2 : i32
    %738 = arith.muli %c7_i32_351, %c2_i32_358 : i32
    %739 = arith.index_cast %738 : i32 to index
    %c0_359 = arith.constant 0 : index
    %740 = vector.load %arg10[%739, %c0_359] : memref<16x256xf32, #tpu.memory_space<vmem>>, vector<2x128xf32>
    %c2_i32_360 = arith.constant 2 : i32
    %741 = arith.muli %734, %c2_i32_360 : i32
    %742 = arith.index_cast %741 : i32 to index
    %c128_361 = arith.constant 128 : index
    %743 = vector.load %arg10[%742, %c128_361] : memref<16x256xf32, #tpu.memory_space<vmem>>, vector<2x128xf32>
    %744 = tpu.concatenate %740, %743 in 0 : vector<2x128xf32>, vector<2x128xf32> -> vector<4x128xf32>
    %745 = vector.extract_strided_slice %737 {offsets = [0, 0], sizes = [4, 128], strides = [1, 1]} : vector<4x256xf32> to vector<4x128xf32>
    %746 = vector.extract_strided_slice %737 {offsets = [0, 128], sizes = [4, 128], strides = [1, 1]} : vector<4x256xf32> to vector<4x128xf32>
    %747 = arith.select %2, %745, %746 : vector<4x128xi1>, vector<4x128xf32>
    %748 = arith.addf %744, %747 : vector<4x128xf32>
    %749 = vector.extract_strided_slice %748 {offsets = [0, 0], sizes = [4, 32], strides = [1, 1]} : vector<4x128xf32> to vector<4x32xf32>
    %750 = arith.negf %749 : vector<4x32xf32>
    %751 = math.exp %750 : vector<4x32xf32>
    %cst_362 = arith.constant 1.000000e+00 : f32
    %752 = vector.broadcast %cst_362 : f32 to vector<4x32xf32>
    %753 = arith.addf %752, %751 : vector<4x32xf32>
    %754 = arith.divf %752, %753 : vector<4x32xf32>
    %755 = vector.extract_strided_slice %748 {offsets = [0, 32], sizes = [4, 32], strides = [1, 1]} : vector<4x128xf32> to vector<4x32xf32>
    %756 = arith.negf %755 : vector<4x32xf32>
    %757 = math.exp %756 : vector<4x32xf32>
    %cst_363 = arith.constant 1.000000e+00 : f32
    %758 = vector.broadcast %cst_363 : f32 to vector<4x32xf32>
    %759 = arith.addf %758, %757 : vector<4x32xf32>
    %760 = arith.divf %758, %759 : vector<4x32xf32>
    %761 = vector.extract_strided_slice %748 {offsets = [0, 64], sizes = [4, 32], strides = [1, 1]} : vector<4x128xf32> to vector<4x32xf32>
    %762 = math.tanh %761 : vector<4x32xf32>
    %763 = vector.extract_strided_slice %748 {offsets = [0, 96], sizes = [4, 32], strides = [1, 1]} : vector<4x128xf32> to vector<4x32xf32>
    %764 = arith.negf %763 : vector<4x32xf32>
    %765 = math.exp %764 : vector<4x32xf32>
    %cst_364 = arith.constant 1.000000e+00 : f32
    %766 = vector.broadcast %cst_364 : f32 to vector<4x32xf32>
    %767 = arith.addf %766, %765 : vector<4x32xf32>
    %768 = arith.divf %766, %767 : vector<4x32xf32>
    %c0_365 = arith.constant 0 : index
    %c0_366 = arith.constant 0 : index
    %769 = vector.load %arg13[%c0_365, %c0_366] : memref<4x32xf32, #tpu.memory_space<vmem>>, vector<4x32xf32>
    %770 = arith.mulf %760, %769 : vector<4x32xf32>
    %771 = arith.mulf %754, %762 : vector<4x32xf32>
    %772 = arith.addf %770, %771 : vector<4x32xf32>
    %773 = math.tanh %772 : vector<4x32xf32>
    %774 = arith.mulf %768, %773 : vector<4x32xf32>
    %c0_367 = arith.constant 0 : index
    %c0_368 = arith.constant 0 : index
    %775 = vector.load %arg13[%c0_367, %c0_368] : memref<4x32xf32, #tpu.memory_space<vmem>>, vector<4x32xf32>
    tpu.vector_store %arg13[%c0_367, %c0_368], %772 {strides = array<i32>} : memref<4x32xf32, #tpu.memory_space<vmem>>, vector<4x32xf32>,
    %c0_369 = arith.constant 0 : index
    %c0_370 = arith.constant 0 : index
    %776 = vector.load %arg12[%c0_369, %c0_370] : memref<4x32xf32, #tpu.memory_space<vmem>>, vector<4x32xf32>
    tpu.vector_store %arg12[%c0_369, %c0_370], %774 {strides = array<i32>} : memref<4x32xf32, #tpu.memory_space<vmem>>, vector<4x32xf32>,
    %c8_i32_371 = arith.constant 8 : i32
    %c0_372 = arith.constant 0 : index
    %c0_373 = arith.constant 0 : index
    %777 = vector.load %arg12[%c0_372, %c0_373] : memref<4x32xf32, #tpu.memory_space<vmem>>, vector<4x32xf32>
    %778 = vector.extract_strided_slice %777 {offsets = [0, 0], sizes = [2, 32], strides = [1, 1]} : vector<4x32xf32> to vector<2x32xf32>
    %779 = vector.extract_strided_slice %777 {offsets = [2, 0], sizes = [2, 32], strides = [1, 1]} : vector<4x32xf32> to vector<2x32xf32>
    %780 = tpu.concatenate %778, %779 in 1 : vector<2x32xf32>, vector<2x32xf32> -> vector<2x64xf32>
    %c0_374 = arith.constant 0 : index
    %c0_375 = arith.constant 0 : index
    %781 = vector.load %arg7[%c0_374, %c0_375] : memref<64x4xf32, #tpu.memory_space<vmem>>, vector<64x4xf32>
    %cst_376 = arith.constant dense<0.000000e+00> : vector<2x4xf32>
    %782 = tpu.matmul %780, %781, %cst_376 {dimension_numbers = #tpu.dot_dimension_numbers<[1], [0], [0], [1], [0, 0, 1, 1], [], []>} : vector<2x64xf32>, vector<64x4xf32>, vector<2x4xf32> -> vector<2x4xf32>
    %c0_377 = arith.constant 0 : index
    %c0_378 = arith.constant 0 : index
    %783 = vector.load %arg8[%c0_377, %c0_378] : memref<1x4xf32, #tpu.memory_space<vmem>>, vector<1x4xf32>
    %784 = vector.broadcast %783 : vector<1x4xf32> to vector<2x4xf32>
    %785 = arith.addf %782, %784 : vector<2x4xf32>
    %c0_379 = arith.constant 0 : index
    %c0_380 = arith.constant 0 : index
    %786 = vector.load %arg9[%c0_379, %c0_380] : memref<2x4xf32, #tpu.memory_space<vmem>>, vector<2x4xf32>
    tpu.vector_store %arg9[%c0_379, %c0_380], %785 {strides = array<i32>} : memref<2x4xf32, #tpu.memory_space<vmem>>, vector<2x4xf32>,
    return
  }
}

</mosaic_0001>

<bundles_post_ra>
// kernel: bilstm_model_forward.1
= control target key start
LH: loop header
LB: loop body
LE: loop exit
PB: predicated region body
PF: predicated region fallthrough
CT: control target
= control target key end

     0   :  { %14 = vsyncpa [#allocation7], 0  ;;  %s3673_s0 = inlined_call_operand.vmem [shape: f32[16,16], index: 0, kind: input, shape index: {}]   ;;  %s3674_s1 = inlined_call_operand.hbm [shape: f32[16,256], index: 1, kind: input, shape index: {}]   ;;  %s3675_s2 = inlined_call_operand.hbm [shape: f32[32,256], index: 2, kind: input, shape index: {}]   ;;  %s3676_s3 = inlined_call_operand.vmem [shape: f32[1,256], index: 3, kind: input, shape index: {}]   ;;  %s3677_s4 = inlined_call_operand.vmem [shape: f32[64,256], index: 4, kind: input, shape index: {}]   ;;  %s3678_s5 = inlined_call_operand.hbm [shape: f32[32,256], index: 5, kind: input, shape index: {}]   ;;  %s3679_s6 = inlined_call_operand.vmem [shape: f32[1,256], index: 6, kind: input, shape index: {}]   ;;  %s3680_s7 = inlined_call_operand.vmem [shape: f32[64,4], index: 7, kind: input, shape index: {}]   ;;  %s3681_s8 = inlined_call_operand.hbm [shape: f32[1,4], index: 8, kind: input, shape index: {}]   ;;  %s3682_s9 = inlined_call_operand.hbm [shape: f32[2,4], index: 9, kind: output, shape index: {}]  }
   0x1   :  { %15 = vsyncpa [#allocation10], 0 }
   0x2   :  { %16 = vsyncpa [#allocation13], 0 }
   0x3   :  { %17 = vsyncpa [#allocation8], 0  ;;  %s3065_s30 = smov [#allocation9]   ;;  %s3066_s11 = smov [#allocation6]  }
   0x4   :  { %s37_s10 = sshll.u32 %s3065_s30, 4  ;;  %s25_s12 = sshll.u32 %s3066_s11, 4  ;;  %s38_s10 = int_to_ptr.vmem [resolvable:$true] %s37_s10  ;;  %s3128_s12 = int_to_ptr.vmem [resolvable:$true] %s25_s12 }
   0x5   :  { %s2947_s15 = scalar_lea.hbm %s3675_s2, 1024 }
   0x6   :  { %p2948_p0 = scmp.ne.s32.totalorder %s3675_s2, %s2947_s15  ;;  %p2951_p1 = scmp.lt.u32.totalorder %s2947_s15, %s3675_s2 }
   0x8   :  { %p2953_p2 = pnand %p2951_p1, %p2948_p0 }
   0xa   :  { %2956 = shalt.err (!%p2953_p2)
}
   0xb   :  { %s2957_s20 = scalar_lea.vmem %s38_s10, 1024  ;;  %p2962_p4 = scmp.lt.s32.totalorder %s38_s10, %s38_s10 }
   0xc   :  { %p2958_p3 = scmp.ne.s32.totalorder %s38_s10, %s2957_s20  ;;  %p2963_p5 = scmp.lt.s32.totalorder %s2957_s20, %s2957_s20 }
   0xe   :  { %p2964_p6 = por %p2963_p5, %p2962_p4 }
  0x10   :  { %p2965_p7 = pnand %p2964_p6, %p2958_p3 }
  0x12   :  { %2968 = shalt.err (!%p2965_p7)
}
  0x13   :  { %s3067_s21 = smov 256   ;;  %s3068_s22 = smov 16  }
  0x14   :  { %43 = dma.hbm_to_vmem [thread:$0]  %s3675_s2, 1024, %s38_s10, [#allocation10], %s3067_s21, %s3067_s21, %s3068_s22  }
  0x15   :  { %s2969_s27 = scalar_lea.hbm %s3674_s1, 512 }
  0x16   :  { %p2970_p8 = scmp.ne.s32.totalorder %s3674_s1, %s2969_s27  ;;  %p2973_p9 = scmp.lt.u32.totalorder %s2969_s27, %s3674_s1 }
  0x18   :  { %p2975_p10 = pnand %p2973_p9, %p2970_p8 }
  0x1a   :  { %2978 = shalt.err (!%p2975_p10)
}
  0x1b   :  { %s2979_s13 = scalar_lea.vmem %s3128_s12, 512  ;;  %p2984_p12 = scmp.lt.s32.totalorder %s3128_s12, %s3128_s12 }
  0x1c   :  { %p2980_p11 = scmp.ne.s32.totalorder %s3128_s12, %s2979_s13  ;;  %p2985_p13 = scmp.lt.s32.totalorder %s2979_s13, %s2979_s13 }
  0x1e   :  { %p2986_p0 = por %p2985_p13, %p2984_p12 }
  0x20   :  { %p2987_p1 = pnand %p2986_p0, %p2980_p11 }
  0x22   :  { %2990 = shalt.err (!%p2987_p1)
}
  0x23   :  { %31 = dma.hbm_to_vmem [thread:$0]  %s3674_s1, 512, %s3128_s12, [#allocation7], %s3067_s21, %s3067_s21, %s3068_s22  }
  0x24   :  { %s3069_s14 = smov [#allocation11]   ;;  %s3070_s16 = smov [#allocation12]  }
  0x25   :  { %s53_s15 = sshll.u32 %s3069_s14, 4  ;;  %s70_s17 = sshll.u32 %s3070_s16, 4  ;;  %s54_s15 = int_to_ptr.vmem [resolvable:$true] %s53_s15  ;;  %s71_s17 = int_to_ptr.vmem [resolvable:$true] %s70_s17 }
  0x26   :  { %s2991_s20 = scalar_lea.hbm %s3678_s5, 1024 }
  0x27   :  { %p2992_p2 = scmp.ne.s32.totalorder %s3678_s5, %s2991_s20  ;;  %p2995_p3 = scmp.lt.u32.totalorder %s2991_s20, %s3678_s5 }
  0x29   :  { %p2997_p4 = pnand %p2995_p3, %p2992_p2 }
  0x2b   :  { %3000 = shalt.err (!%p2997_p4)
}
  0x2c   :  { %s3001_s1 = scalar_lea.vmem %s54_s15, 1024  ;;  %p3006_p6 = scmp.lt.s32.totalorder %s54_s15, %s54_s15 }
  0x2d   :  { %p3002_p5 = scmp.ne.s32.totalorder %s54_s15, %s3001_s1  ;;  %p3007_p7 = scmp.lt.s32.totalorder %s3001_s1, %s3001_s1 }
  0x2f   :  { %p3008_p8 = por %p3007_p7, %p3006_p6 }
  0x31   :  { %p3009_p9 = pnand %p3008_p8, %p3002_p5 }
  0x33   :  { %3012 = shalt.err (!%p3009_p9)
}
  0x34   :  { %59 = dma.hbm_to_vmem [thread:$0]  %s3678_s5, 1024, %s54_s15, [#allocation10], %s3067_s21, %s3067_s21, %s3068_s22  }
  0x35   :  { %s3013_s30 = scalar_lea.hbm %s3681_s8, 16 }
  0x36   :  { %p3014_p10 = scmp.ne.s32.totalorder %s3681_s8, %s3013_s30  ;;  %p3017_p11 = scmp.lt.u32.totalorder %s3013_s30, %s3681_s8 }
  0x38   :  { %p3019_p12 = pnand %p3017_p11, %p3014_p10 }
  0x3a   :  { %3022 = shalt.err (!%p3019_p12)
}
  0x3b   :  { %s3023_s14 = scalar_lea.vmem %s71_s17, 16  ;;  %s3027_s16 = scalar_lea.vmem %s71_s17, 32 }
  0x3c   :  { %p3024_p13 = scmp.ne.s32.totalorder %s71_s17, %s3023_s14  ;;  %p3028_p0 = scmp.lt.s32.totalorder %s71_s17, %s71_s17 }
  0x3d   :  { %p3029_p1 = scmp.lt.s32.totalorder %s3027_s16, %s3023_s14 }
  0x3f   :  { %p3030_p2 = por %p3029_p1, %p3028_p0 }
  0x41   :  { %p3031_p3 = pnand %p3030_p2, %p3024_p13 }
  0x43   :  { %3034 = shalt.err (!%p3031_p3)
}
  0x44   :  { %73 = dma.hbm_to_vmem [thread:$0]  %s3681_s8, 16, %s71_s17, [#allocation13]  }
  0x45   :  { %3057 = dma.done.wait [#allocation7], 512  }
  0x46   :  { %3058 = vsyncadd [#allocation7], 4294966784 }
  0x47   :  { %3059 = dma.done.wait [#allocation10], 2048  }
  0x48   :  { %3060 = vsyncadd [#allocation10], 4294965248 }
  0x49   :  { %3061 = dma.done.wait [#allocation13], 16  }
  0x4a   :  { %3062 = vsyncadd [#allocation13], 4294967280  ;;  %vm195_vm0 = vcmask 257024   ;;  %v3071_v0 = vmov 0.0   ;;  %v92_v1 = vld [vmem:[#allocation6 + $0x8] sm:$0xff]  ;;  %v94_v2 = vld [vmem:[#allocation6 + $0x18] sm:$0xff]  ;;  %v86_v22 = vlaneseq }
  0x4b   :  { %178 = vmatprep.mubr.f32.mxu0 %v3071_v0  ;;  %196 = vst.msk [vmem:[#allocation4] sm:$0xf] %vm195_vm0, %v3071_v0  ;;  %197 = vst.msk [vmem:[#allocation5] sm:$0xf] %vm195_vm0, %v3071_v0  ;;  %551 = vmatprep.mubr.f32.mxu1 %v3071_v0  ;;  %v91_v3 = vld [vmem:[#allocation6] sm:$0xff]  ;;  %v2646_v4 = vpack.c.bf16 %v94_v2, %v92_v1  ;;  %v93_v5 = vld [vmem:[#allocation6 + $0x10] sm:$0xff] }
  0x4c   :  { %v2648_v6 = vpack.c.bf16 %v93_v5, %v91_v3  ;;  %v200_v7 = vld [vmem:[#allocation9 + $0x8] sm:$0xff]  ;;  %v202_v8 = vld [vmem:[#allocation9 + $0x18] sm:$0xff]  ;;  %v199_v9 = vld [vmem:[#allocation9] sm:$0xff]  ;;  %vm107_vm1 = vcmask 130048   ;;  %vm207_vm2 = vcmask 261120   ;;  %v3232_v23 = vshrl.u32 %v86_v22, 7 }
  0x4d   :  { %2647 = vmatprep.subr.bf16.mxu0 %v2646_v4  ;;  %v3198_v10 = vpack.c.bf16 %v202_v8, %v200_v7  ;;  %v201_v11 = vld [vmem:[#allocation9 + $0x10] sm:$0xff]  ;;  %v204_v12 = vld [vmem:[#allocation9 + $0x28] sm:$0xff]  ;;  %v206_v13 = vld [vmem:[#allocation9 + $0x38] sm:$0xff]  ;;  %vm287_vm4 = vcmask 1041408   ;;  %s3073_s19 = smov 32   ;;  %s3074_s20 = smov 96  }
  0x4e   :  { %2649 = vmatpush1.bf16.msra.mxu0 %v2648_v6  ;;  %v89_v14 = vld [vmem:[%s3673_s0] sm:$0xff]  ;;  %v3203_v15 = vpack.c.bf16 %v201_v11, %v199_v9  ;;  %v3206_v16 = vpack.c.bf16 %v206_v13, %v204_v12  ;;  %v203_v17 = vld [vmem:[#allocation9 + $0x20] sm:$0xff]  ;;  %v205_v18 = vld [vmem:[#allocation9 + $0x30] sm:$0xff]  ;;  %v99_v24 = vsub.s32 0, %v3232_v23  ;;  %v103_v26 = vsub.s32 1, %v3232_v23 }
  0x4f   :  { %2651 = vmatprep.subr.bf16.mxu0 %v3198_v10  ;;  %2667 = vmatprep.subr.bf16.mxu1 %v3198_v10  ;;  %v90_v19 = vld [vmem:[%s3673_s0 + $0x8] sm:$0xff]  ;;  %v3217_v20 = vpack.c.bf16 %v205_v18, %v203_v17  ;;  %v95_v25 = vld [vmem:[%s3676_s3] sm:$0x3]  ;;  %vm88_vm3 = vcmp.lt.s32.totalorder %v3232_v23, 2  ;;  %s3072_s3 = smov 64   ;;  %vm330_vm5 = vcmask 254976  }
  0x50   :  { %2669 = vmatpush1.bf16.msra.mxu1 %v3203_v15  ;;  %v100_v27 = vrot.slane %v95_v25, %v99_v24  ;;  %v104_v28 = vrot.slane %v95_v25, %v103_v26  ;;  %vm335_vm6 = vcmask 519426   ;;  %vm1324_vm7 = vcmask 523264  }
  0x51   :  { %2580 = vmatmul.mubr.msk.f32.vlgmr.msra.gmra.mrb[0].mxu0 %vm107_vm1, %v89_v14  ;;  %2671 = vmatprep.subr.bf16.mxu1 %v3206_v16  ;;  %vm3076_vm8 = vmmov 0   ;;  %vm2561_vm9 = vcmask 25600  }
  0x52   :  { %184 = vmatprep.mubr.f32.mxu0 %v3071_v0  ;;  %2653 = vmatpush1.bf16.msra.mxu0 %v3203_v15  ;;  %v198_v21 = vld [vmem:[#allocation4] sm:$0xf]  ;;  %v298_v46 = vld [vmem:[#allocation5] sm:$0xf] }
  0x53   :  { %2655 = vmatprep.subr.bf16.mxu0 %v3206_v16 }
  0x54   :  { %2673 = vmatpush1.bf16.msra.mxu1 %v3217_v20 }
  0x55   :  { %2581 = vmatmul.mubr.msk.f32.gmra.mrb[2].mxu0 %vm107_vm1, %v90_v19  ;;  %2683 = vmatprep.subr.bf16.mxu1 %v3198_v10 }
  0x56   :  { %2657 = vmatpush1.bf16.msra.mxu0 %v3217_v20  ;;  %275 = vmatprep.mubr.f32.mxu0 %v3071_v0 }
  0x57   :  { %2659 = vmatprep.subr.bf16.mxu0 %v3198_v10 }
  0x59   :  { %2582 = vmatmul.mubr.msk.f32.vlgmr.msra.gmra.mrb[4].mxu0 %vm207_vm2, %v198_v21 }
  0x5a   :  { %2661 = vmatpush1.bf16.msra.mxu0 %v3203_v15  ;;  %413 = vmatprep.mubr.f32.mxu0 %v3071_v0 }
  0x5b   :  { %2663 = vmatprep.subr.bf16.mxu0 %v3206_v16 }
  0x5e   :  { %2665 = vmatpush1.bf16.msra.mxu0 %v3217_v20 }
  0x5f   :  { %2675 = vmatprep.subr.bf16.mxu0 %v3198_v10 }
 0x124   :  { %v180_v29 = vpop.f32.mrb[0].mxu0 }
 0x125   :  { %v181_v30 = vadd.f32 %v180_v29, %v100_v27  ;;  %v182_v31 = vpop.f32.mrb[1].mxu0 }
 0x126   :  { %v183_v32 = vadd.f32 %v182_v31, %v104_v28 }
 0x127   :  { %191 = vst [vmem:[#allocation2] sm:$0xff] %v181_v30 }
 0x128   :  { %192 = vst [vmem:[#allocation2 + $0x8] sm:$0xff] %v183_v32  ;;  %v186_v33 = vpop.f32.mrb[2].mxu0 }
 0x129   :  { %v187_v34 = vadd.f32 %v186_v33, %v100_v27  ;;  %v188_v35 = vpop.f32.mrb[3].mxu0 }
 0x12a   :  { %v189_v36 = vadd.f32 %v188_v35, %v104_v28 }
 0x12b   :  { %193 = vst [vmem:[#allocation2 + $0x10] sm:$0xff] %v187_v34 }
 0x12c   :  { %194 = vst [vmem:[#allocation2 + $0x18] sm:$0xff] %v189_v36  ;;  %v277_v37 = vpop.f32.mrb[4].mxu0 }
 0x12d   :  { %v279_v38 = vpop.f32.mrb[5].mxu0 }
 0x12e   :  { %v289_v39 = vsel %vm88_vm3, %v277_v37, %v279_v38  ;;  %v282_v42 = vld [vmem:[#allocation2] sm:$0x3]  ;;  %v420_v2 = vld [vmem:[#allocation2] sm:$0xc]  ;;  %v558_v35 = vld [vmem:[#allocation2] sm:$0x30] }
 0x12f   :  { %v423_v5 = vrot.slane %v420_v2, 2  ;;  %v561_v38 = vrot.slane %v558_v35, 4 }
 0x132   :  { %v831_v35 = vld [vmem:[#allocation2 + $0x10] sm:$0x3] }
 0x133   :  { %v283_v40 = vld [vmem:[#allocation2 + $0x18] sm:$0xc0]  ;;  %v421_v1 = vld [vmem:[#allocation2 + $0x18] sm:$0x30]  ;;  %v559_v36 = vld [vmem:[#allocation2 + $0x18] sm:$0xc] }
 0x134   :  { %v285_v41 = vrot.slane %v283_v40, 4  ;;  %v426_v3 = vrot.slane %v421_v1, 2  ;;  %v563_v40 = vsel %vm287_vm4, %v561_v38, %v559_v36 }
 0x136   :  { %v288_v43 = vsel %vm287_vm4, %v282_v42, %v285_v41  ;;  %v428_v7 = vsel %vm287_vm4, %v423_v5, %v426_v3 }
 0x137   :  { %v290_v44 = vadd.f32 %v289_v39, %v288_v43 }
 0x139   :  { %2819 = vtanh.f32 %v290_v44  ;;  %v2583_v47 = vmul.f32 -1.442695, %v290_v44 }
 0x13b   :  { %2821 = vpow2.f32 %v2583_v47 }
 0x143   :  { %v2820_v45 = vpop.eup %2819 }
 0x144   :  { %305 = vrot.lane.b32.xlu0 %v2820_v45, %s3072_s3 }
 0x145   :  { %v2822_v48 = vpop.eup %2821 }
 0x146   :  { %v294_v49 = vadd.f32 1.0, %v2822_v48 }
 0x148   :  { %300 = vrot.lane.b32.xlu0 %v298_v46, %s3073_s19  ;;  %2823 = vrcp.f32 %v294_v49 }
 0x152   :  { %v2824_v50 = vpop.eup %2823 }
 0x1b6   :  { %v306_v51 = vpop.permute.xlu0 %305 }
 0x1b7   :  { %v308_v52 = vmul.f32 %v2824_v50, %v306_v51 }
 0x1b9   :  { %310 = vrot.lane.b32.xlu1 %v308_v52, %s3073_s19 }
 0x1ba   :  { %v301_v53 = vpop.permute.xlu0 %300 }
 0x1bb   :  { %v303_v54 = vmul.f32 %v2824_v50, %v301_v53 }
 0x22b   :  { %v311_v55 = vpop.permute.xlu1 %310 }
 0x22c   :  { %v313_v56 = vadd.f32 %v311_v55, %v303_v54 }
 0x22e   :  { %2825 = vtanh.f32 %v313_v56 }
 0x238   :  { %v2826_v57 = vpop.eup %2825 }
 0x239   :  { %316 = vrot.lane.b32.xlu1 %v2826_v57, %s3072_s3 }
 0x23d   :  { %321 = vrot.lane.b32.xlu1 %v313_v56, %s3074_s20 }
 0x2ab   :  { %v317_v58 = vpop.permute.xlu1 %316 }
 0x2ac   :  { %v3252_v59 = vmul.f32 %v2824_v50, %v317_v58 }
 0x2ae   :  { %326 = vrot.lane.b32.xlu0 %v3252_v59, %s3073_s19 }
 0x2af   :  { %v322_v60 = vpop.permute.xlu1 %321 }
 0x2b0   :  { %324 = vst.msk [vmem:[#allocation5] sm:$0xf] %vm195_vm0, %v322_v60 }
 0x2b7   :  { %v438_v61 = vld [vmem:[#allocation5] sm:$0xf] }
 0x2b8   :  { %440 = vrot.lane.b32.xlu1 %v438_v61, %s3073_s19 }
 0x320   :  { %v327_v62 = vpop.permute.xlu0 %326 }
 0x321   :  { %329 = vst.msk [vmem:[#allocation4] sm:$0xf] %vm195_vm0, %v327_v62 }
 0x322   :  { %331 = vst.msk [vmem:[#allocation3] sm:$0x3] %vm330_vm5, %v327_v62  ;;  %v694_v62 = vld [vmem:[#allocation2 + $0x18] sm:$0x3] }
 0x323   :  { %v699_v1 = vrot.slane %v694_v62, 6  ;;  %v967_v62 = vld [vmem:[#allocation2 + $0x8] sm:$0x30] }
 0x328   :  { %v337_v63 = vld [vmem:[#allocation4] sm:$0xf] }
 0x329   :  { %2584 = vmatmul.mubr.msk.f32.vlgmr.msra.gmra.mrb[6].mxu0 %vm207_vm2, %v337_v63  ;;  %v693_v63 = vld [vmem:[#allocation2] sm:$0xc0] }
 0x32a   :  { %2677 = vmatpush1.bf16.msra.mxu0 %v3203_v15  ;;  %686 = vmatprep.mubr.f32.mxu0 %v3071_v0  ;;  %v441_v21 = vpop.permute.xlu1 %440  ;;  %v696_v3 = vrot.slane %v693_v63, 6 }
 0x32b   :  { %2679 = vmatprep.subr.bf16.mxu0 %v3206_v16 }
 0x32c   :  { %v701_v5 = vsel %vm287_vm4, %v696_v3, %v699_v1 }
 0x32e   :  { %2681 = vmatpush1.bf16.msra.mxu0 %v3217_v20 }
 0x32f   :  { %2691 = vmatprep.subr.bf16.mxu0 %v3198_v10 }
 0x3fc   :  { %v415_v4 = vpop.f32.mrb[6].mxu0 }
 0x3fd   :  { %v417_v6 = vpop.f32.mrb[7].mxu0 }
 0x3fe   :  { %v429_v8 = vsel %vm88_vm3, %v415_v4, %v417_v6 }
 0x3ff   :  { %v430_v9 = vadd.f32 %v429_v8, %v428_v7 }
 0x401   :  { %2827 = vtanh.f32 %v430_v9  ;;  %v2585_v12 = vmul.f32 -1.442695, %v430_v9 }
 0x403   :  { %2829 = vpow2.f32 %v2585_v12 }
 0x40b   :  { %v2828_v11 = vpop.eup %2827 }
 0x40c   :  { %445 = vrot.lane.b32.xlu0 %v2828_v11, %s3072_s3 }
 0x40d   :  { %v2830_v13 = vpop.eup %2829 }
 0x40e   :  { %v434_v14 = vadd.f32 1.0, %v2830_v13 }
 0x410   :  { %2831 = vrcp.f32 %v434_v14 }
 0x41a   :  { %v2832_v17 = vpop.eup %2831 }
 0x41b   :  { %v443_v22 = vmul.f32 %v2832_v17, %v441_v21 }
 0x47e   :  { %v446_v18 = vpop.permute.xlu0 %445 }
 0x47f   :  { %v448_v19 = vmul.f32 %v2832_v17, %v446_v18 }
 0x481   :  { %450 = vrot.lane.b32.xlu0 %v448_v19, %s3073_s19 }
 0x4f3   :  { %v451_v25 = vpop.permute.xlu0 %450 }
 0x4f4   :  { %v453_v27 = vadd.f32 %v451_v25, %v443_v22 }
 0x4f6   :  { %2833 = vtanh.f32 %v453_v27 }
 0x500   :  { %v2834_v28 = vpop.eup %2833 }
 0x501   :  { %456 = vrot.lane.b32.xlu1 %v2834_v28, %s3072_s3 }
 0x505   :  { %461 = vrot.lane.b32.xlu1 %v453_v27, %s3074_s20 }
 0x573   :  { %v457_v29 = vpop.permute.xlu1 %456 }
 0x574   :  { %v3273_v30 = vmul.f32 %v2832_v17, %v457_v29 }
 0x576   :  { %466 = vrot.lane.b32.xlu0 %v3273_v30, %s3073_s19 }
 0x577   :  { %v462_v31 = vpop.permute.xlu1 %461 }
 0x578   :  { %464 = vst.msk [vmem:[#allocation5] sm:$0xf] %vm195_vm0, %v462_v31 }
 0x57f   :  { %v573_v32 = vld [vmem:[#allocation5] sm:$0xf] }
 0x580   :  { %575 = vrot.lane.b32.xlu1 %v573_v32, %s3073_s19 }
 0x5e8   :  { %v467_v33 = vpop.permute.xlu0 %466 }
 0x5e9   :  { %469 = vst.msk [vmem:[#allocation4] sm:$0xf] %vm195_vm0, %v467_v33 }
 0x5ea   :  { %470 = vst.msk [vmem:[#allocation3 + $0x2] sm:$0x3] %vm330_vm5, %v467_v33  ;;  %v832_v33 = vld [vmem:[#allocation2 + $0x8] sm:$0xc0] }
 0x5f0   :  { %v475_v34 = vld [vmem:[#allocation4] sm:$0xf] }
 0x5f1   :  { %2586 = vmatmul.mubr.msk.f32.vlgmr.msra.gmra.mrb[0].mxu1 %vm207_vm2, %v475_v34  ;;  %v834_v34 = vrot.slane %v832_v33, 4 }
 0x5f2   :  { %2685 = vmatpush1.bf16.msra.mxu1 %v3203_v15  ;;  %824 = vmatprep.mubr.f32.mxu1 %v3071_v0  ;;  %v576_v50 = vpop.permute.xlu1 %575 }
 0x5f3   :  { %2687 = vmatprep.subr.bf16.mxu1 %v3206_v16  ;;  %v836_v38 = vsel %vm287_vm4, %v831_v35, %v834_v34  ;;  %v1105_v34 = vld [vmem:[#allocation2 + $0x8] sm:$0xc] }
 0x5f6   :  { %2689 = vmatpush1.bf16.msra.mxu1 %v3217_v20 }
 0x5f7   :  { %2699 = vmatprep.subr.bf16.mxu1 %v3198_v10 }
 0x6c4   :  { %v553_v37 = vpop.f32.mrb[0].mxu1 }
 0x6c5   :  { %v555_v39 = vpop.f32.mrb[1].mxu1 }
 0x6c6   :  { %v564_v41 = vsel %vm88_vm3, %v553_v37, %v555_v39 }
 0x6c7   :  { %v565_v42 = vadd.f32 %v564_v41, %v563_v40 }
 0x6c9   :  { %2835 = vtanh.f32 %v565_v42  ;;  %v2587_v44 = vmul.f32 -1.442695, %v565_v42 }
 0x6cb   :  { %2837 = vpow2.f32 %v2587_v44 }
 0x6d3   :  { %v2836_v43 = vpop.eup %2835 }
 0x6d4   :  { %580 = vrot.lane.b32.xlu0 %v2836_v43, %s3072_s3 }
 0x6d5   :  { %v2838_v45 = vpop.eup %2837 }
 0x6d6   :  { %v569_v46 = vadd.f32 1.0, %v2838_v45 }
 0x6d8   :  { %2839 = vrcp.f32 %v569_v46 }
 0x6e2   :  { %v2840_v47 = vpop.eup %2839 }
 0x6e3   :  { %v578_v51 = vmul.f32 %v2840_v47, %v576_v50 }
 0x746   :  { %v581_v48 = vpop.permute.xlu0 %580 }
 0x747   :  { %v583_v49 = vmul.f32 %v2840_v47, %v581_v48 }
 0x749   :  { %585 = vrot.lane.b32.xlu0 %v583_v49, %s3073_s19 }
 0x7bb   :  { %v586_v52 = vpop.permute.xlu0 %585 }
 0x7bc   :  { %v588_v53 = vadd.f32 %v586_v52, %v578_v51 }
 0x7be   :  { %2841 = vtanh.f32 %v588_v53 }
 0x7c8   :  { %v2842_v54 = vpop.eup %2841 }
 0x7c9   :  { %591 = vrot.lane.b32.xlu1 %v2842_v54, %s3072_s3 }
 0x7cd   :  { %596 = vrot.lane.b32.xlu1 %v588_v53, %s3074_s20 }
 0x83b   :  { %v592_v55 = vpop.permute.xlu1 %591 }
 0x83c   :  { %v3294_v56 = vmul.f32 %v2840_v47, %v592_v55 }
 0x83e   :  { %601 = vrot.lane.b32.xlu0 %v3294_v56, %s3073_s19 }
 0x83f   :  { %v597_v57 = vpop.permute.xlu1 %596 }
 0x840   :  { %599 = vst.msk [vmem:[#allocation5] sm:$0xf] %vm195_vm0, %v597_v57 }
 0x847   :  { %v711_v58 = vld [vmem:[#allocation5] sm:$0xf] }
 0x848   :  { %713 = vrot.lane.b32.xlu1 %v711_v58, %s3073_s19 }
 0x8b0   :  { %v602_v60 = vpop.permute.xlu0 %601 }
 0x8b1   :  { %604 = vst.msk [vmem:[#allocation4] sm:$0xf] %vm195_vm0, %v602_v60 }
 0x8b2   :  { %605 = vst.msk [vmem:[#allocation3 + $0x4] sm:$0x3] %vm330_vm5, %v602_v60 }
 0x8b8   :  { %v610_v61 = vld [vmem:[#allocation4] sm:$0xf] }
 0x8b9   :  { %2588 = vmatmul.mubr.msk.f32.vlgmr.msra.gmra.mrb[8].mxu0 %vm207_vm2, %v610_v61  ;;  %v966_v61 = vld [vmem:[#allocation2 + $0x10] sm:$0xc] }
 0x8ba   :  { %2693 = vmatpush1.bf16.msra.mxu0 %v3203_v15  ;;  %959 = vmatprep.mubr.f32.mxu0 %v3071_v0  ;;  %v714_v17 = vpop.permute.xlu1 %713  ;;  %v969_v63 = vrot.slane %v966_v61, 2  ;;  %v1240_v61 = vld [vmem:[#allocation2 + $0x8] sm:$0x3] }
 0x8bb   :  { %2695 = vmatprep.subr.bf16.mxu0 %v3206_v16 }
 0x8be   :  { %2697 = vmatpush1.bf16.msra.mxu0 %v3217_v20 }
 0x8bf   :  { %2707 = vmatprep.subr.bf16.mxu0 %v3198_v10 }
 0x98c   :  { %v688_v2 = vpop.f32.mrb[8].mxu0 }
 0x98d   :  { %v690_v4 = vpop.f32.mrb[9].mxu0 }
 0x98e   :  { %v702_v6 = vsel %vm88_vm3, %v688_v2, %v690_v4  ;;  %v972_v2 = vrot.slane %v967_v62, 2 }
 0x98f   :  { %v703_v7 = vadd.f32 %v702_v6, %v701_v5 }
 0x990   :  { %v974_v4 = vsel %vm287_vm4, %v969_v63, %v972_v2 }
 0x991   :  { %2843 = vtanh.f32 %v703_v7  ;;  %v2589_v9 = vmul.f32 -1.442695, %v703_v7 }
 0x993   :  { %2845 = vpow2.f32 %v2589_v9 }
 0x99b   :  { %v2844_v8 = vpop.eup %2843 }
 0x99c   :  { %718 = vrot.lane.b32.xlu0 %v2844_v8, %s3072_s3 }
 0x99d   :  { %v2846_v11 = vpop.eup %2845 }
 0x99e   :  { %v707_v10 = vadd.f32 1.0, %v2846_v11 }
 0x9a0   :  { %2847 = vrcp.f32 %v707_v10 }
 0x9aa   :  { %v2848_v12 = vpop.eup %2847 }
 0x9ab   :  { %v716_v18 = vmul.f32 %v2848_v12, %v714_v17 }
 0xa0e   :  { %v719_v13 = vpop.permute.xlu0 %718 }
 0xa0f   :  { %v721_v14 = vmul.f32 %v2848_v12, %v719_v13 }
 0xa11   :  { %723 = vrot.lane.b32.xlu0 %v721_v14, %s3073_s19 }
 0xa83   :  { %v724_v19 = vpop.permute.xlu0 %723 }
 0xa84   :  { %v726_v21 = vadd.f32 %v724_v19, %v716_v18 }
 0xa86   :  { %2849 = vtanh.f32 %v726_v21 }
 0xa90   :  { %v2850_v22 = vpop.eup %2849 }
 0xa91   :  { %729 = vrot.lane.b32.xlu1 %v2850_v22, %s3072_s3 }
 0xa95   :  { %734 = vrot.lane.b32.xlu1 %v726_v21, %s3074_s20 }
 0xb03   :  { %v730_v25 = vpop.permute.xlu1 %729 }
 0xb04   :  { %v3315_v27 = vmul.f32 %v2848_v12, %v730_v25 }
 0xb06   :  { %739 = vrot.lane.b32.xlu0 %v3315_v27, %s3073_s19 }
 0xb07   :  { %v735_v28 = vpop.permute.xlu1 %734 }
 0xb08   :  { %737 = vst.msk [vmem:[#allocation5] sm:$0xf] %vm195_vm0, %v735_v28 }
 0xb0f   :  { %v846_v29 = vld [vmem:[#allocation5] sm:$0xf] }
 0xb10   :  { %848 = vrot.lane.b32.xlu1 %v846_v29, %s3073_s19  ;;  %v1104_v29 = vld [vmem:[#allocation2 + $0x10] sm:$0x30] }
 0xb78   :  { %v740_v31 = vpop.permute.xlu0 %739 }
 0xb79   :  { %742 = vst.msk [vmem:[#allocation4] sm:$0xf] %vm195_vm0, %v740_v31 }
 0xb7a   :  { %743 = vst.msk [vmem:[#allocation3 + $0x6] sm:$0x3] %vm330_vm5, %v740_v31  ;;  %v1107_v31 = vrot.slane %v1104_v29, 4  ;;  %v1303_v29 = vld [vmem:[%s3677_s4 + $0x38] sm:$0xff] }
 0xb7c   :  { %v1109_v35 = vsel %vm287_vm4, %v1107_v31, %v1105_v34  ;;  %v1300_v34 = vld [vmem:[%s3677_s4 + $0x20] sm:$0xff] }
 0xb80   :  { %v748_v32 = vld [vmem:[#allocation4] sm:$0xf] }
 0xb81   :  { %2590 = vmatmul.mubr.msk.f32.vlgmr.msra.gmra.mrb[2].mxu1 %vm207_vm2, %v748_v32 }
 0xb82   :  { %2701 = vmatpush1.bf16.msra.mxu1 %v3203_v15  ;;  %1097 = vmatprep.mubr.f32.mxu1 %v3071_v0  ;;  %v849_v48 = vpop.permute.xlu1 %848 }
 0xb83   :  { %2703 = vmatprep.subr.bf16.mxu1 %v3206_v16 }
 0xb86   :  { %2705 = vmatpush1.bf16.msra.mxu1 %v3217_v20 }
 0xc54   :  { %v826_v36 = vpop.f32.mrb[2].mxu1 }
 0xc55   :  { %v828_v37 = vpop.f32.mrb[3].mxu1 }
 0xc56   :  { %v837_v39 = vsel %vm88_vm3, %v826_v36, %v828_v37 }
 0xc57   :  { %v838_v40 = vadd.f32 %v837_v39, %v836_v38 }
 0xc59   :  { %2851 = vtanh.f32 %v838_v40  ;;  %v2591_v42 = vmul.f32 -1.442695, %v838_v40 }
 0xc5b   :  { %2853 = vpow2.f32 %v2591_v42 }
 0xc63   :  { %v2852_v41 = vpop.eup %2851 }
 0xc64   :  { %853 = vrot.lane.b32.xlu0 %v2852_v41, %s3072_s3 }
 0xc65   :  { %v2854_v43 = vpop.eup %2853 }
 0xc66   :  { %v842_v44 = vadd.f32 1.0, %v2854_v43 }
 0xc68   :  { %2855 = vrcp.f32 %v842_v44 }
 0xc72   :  { %v2856_v45 = vpop.eup %2855 }
 0xc73   :  { %v851_v49 = vmul.f32 %v2856_v45, %v849_v48 }
 0xcd6   :  { %v854_v46 = vpop.permute.xlu0 %853 }
 0xcd7   :  { %v856_v47 = vmul.f32 %v2856_v45, %v854_v46 }
 0xcd9   :  { %858 = vrot.lane.b32.xlu0 %v856_v47, %s3073_s19 }
 0xd4b   :  { %v859_v50 = vpop.permute.xlu0 %858 }
 0xd4c   :  { %v861_v51 = vadd.f32 %v859_v50, %v851_v49 }
 0xd4e   :  { %2857 = vtanh.f32 %v861_v51 }
 0xd58   :  { %v2858_v52 = vpop.eup %2857 }
 0xd59   :  { %864 = vrot.lane.b32.xlu1 %v2858_v52, %s3072_s3 }
 0xd5d   :  { %869 = vrot.lane.b32.xlu1 %v861_v51, %s3074_s20 }
 0xdcb   :  { %v865_v53 = vpop.permute.xlu1 %864 }
 0xdcc   :  { %v3335_v54 = vmul.f32 %v2856_v45, %v865_v53 }
 0xdce   :  { %874 = vrot.lane.b32.xlu0 %v3335_v54, %s3073_s19 }
 0xdcf   :  { %v870_v55 = vpop.permute.xlu1 %869 }
 0xdd0   :  { %872 = vst.msk [vmem:[#allocation5] sm:$0xf] %vm195_vm0, %v870_v55 }
 0xdd7   :  { %v984_v57 = vld [vmem:[#allocation5] sm:$0xf] }
 0xdd8   :  { %986 = vrot.lane.b32.xlu1 %v984_v57, %s3073_s19 }
 0xe40   :  { %v3341_v58 = vpop.permute.xlu0 %874 }
 0xe41   :  { %877 = vst.msk [vmem:[#allocation4] sm:$0xf] %vm195_vm0, %v3341_v58 }
 0xe48   :  { %v883_v60 = vld [vmem:[#allocation4] sm:$0xf] }
 0xe49   :  { %2592 = vmatmul.mubr.msk.f32.vlgmr.msra.gmra.mrb[10].mxu0 %vm207_vm2, %v883_v60  ;;  %v1239_v60 = vld [vmem:[#allocation2 + $0x10] sm:$0xc0] }
 0xe4a   :  { %2709 = vmatpush1.bf16.msra.mxu0 %v3203_v15  ;;  %1232 = vmatprep.mubr.f32.mxu0 %v3071_v0  ;;  %v987_v10 = vpop.permute.xlu1 %986  ;;  %v1242_v62 = vrot.slane %v1239_v60, 6  ;;  %v1420_v60 = vld [vmem:[#allocation11 + $0x28] sm:$0xff] }
 0xe4b   :  { %2711 = vmatprep.subr.bf16.mxu0 %v3206_v16 }
 0xe4e   :  { %2713 = vmatpush1.bf16.msra.mxu0 %v3217_v20 }
 0xf1c   :  { %v961_v1 = vpop.f32.mrb[10].mxu0 }
 0xf1d   :  { %v963_v3 = vpop.f32.mrb[11].mxu0 }
 0xf1e   :  { %v975_v5 = vsel %vm88_vm3, %v961_v1, %v963_v3  ;;  %v1245_v1 = vrot.slane %v1240_v61, 6  ;;  %v1422_v61 = vld [vmem:[#allocation11 + $0x38] sm:$0xff] }
 0xf1f   :  { %v976_v6 = vadd.f32 %v975_v5, %v974_v4 }
 0xf20   :  { %v1247_v3 = vsel %vm287_vm4, %v1242_v62, %v1245_v1  ;;  %v1419_v1 = vld [vmem:[#allocation11 + $0x20] sm:$0xff] }
 0xf21   :  { %2859 = vtanh.f32 %v976_v6  ;;  %v2593_v7 = vmul.f32 -1.442695, %v976_v6 }
 0xf23   :  { %2861 = vpow2.f32 %v2593_v7 }
 0xf2b   :  { %v2860_v15 = vpop.eup %2859 }
 0xf2c   :  { %991 = vrot.lane.b32.xlu0 %v2860_v15, %s3072_s3 }
 0xf2d   :  { %v2862_v16 = vpop.eup %2861 }
 0xf2e   :  { %v980_v20 = vadd.f32 1.0, %v2862_v16 }
 0xf30   :  { %2863 = vrcp.f32 %v980_v20 }
 0xf3a   :  { %v2864_v8 = vpop.eup %2863 }
 0xf3b   :  { %v989_v12 = vmul.f32 %v2864_v8, %v987_v10 }
 0xf9e   :  { %v992_v9 = vpop.permute.xlu0 %991 }
 0xf9f   :  { %v994_v11 = vmul.f32 %v2864_v8, %v992_v9 }
 0xfa1   :  { %996 = vrot.lane.b32.xlu0 %v994_v11, %s3073_s19 }
0x1013   :  { %v997_v13 = vpop.permute.xlu0 %996 }
0x1014   :  { %v999_v14 = vadd.f32 %v997_v13, %v989_v12 }
0x1016   :  { %2865 = vtanh.f32 %v999_v14 }
0x1020   :  { %v2866_v17 = vpop.eup %2865 }
0x1021   :  { %1002 = vrot.lane.b32.xlu1 %v2866_v17, %s3072_s3  ;;  %v1296_v17 = vld [vmem:[%s3677_s4] sm:$0xff] }
0x1025   :  { %1007 = vrot.lane.b32.xlu1 %v999_v14, %s3074_s20 }
0x1093   :  { %v1003_v18 = vpop.permute.xlu1 %1002 }
0x1094   :  { %v3357_v19 = vmul.f32 %v2864_v8, %v1003_v18 }
0x1096   :  { %1012 = vrot.lane.b32.xlu0 %v3357_v19, %s3073_s19 }
0x1097   :  { %v1008_v21 = vpop.permute.xlu1 %1007 }
0x1098   :  { %1010 = vst.msk [vmem:[#allocation5] sm:$0xf] %vm195_vm0, %v1008_v21 }
0x109f   :  { %v1119_v22 = vld [vmem:[#allocation5] sm:$0xf] }
0x10a0   :  { %1121 = vrot.lane.b32.xlu1 %v1119_v22, %s3073_s19  ;;  %v1298_v22 = vld [vmem:[%s3677_s4 + $0x10] sm:$0xff] }
0x1108   :  { %v3363_v25 = vpop.permute.xlu0 %1012 }
0x1109   :  { %1015 = vst.msk [vmem:[#allocation4] sm:$0xf] %vm195_vm0, %v3363_v25 }
0x1110   :  { %v1021_v28 = vld [vmem:[#allocation4] sm:$0xf] }
0x1111   :  { %2594 = vmatmul.mubr.msk.f32.vlgmr.msra.gmra.mrb[4].mxu1 %vm207_vm2, %v1021_v28  ;;  %v1301_v28 = vld [vmem:[%s3677_s4 + $0x28] sm:$0xff] }
0x1112   :  { %1395 = vmatprep.mubr.f32.mxu1 %v3071_v0  ;;  %v1122_v45 = vpop.permute.xlu1 %1121 }
0x11e4   :  { %v1099_v32 = vpop.f32.mrb[4].mxu1 }
0x11e5   :  { %v1101_v33 = vpop.f32.mrb[5].mxu1 }
0x11e6   :  { %v1110_v36 = vsel %vm88_vm3, %v1099_v32, %v1101_v33  ;;  %v2716_v32 = vpack.c.bf16 %v1298_v22, %v1296_v17  ;;  %v2718_v33 = vpack.c.bf16 %v1303_v29, %v1301_v28 }
0x11e7   :  { %v1111_v37 = vadd.f32 %v1110_v36, %v1109_v35  ;;  %v1302_v35 = vld [vmem:[%s3677_s4 + $0x30] sm:$0xff] }
0x11e8   :  { %v2720_v36 = vpack.c.bf16 %v1302_v35, %v1300_v34 }
0x11e9   :  { %2867 = vtanh.f32 %v1111_v37  ;;  %v2595_v39 = vmul.f32 -1.442695, %v1111_v37 }
0x11eb   :  { %2869 = vpow2.f32 %v2595_v39  ;;  %v1307_v39 = vld [vmem:[%s3677_s4 + $0x58] sm:$0xff] }
0x11f3   :  { %v2868_v38 = vpop.eup %2867 }
0x11f4   :  { %1126 = vrot.lane.b32.xlu0 %v2868_v38, %s3072_s3  ;;  %v1305_v38 = vld [vmem:[%s3677_s4 + $0x48] sm:$0xff] }
0x11f5   :  { %v2870_v40 = vpop.eup %2869 }
0x11f6   :  { %v1115_v41 = vadd.f32 1.0, %v2870_v40  ;;  %v1304_v40 = vld [vmem:[%s3677_s4 + $0x40] sm:$0xff] }
0x11f8   :  { %2871 = vrcp.f32 %v1115_v41 }
0x1202   :  { %v2872_v42 = vpop.eup %2871 }
0x1203   :  { %v1124_v46 = vmul.f32 %v2872_v42, %v1122_v45  ;;  %v1310_v45 = vld [vmem:[%s3677_s4 + $0x70] sm:$0xff] }
0x1266   :  { %v1127_v43 = vpop.permute.xlu0 %1126 }
0x1267   :  { %v1129_v44 = vmul.f32 %v2872_v42, %v1127_v43  ;;  %v1308_v43 = vld [vmem:[%s3677_s4 + $0x60] sm:$0xff] }
0x1269   :  { %1131 = vrot.lane.b32.xlu0 %v1129_v44, %s3073_s19 }
0x12db   :  { %v1132_v47 = vpop.permute.xlu0 %1131 }
0x12dc   :  { %v1134_v48 = vadd.f32 %v1132_v47, %v1124_v46  ;;  %v2728_v46 = vpack.c.bf16 %v1310_v45, %v1308_v43 }
0x12de   :  { %2873 = vtanh.f32 %v1134_v48 }
0x12e8   :  { %v2874_v49 = vpop.eup %2873 }
0x12e9   :  { %1137 = vrot.lane.b32.xlu1 %v2874_v49, %s3072_s3  ;;  %v1416_v49 = vld [vmem:[#allocation11 + $0x8] sm:$0xff] }
0x12ed   :  { %1142 = vrot.lane.b32.xlu1 %v1134_v48, %s3074_s20 }
0x135b   :  { %v1138_v50 = vpop.permute.xlu1 %1137 }
0x135c   :  { %v1140_v51 = vmul.f32 %v2872_v42, %v1138_v50  ;;  %v1311_v42 = vld [vmem:[%s3677_s4 + $0x78] sm:$0xff]  ;;  %v1418_v50 = vld [vmem:[#allocation11 + $0x18] sm:$0xff] }
0x135e   :  { %1147 = vrot.lane.b32.xlu0 %v1140_v51, %s3073_s19 }
0x135f   :  { %v1143_v52 = vpop.permute.xlu1 %1142 }
0x1360   :  { %1145 = vst.msk [vmem:[#allocation5] sm:$0xf] %vm195_vm0, %v1143_v52 }
0x1367   :  { %v1257_v53 = vld [vmem:[#allocation5] sm:$0xf] }
0x1368   :  { %1259 = vrot.lane.b32.xlu1 %v1257_v53, %s3073_s19  ;;  %v3461_v53 = vpack.c.bf16 %v1418_v50, %v1416_v49 }
0x136a   :  { %2731 = vmatprep.subr.bf16.mxu0 %v3461_v53 }
0x13d0   :  { %v3379_v55 = vpop.permute.xlu0 %1147 }
0x13d1   :  { %1150 = vst.msk [vmem:[#allocation4] sm:$0xf] %vm195_vm0, %v3379_v55 }
0x13d8   :  { %v1156_v57 = vld [vmem:[#allocation4] sm:$0xf] }
0x13d9   :  { %2596 = vmatmul.mubr.msk.f32.vlgmr.msra.gmra.mrb[12].mxu0 %vm207_vm2, %v1156_v57  ;;  %v1417_v57 = vld [vmem:[#allocation11 + $0x10] sm:$0xff] }
0x13da   :  { %1490 = vmatprep.mubr.f32.mxu0 %v3071_v0  ;;  %v1260_v11 = vpop.permute.xlu1 %1259 }
0x14ac   :  { %v1234_v63 = vpop.f32.mrb[12].mxu0 }
0x14ad   :  { %v1236_v2 = vpop.f32.mrb[13].mxu0 }
0x14ae   :  { %v1248_v4 = vsel %vm88_vm3, %v1234_v63, %v1236_v2  ;;  %v3466_v63 = vpack.c.bf16 %v1422_v61, %v1420_v60  ;;  %v1421_v2 = vld [vmem:[#allocation11 + $0x30] sm:$0xff] }
0x14af   :  { %v1249_v5 = vadd.f32 %v1248_v4, %v1247_v3  ;;  %v3473_v3 = vpack.c.bf16 %v1421_v2, %v1419_v1 }
0x14b1   :  { %2875 = vtanh.f32 %v1249_v5  ;;  %v2597_v15 = vmul.f32 -1.442695, %v1249_v5 }
0x14b3   :  { %2877 = vpow2.f32 %v2597_v15 }
0x14bb   :  { %v2876_v6 = vpop.eup %2875 }
0x14bc   :  { %1264 = vrot.lane.b32.xlu0 %v2876_v6, %s3072_s3 }
0x14bd   :  { %v2878_v7 = vpop.eup %2877 }
0x14be   :  { %v1253_v16 = vadd.f32 1.0, %v2878_v7 }
0x14c0   :  { %2879 = vrcp.f32 %v1253_v16 }
0x14ca   :  { %v2880_v20 = vpop.eup %2879 }
0x14cb   :  { %v1262_v10 = vmul.f32 %v2880_v20, %v1260_v11 }
0x152e   :  { %v1265_v8 = vpop.permute.xlu0 %1264 }
0x152f   :  { %v1267_v9 = vmul.f32 %v2880_v20, %v1265_v8 }
0x1531   :  { %1269 = vrot.lane.b32.xlu0 %v1267_v9, %s3073_s19 }
0x1535   :  { %879 = vrot.lane.b32.xlu0 %v3335_v54, %s3072_s3 }
0x1539   :  { %1152 = vrot.lane.b32.xlu0 %v1140_v51, %s3072_s3  ;;  %v1415_v51 = vld [vmem:[#allocation11] sm:$0xff] }
0x153a   :  { %v3464_v62 = vpack.c.bf16 %v1417_v57, %v1415_v51 }
0x153c   :  { %2733 = vmatpush1.bf16.msra.mxu0 %v3464_v62 }
0x153d   :  { %332 = vrot.lane.b32.xlu0 %v3252_v59, %s3072_s3  ;;  %v1297_v59 = vld [vmem:[%s3677_s4 + $0x8] sm:$0xff]  ;;  %2735 = vmatprep.subr.bf16.mxu0 %v3466_v63 }
0x1540   :  { %2737 = vmatpush1.bf16.msra.mxu0 %v3473_v3 }
0x1541   :  { %606 = vrot.lane.b32.xlu0 %v3294_v56, %s3072_s3  ;;  %v1299_v56 = vld [vmem:[%s3677_s4 + $0x18] sm:$0xff]  ;;  %2739 = vmatprep.subr.bf16.mxu0 %v3461_v53 }
0x1542   :  { %v2714_v21 = vpack.c.bf16 %v1299_v56, %v1297_v59 }
0x1544   :  { %2715 = vmatprep.subr.bf16.mxu1 %v2714_v21 }
0x1545   :  { %2717 = vmatpush1.bf16.msra.mxu1 %v2716_v32 }
0x1546   :  { %2719 = vmatprep.subr.bf16.mxu1 %v2718_v33 }
0x1549   :  { %2721 = vmatpush1.bf16.msra.mxu1 %v2720_v36 }
0x15a3   :  { %v1270_v12 = vpop.permute.xlu0 %1269 }
0x15a4   :  { %v3397_v13 = vadd.f32 %v1270_v12, %v1262_v10 }
0x15a6   :  { %2881 = vtanh.f32 %v3397_v13 }
0x15a7   :  { %v880_v14 = vpop.permute.xlu0 %879 }
0x15a8   :  { %882 = vst.msk [vmem:[#allocation3 + $0x4] sm:$0xc] %vm335_vm6, %v880_v14 }
0x15ab   :  { %v1153_v54 = vpop.permute.xlu0 %1152 }
0x15ac   :  { %1155 = vst.msk [vmem:[#allocation3] sm:$0xc] %vm335_vm6, %v1153_v54 }
0x15af   :  { %v333_v18 = vpop.permute.xlu0 %332 }
0x15b0   :  { %v2882_v31 = vpop.eup %2881  ;;  %336 = vst.msk [vmem:[#allocation3 + $0xc] sm:$0xc] %vm335_vm6, %v333_v18 }
0x15b1   :  { %1275 = vrot.lane.b32.xlu1 %v2882_v31, %s3072_s3 }
0x15b3   :  { %v607_v37 = vpop.permute.xlu0 %606 }
0x15b4   :  { %609 = vst.msk [vmem:[#allocation3 + $0x8] sm:$0xc] %vm335_vm6, %v607_v37 }
0x15b5   :  { %1016 = vst.msk [vmem:[#allocation3 + $0xa] sm:$0x3] %vm330_vm5, %v3363_v25  ;;  %1017 = vrot.lane.b32.xlu1 %v3357_v19, %s3072_s3  ;;  %v2722_v25 = vpack.c.bf16 %v1307_v39, %v1305_v38  ;;  %v1306_v19 = vld [vmem:[%s3677_s4 + $0x50] sm:$0xff] }
0x15b6   :  { %v2724_v41 = vpack.c.bf16 %v1306_v19, %v1304_v40 }
0x15b7   :  { %2723 = vmatprep.subr.bf16.mxu1 %v2722_v25 }
0x15b8   :  { %2725 = vmatpush1.bf16.msra.mxu1 %v2724_v41 }
0x15b9   :  { %471 = vrot.lane.b32.xlu1 %v3273_v30, %s3072_s3  ;;  %v1309_v30 = vld [vmem:[%s3677_s4 + $0x68] sm:$0xff] }
0x15ba   :  { %v2726_v44 = vpack.c.bf16 %v1311_v42, %v1309_v30 }
0x15bc   :  { %2727 = vmatprep.subr.bf16.mxu1 %v2726_v44 }
0x15bd   :  { %2729 = vmatpush1.bf16.msra.mxu1 %v2728_v46 }
0x15be   :  { %2747 = vmatprep.subr.bf16.mxu1 %v3461_v53 }
0x1623   :  { %v1276_v47 = vpop.permute.xlu1 %1275 }
0x1624   :  { %v1278_v48 = vmul.f32 %v2880_v20, %v1276_v47  ;;  %v1312_v20 = vld [vmem:[%s3679_s6] sm:$0x3] }
0x1625   :  { %v1317_v8 = vrot.slane %v1312_v20, %v99_v24  ;;  %v1321_v9 = vrot.slane %v1312_v20, %v103_v26 }
0x1626   :  { %1285 = vrot.lane.b32.xlu0 %v1278_v48, %s3073_s19  ;;  %1290 = vrot.lane.b32.xlu1 %v1278_v48, %s3072_s3 }
0x1627   :  { %v1018_v52 = vpop.permute.xlu1 %1017 }
0x1628   :  { %1020 = vst.msk [vmem:[#allocation3 + $0x2] sm:$0xc] %vm335_vm6, %v1018_v52 }
0x162a   :  { %744 = vrot.lane.b32.xlu1 %v3315_v27, %s3072_s3 }
0x162b   :  { %v472_v4 = vpop.permute.xlu1 %471 }
0x162c   :  { %474 = vst.msk [vmem:[#allocation3 + $0xa] sm:$0xc] %vm335_vm6, %v472_v4 }
0x162d   :  { %1151 = vst.msk [vmem:[#allocation3 + $0xc] sm:$0x3] %vm330_vm5, %v3379_v55 }
0x162e   :  { %1280 = vrot.lane.b32.xlu1 %v3397_v13, %s3074_s20 }
0x1698   :  { %v1286_v27 = vpop.permute.xlu0 %1285  ;;  %v1291_v5 = vpop.permute.xlu1 %1290 }
0x1699   :  { %1288 = vst.msk [vmem:[#allocation4] sm:$0xf] %vm195_vm0, %v1286_v27 }
0x169a   :  { %1289 = vst.msk [vmem:[#allocation3 + $0xe] sm:$0x3] %vm330_vm5, %v1286_v27 }
0x169b   :  { %1293 = vst.msk [vmem:[#allocation3 - $0x2] sm:$0xc] %vm335_vm6, %v1291_v5 }
0x169c   :  { %1412 = vst.msk [vmem:[#allocation4] sm:$0xf] %vm195_vm0, %v3071_v0  ;;  %v745_v6 = vpop.permute.xlu1 %744 }
0x169d   :  { %747 = vst.msk [vmem:[#allocation3 + $0x6] sm:$0xc] %vm335_vm6, %v745_v6 }
0x169e   :  { %878 = vst.msk [vmem:[#allocation3 + $0x8] sm:$0x3] %vm330_vm5, %v3341_v58 }
0x16a0   :  { %v1281_v55 = vpop.permute.xlu1 %1280 }
0x16a1   :  { %1283 = vst.msk [vmem:[#allocation5] sm:$0xf] %vm195_vm0, %v1281_v55 }
0x16a2   :  { %v1294_v15 = vld [vmem:[#allocation3] sm:$0xff]  ;;  %1413 = vst.msk [vmem:[#allocation5] sm:$0xf] %vm195_vm0, %v3071_v0 }
0x16a3   :  { %2598 = vmatmul.mubr.msk.f32.vlgmr.msra.gmra.mrb[6].mxu1 %vm1324_vm7, %v1294_v15  ;;  %v1414_v7 = vld [vmem:[#allocation4] sm:$0xf] }
0x16a4   :  { %1401 = vmatprep.mubr.f32.mxu1 %v3071_v0  ;;  %2600 = vmatmul.mubr.msk.f32.vlgmr.msra.gmra.mrb[14].mxu0 %vm207_vm2, %v1414_v7 }
0x16a5   :  { %2741 = vmatpush1.bf16.msra.mxu0 %v3464_v62  ;;  %1620 = vmatprep.mubr.f32.mxu0 %v3071_v0  ;;  %v1295_v58 = vld [vmem:[#allocation3 + $0x8] sm:$0xff] }
0x16a6   :  { %2743 = vmatprep.subr.bf16.mxu0 %v3466_v63  ;;  %2749 = vmatpush1.bf16.msra.mxu1 %v3464_v62 }
0x16a7   :  { %2751 = vmatprep.subr.bf16.mxu1 %v3466_v63  ;;  %2599 = vmatmul.mubr.msk.f32.gmra.mrb[8].mxu1 %vm1324_vm7, %v1295_v58 }
0x16a8   :  { %1753 = vmatprep.mubr.f32.mxu1 %v3071_v0 }
0x16a9   :  { %2745 = vmatpush1.bf16.msra.mxu0 %v3473_v3  ;;  %v1512_v16 = vld [vmem:[#allocation5] sm:$0xf] }
0x16aa   :  { %2753 = vmatpush1.bf16.msra.mxu1 %v3473_v3  ;;  %2755 = vmatprep.subr.bf16.mxu0 %v3461_v53 }
0x16ab   :  { %2763 = vmatprep.subr.bf16.mxu1 %v3461_v53  ;;  %1514 = vrot.lane.b32.xlu1 %v1512_v16, %s3073_s19 }
0x171d   :  { %v1515_v38 = vpop.permute.xlu1 %1514 }
0x1776   :  { %v1397_v11 = vpop.f32.mrb[6].mxu1 }
0x1777   :  { %v1398_v10 = vadd.f32 %v1397_v11, %v1317_v8  ;;  %v1399_v12 = vpop.f32.mrb[7].mxu1  ;;  %v1492_v13 = vpop.f32.mrb[14].mxu0 }
0x1778   :  { %v1400_v14 = vadd.f32 %v1399_v12, %v1321_v9  ;;  %v1494_v54 = vpop.f32.mrb[15].mxu0 }
0x1779   :  { %1408 = vst [vmem:[#allocation2] sm:$0xff] %v1398_v10  ;;  %v1503_v59 = vsel %vm88_vm3, %v1492_v13, %v1494_v54 }
0x177a   :  { %1409 = vst [vmem:[#allocation2 + $0x8] sm:$0xff] %v1400_v14  ;;  %v1403_v56 = vpop.f32.mrb[8].mxu1 }
0x177b   :  { %v1404_v17 = vadd.f32 %v1403_v56, %v1317_v8  ;;  %v1405_v18 = vpop.f32.mrb[9].mxu1 }
0x177c   :  { %v1406_v21 = vadd.f32 %v1405_v18, %v1321_v9 }
0x177d   :  { %1410 = vst [vmem:[#allocation2 + $0x10] sm:$0xff] %v1404_v17 }
0x177e   :  { %1411 = vst [vmem:[#allocation2 + $0x18] sm:$0xff] %v1406_v21 }
0x1780   :  { %v1497_v26 = vld [vmem:[#allocation2] sm:$0x3]  ;;  %v1627_v47 = vld [vmem:[#allocation2] sm:$0xc]  ;;  %v1760_v13 = vld [vmem:[#allocation2] sm:$0x30] }
0x1781   :  { %v1630_v50 = vrot.slane %v1627_v47, 2 }
0x1785   :  { %v1498_v24 = vld [vmem:[#allocation2 + $0x18] sm:$0xc0]  ;;  %v1628_v46 = vld [vmem:[#allocation2 + $0x18] sm:$0x30]  ;;  %v1761_v14 = vld [vmem:[#allocation2 + $0x18] sm:$0xc] }
0x1786   :  { %v1500_v22 = vrot.slane %v1498_v24, 4  ;;  %v1633_v48 = vrot.slane %v1628_v46, 2 }
0x1788   :  { %v1502_v28 = vsel %vm287_vm4, %v1497_v26, %v1500_v22  ;;  %v1635_v52 = vsel %vm287_vm4, %v1630_v50, %v1633_v48 }
0x1789   :  { %v1504_v29 = vadd.f32 %v1503_v59, %v1502_v28  ;;  %v1763_v59 = vrot.slane %v1760_v13, 4 }
0x178b   :  { %2883 = vtanh.f32 %v1504_v29  ;;  %v2601_v32 = vmul.f32 -1.442695, %v1504_v29  ;;  %v1765_v17 = vsel %vm287_vm4, %v1763_v59, %v1761_v14 }
0x178d   :  { %2885 = vpow2.f32 %v2601_v32 }
0x1795   :  { %v2884_v31 = vpop.eup %2883 }
0x1796   :  { %1519 = vrot.lane.b32.xlu0 %v2884_v31, %s3072_s3 }
0x1797   :  { %v2886_v33 = vpop.eup %2885 }
0x1798   :  { %v1508_v34 = vadd.f32 1.0, %v2886_v33 }
0x179a   :  { %2887 = vrcp.f32 %v1508_v34 }
0x17a4   :  { %v2888_v35 = vpop.eup %2887 }
0x17a5   :  { %v1517_v39 = vmul.f32 %v2888_v35, %v1515_v38 }
0x1808   :  { %v1520_v36 = vpop.permute.xlu0 %1519 }
0x1809   :  { %v1522_v37 = vmul.f32 %v2888_v35, %v1520_v36 }
0x180b   :  { %1524 = vrot.lane.b32.xlu0 %v1522_v37, %s3073_s19 }
0x187d   :  { %v1525_v40 = vpop.permute.xlu0 %1524 }
0x187e   :  { %v1527_v25 = vadd.f32 %v1525_v40, %v1517_v39 }
0x1880   :  { %2889 = vtanh.f32 %v1527_v25 }
0x188a   :  { %v2890_v19 = vpop.eup %2889 }
0x188b   :  { %1530 = vrot.lane.b32.xlu1 %v2890_v19, %s3072_s3 }
0x188f   :  { %1535 = vrot.lane.b32.xlu1 %v1527_v25, %s3074_s20 }
0x18fd   :  { %v1531_v41 = vpop.permute.xlu1 %1530 }
0x18fe   :  { %v1533_v30 = vmul.f32 %v2888_v35, %v1531_v41 }
0x1900   :  { %1540 = vrot.lane.b32.xlu0 %v1533_v30, %s3073_s19  ;;  %v1891_v30 = vld [vmem:[#allocation2 + $0x18] sm:$0x3] }
0x1901   :  { %v1536_v42 = vpop.permute.xlu1 %1535 }
0x1902   :  { %1538 = vst.msk [vmem:[#allocation5] sm:$0xf] %vm195_vm0, %v1536_v42  ;;  %v1890_v42 = vld [vmem:[#allocation2] sm:$0xc0] }
0x1909   :  { %v1645_v43 = vld [vmem:[#allocation5] sm:$0xf] }
0x190a   :  { %1647 = vrot.lane.b32.xlu1 %v1645_v43, %s3073_s19  ;;  %v1896_v43 = vrot.slane %v1891_v30, 6 }
0x1972   :  { %v1541_v44 = vpop.permute.xlu0 %1540 }
0x1973   :  { %1543 = vst.msk [vmem:[#allocation4] sm:$0xf] %vm195_vm0, %v1541_v44 }
0x197a   :  { %v1544_v45 = vld [vmem:[#allocation4] sm:$0xf] }
0x197b   :  { %2602 = vmatmul.mubr.msk.f32.vlgmr.msra.gmra.mrb[16].mxu0 %vm207_vm2, %v1544_v45  ;;  %v1893_v45 = vrot.slane %v1890_v42, 6 }
0x197c   :  { %2757 = vmatpush1.bf16.msra.mxu0 %v3464_v62  ;;  %1883 = vmatprep.mubr.f32.mxu0 %v3071_v0  ;;  %v1648_v55 = vpop.permute.xlu1 %1647 }
0x197d   :  { %2759 = vmatprep.subr.bf16.mxu0 %v3466_v63  ;;  %v1898_v47 = vsel %vm287_vm4, %v1893_v45, %v1896_v43 }
0x1980   :  { %2761 = vmatpush1.bf16.msra.mxu0 %v3473_v3 }
0x1981   :  { %2771 = vmatprep.subr.bf16.mxu0 %v3461_v53 }
0x1a4e   :  { %v1622_v49 = vpop.f32.mrb[16].mxu0 }
0x1a4f   :  { %v1624_v51 = vpop.f32.mrb[17].mxu0 }
0x1a50   :  { %v1636_v57 = vsel %vm88_vm3, %v1622_v49, %v1624_v51 }
0x1a51   :  { %v1637_v60 = vadd.f32 %v1636_v57, %v1635_v52 }
0x1a53   :  { %2891 = vtanh.f32 %v1637_v60  ;;  %v2603_v1 = vmul.f32 -1.442695, %v1637_v60 }
0x1a55   :  { %2893 = vpow2.f32 %v2603_v1 }
0x1a5d   :  { %v2892_v61 = vpop.eup %2891 }
0x1a5e   :  { %1652 = vrot.lane.b32.xlu0 %v2892_v61, %s3072_s3 }
0x1a5f   :  { %v2894_v2 = vpop.eup %2893 }
0x1a60   :  { %v1641_v4 = vadd.f32 1.0, %v2894_v2 }
0x1a62   :  { %2895 = vrcp.f32 %v1641_v4 }
0x1a6c   :  { %v2896_v27 = vpop.eup %2895 }
0x1a6d   :  { %v1650_v15 = vmul.f32 %v2896_v27, %v1648_v55 }
0x1ad0   :  { %v1653_v5 = vpop.permute.xlu0 %1652 }
0x1ad1   :  { %v1655_v6 = vmul.f32 %v2896_v27, %v1653_v5 }
0x1ad3   :  { %1657 = vrot.lane.b32.xlu0 %v1655_v6, %s3073_s19 }
0x1b45   :  { %v1658_v7 = vpop.permute.xlu0 %1657 }
0x1b46   :  { %v1660_v58 = vadd.f32 %v1658_v7, %v1650_v15 }
0x1b48   :  { %2897 = vtanh.f32 %v1660_v58 }
0x1b52   :  { %v2898_v16 = vpop.eup %2897 }
0x1b53   :  { %1663 = vrot.lane.b32.xlu1 %v2898_v16, %s3072_s3 }
0x1b57   :  { %1668 = vrot.lane.b32.xlu1 %v1660_v58, %s3074_s20 }
0x1bc5   :  { %v1664_v20 = vpop.permute.xlu1 %1663 }
0x1bc6   :  { %v1666_v8 = vmul.f32 %v2896_v27, %v1664_v20  ;;  %v2024_v20 = vld [vmem:[#allocation2 + $0x8] sm:$0xc0] }
0x1bc8   :  { %1673 = vrot.lane.b32.xlu0 %v1666_v8, %s3073_s19  ;;  %v2023_v8 = vld [vmem:[#allocation2 + $0x10] sm:$0x3] }
0x1bc9   :  { %v1669_v9 = vpop.permute.xlu1 %1668 }
0x1bca   :  { %1671 = vst.msk [vmem:[#allocation5] sm:$0xf] %vm195_vm0, %v1669_v9 }
0x1bd1   :  { %v1775_v11 = vld [vmem:[#allocation5] sm:$0xf] }
0x1bd2   :  { %1777 = vrot.lane.b32.xlu1 %v1775_v11, %s3073_s19  ;;  %v2026_v11 = vrot.slane %v2024_v20, 4 }
0x1c3a   :  { %v1674_v10 = vpop.permute.xlu0 %1673 }
0x1c3b   :  { %1676 = vst.msk [vmem:[#allocation4] sm:$0xf] %vm195_vm0, %v1674_v10 }
0x1c42   :  { %v1677_v12 = vld [vmem:[#allocation4] sm:$0xf] }
0x1c43   :  { %2604 = vmatmul.mubr.msk.f32.vlgmr.msra.gmra.mrb[10].mxu1 %vm207_vm2, %v1677_v12  ;;  %v2028_v12 = vsel %vm287_vm4, %v2023_v8, %v2026_v11 }
0x1c44   :  { %2765 = vmatpush1.bf16.msra.mxu1 %v3464_v62  ;;  %2016 = vmatprep.mubr.f32.mxu1 %v3071_v0  ;;  %v1778_v33 = vpop.permute.xlu1 %1777 }
0x1c45   :  { %2767 = vmatprep.subr.bf16.mxu1 %v3466_v63 }
0x1c48   :  { %2769 = vmatpush1.bf16.msra.mxu1 %v3473_v3 }
0x1c49   :  { %2779 = vmatprep.subr.bf16.mxu1 %v3461_v53 }
0x1d16   :  { %v1755_v54 = vpop.f32.mrb[10].mxu1 }
0x1d17   :  { %v1757_v56 = vpop.f32.mrb[11].mxu1 }
0x1d18   :  { %v1766_v18 = vsel %vm88_vm3, %v1755_v54, %v1757_v56 }
0x1d19   :  { %v1767_v21 = vadd.f32 %v1766_v18, %v1765_v17 }
0x1d1b   :  { %2899 = vtanh.f32 %v1767_v21  ;;  %v2605_v22 = vmul.f32 -1.442695, %v1767_v21 }
0x1d1d   :  { %2901 = vpow2.f32 %v2605_v22 }
0x1d25   :  { %v2900_v24 = vpop.eup %2899 }
0x1d26   :  { %1782 = vrot.lane.b32.xlu0 %v2900_v24, %s3072_s3 }
0x1d27   :  { %v2902_v26 = vpop.eup %2901 }
0x1d28   :  { %v1771_v28 = vadd.f32 1.0, %v2902_v26 }
0x1d2a   :  { %2903 = vrcp.f32 %v1771_v28 }
0x1d34   :  { %v2904_v29 = vpop.eup %2903 }
0x1d35   :  { %v1780_v34 = vmul.f32 %v2904_v29, %v1778_v33 }
0x1d98   :  { %v1783_v31 = vpop.permute.xlu0 %1782 }
0x1d99   :  { %v1785_v32 = vmul.f32 %v2904_v29, %v1783_v31 }
0x1d9b   :  { %1787 = vrot.lane.b32.xlu0 %v1785_v32, %s3073_s19 }
0x1e0d   :  { %v1788_v35 = vpop.permute.xlu0 %1787 }
0x1e0e   :  { %v1790_v36 = vadd.f32 %v1788_v35, %v1780_v34 }
0x1e10   :  { %2905 = vtanh.f32 %v1790_v36 }
0x1e1a   :  { %v2906_v37 = vpop.eup %2905 }
0x1e1b   :  { %1793 = vrot.lane.b32.xlu1 %v2906_v37, %s3072_s3 }
0x1e1f   :  { %1798 = vrot.lane.b32.xlu1 %v1790_v36, %s3074_s20 }
0x1e8d   :  { %v1794_v38 = vpop.permute.xlu1 %1793 }
0x1e8e   :  { %v1796_v39 = vmul.f32 %v2904_v29, %v1794_v38  ;;  %v2153_v38 = vld [vmem:[#allocation2 + $0x10] sm:$0xc] }
0x1e90   :  { %1803 = vrot.lane.b32.xlu0 %v1796_v39, %s3073_s19  ;;  %v2154_v39 = vld [vmem:[#allocation2 + $0x8] sm:$0x30] }
0x1e91   :  { %v1799_v40 = vpop.permute.xlu1 %1798 }
0x1e92   :  { %1801 = vst.msk [vmem:[#allocation5] sm:$0xf] %vm195_vm0, %v1799_v40  ;;  %v2156_v40 = vrot.slane %v2153_v38, 2 }
0x1e99   :  { %v1908_v25 = vld [vmem:[#allocation5] sm:$0xf] }
0x1e9a   :  { %1910 = vrot.lane.b32.xlu1 %v1908_v25, %s3073_s19 }
0x1f02   :  { %v1804_v19 = vpop.permute.xlu0 %1803 }
0x1f03   :  { %1806 = vst.msk [vmem:[#allocation4] sm:$0xf] %vm195_vm0, %v1804_v19  ;;  %v2159_v19 = vrot.slane %v2154_v39, 2 }
0x1f05   :  { %v2161_v30 = vsel %vm287_vm4, %v2156_v40, %v2159_v19 }
0x1f0a   :  { %v1807_v41 = vld [vmem:[#allocation4] sm:$0xf] }
0x1f0b   :  { %2606 = vmatmul.mubr.msk.f32.vlgmr.msra.gmra.mrb[18].mxu0 %vm207_vm2, %v1807_v41 }
0x1f0c   :  { %2773 = vmatpush1.bf16.msra.mxu0 %v3464_v62  ;;  %2146 = vmatprep.mubr.f32.mxu0 %v3071_v0  ;;  %v1911_v1 = vpop.permute.xlu1 %1910 }
0x1f0d   :  { %2775 = vmatprep.subr.bf16.mxu0 %v3466_v63 }
0x1f10   :  { %2777 = vmatpush1.bf16.msra.mxu0 %v3473_v3 }
0x1f11   :  { %2787 = vmatprep.subr.bf16.mxu0 %v3461_v53 }
0x1fde   :  { %v1885_v44 = vpop.f32.mrb[18].mxu0 }
0x1fdf   :  { %v1887_v46 = vpop.f32.mrb[19].mxu0 }
0x1fe0   :  { %v1899_v48 = vsel %vm88_vm3, %v1885_v44, %v1887_v46 }
0x1fe1   :  { %v1900_v49 = vadd.f32 %v1899_v48, %v1898_v47 }
0x1fe3   :  { %2907 = vtanh.f32 %v1900_v49  ;;  %v2607_v51 = vmul.f32 -1.442695, %v1900_v49 }
0x1fe5   :  { %2909 = vpow2.f32 %v2607_v51 }
0x1fed   :  { %v2908_v50 = vpop.eup %2907 }
0x1fee   :  { %1915 = vrot.lane.b32.xlu0 %v2908_v50, %s3072_s3 }
0x1fef   :  { %v2910_v52 = vpop.eup %2909 }
0x1ff0   :  { %v1904_v53 = vadd.f32 1.0, %v2910_v52 }
0x1ff2   :  { %2911 = vrcp.f32 %v1904_v53 }
0x1ffc   :  { %v2912_v57 = vpop.eup %2911 }
0x1ffd   :  { %v1913_v2 = vmul.f32 %v2912_v57, %v1911_v1 }
0x2060   :  { %v1916_v60 = vpop.permute.xlu0 %1915 }
0x2061   :  { %v1918_v61 = vmul.f32 %v2912_v57, %v1916_v60 }
0x2063   :  { %1920 = vrot.lane.b32.xlu0 %v1918_v61, %s3073_s19 }
0x20d5   :  { %v1921_v4 = vpop.permute.xlu0 %1920 }
0x20d6   :  { %v1923_v27 = vadd.f32 %v1921_v4, %v1913_v2  ;;  %v2286_v4 = vld [vmem:[#allocation2 + $0x10] sm:$0x30] }
0x20d8   :  { %2913 = vtanh.f32 %v1923_v27 }
0x20e2   :  { %v2914_v5 = vpop.eup %2913 }
0x20e3   :  { %1926 = vrot.lane.b32.xlu1 %v2914_v5, %s3072_s3 }
0x20e7   :  { %1931 = vrot.lane.b32.xlu1 %v1923_v27, %s3074_s20  ;;  %v2289_v27 = vrot.slane %v2286_v4, 4 }
0x2155   :  { %v1927_v6 = vpop.permute.xlu1 %1926 }
0x2156   :  { %v1929_v55 = vmul.f32 %v2912_v57, %v1927_v6 }
0x2158   :  { %1936 = vrot.lane.b32.xlu0 %v1929_v55, %s3073_s19  ;;  %v2287_v55 = vld [vmem:[#allocation2 + $0x8] sm:$0xc] }
0x2159   :  { %v1932_v15 = vpop.permute.xlu1 %1931 }
0x215a   :  { %1934 = vst.msk [vmem:[#allocation5] sm:$0xf] %vm195_vm0, %v1932_v15  ;;  %v2291_v15 = vsel %vm287_vm4, %v2289_v27, %v2287_v55 }
0x2161   :  { %v2038_v7 = vld [vmem:[#allocation5] sm:$0xf] }
0x2162   :  { %2040 = vrot.lane.b32.xlu1 %v2038_v7, %s3073_s19 }
0x21ca   :  { %v1937_v58 = vpop.permute.xlu0 %1936 }
0x21cb   :  { %1939 = vst.msk [vmem:[#allocation4] sm:$0xf] %vm195_vm0, %v1937_v58 }
0x21d2   :  { %v1940_v16 = vld [vmem:[#allocation4] sm:$0xf] }
0x21d3   :  { %2608 = vmatmul.mubr.msk.f32.vlgmr.msra.gmra.mrb[12].mxu1 %vm207_vm2, %v1940_v16 }
0x21d4   :  { %2781 = vmatpush1.bf16.msra.mxu1 %v3464_v62  ;;  %2279 = vmatprep.mubr.f32.mxu1 %v3071_v0  ;;  %v2041_v22 = vpop.permute.xlu1 %2040 }
0x21d5   :  { %2783 = vmatprep.subr.bf16.mxu1 %v3466_v63 }
0x21d8   :  { %2785 = vmatpush1.bf16.msra.mxu1 %v3473_v3 }
0x22a6   :  { %v2018_v9 = vpop.f32.mrb[12].mxu1 }
0x22a7   :  { %v2020_v10 = vpop.f32.mrb[13].mxu1 }
0x22a8   :  { %v2029_v13 = vsel %vm88_vm3, %v2018_v9, %v2020_v10 }
0x22a9   :  { %v2030_v14 = vadd.f32 %v2029_v13, %v2028_v12 }
0x22ab   :  { %2915 = vtanh.f32 %v2030_v14  ;;  %v2609_v59 = vmul.f32 -1.442695, %v2030_v14 }
0x22ad   :  { %2917 = vpow2.f32 %v2609_v59 }
0x22b5   :  { %v2916_v54 = vpop.eup %2915 }
0x22b6   :  { %2045 = vrot.lane.b32.xlu0 %v2916_v54, %s3072_s3 }
0x22b7   :  { %v2918_v56 = vpop.eup %2917 }
0x22b8   :  { %v2034_v17 = vadd.f32 1.0, %v2918_v56 }
0x22ba   :  { %2919 = vrcp.f32 %v2034_v17 }
0x22c4   :  { %v2920_v18 = vpop.eup %2919 }
0x22c5   :  { %v2043_v26 = vmul.f32 %v2920_v18, %v2041_v22 }
0x2328   :  { %v2046_v21 = vpop.permute.xlu0 %2045 }
0x2329   :  { %v2048_v24 = vmul.f32 %v2920_v18, %v2046_v21 }
0x232b   :  { %2050 = vrot.lane.b32.xlu0 %v2048_v24, %s3073_s19 }
0x239d   :  { %v2051_v28 = vpop.permute.xlu0 %2050 }
0x239e   :  { %v2053_v29 = vadd.f32 %v2051_v28, %v2043_v26  ;;  %v2416_v28 = vld [vmem:[#allocation2 + $0x10] sm:$0xc0] }
0x23a0   :  { %2921 = vtanh.f32 %v2053_v29 }
0x23aa   :  { %v2922_v31 = vpop.eup %2921 }
0x23ab   :  { %2056 = vrot.lane.b32.xlu1 %v2922_v31, %s3072_s3  ;;  %v2419_v31 = vrot.slane %v2416_v28, 6 }
0x23af   :  { %2061 = vrot.lane.b32.xlu1 %v2053_v29, %s3074_s20  ;;  %v2417_v29 = vld [vmem:[#allocation2 + $0x8] sm:$0x3] }
0x241d   :  { %v2057_v32 = vpop.permute.xlu1 %2056 }
0x241e   :  { %v2059_v33 = vmul.f32 %v2920_v18, %v2057_v32 }
0x2420   :  { %2066 = vrot.lane.b32.xlu0 %v2059_v33, %s3073_s19  ;;  %v2422_v33 = vrot.slane %v2417_v29, 6 }
0x2421   :  { %v2062_v34 = vpop.permute.xlu1 %2061 }
0x2422   :  { %2064 = vst.msk [vmem:[#allocation5] sm:$0xf] %vm195_vm0, %v2062_v34 }
0x2429   :  { %v2171_v35 = vld [vmem:[#allocation5] sm:$0xf] }
0x242a   :  { %2173 = vrot.lane.b32.xlu1 %v2171_v35, %s3073_s19  ;;  %v2424_v35 = vsel %vm287_vm4, %v2419_v31, %v2422_v33 }
0x2492   :  { %v2067_v36 = vpop.permute.xlu0 %2066 }
0x2493   :  { %2069 = vst.msk [vmem:[#allocation4] sm:$0xf] %vm195_vm0, %v2067_v36 }
0x249a   :  { %v2070_v37 = vld [vmem:[#allocation4] sm:$0xf] }
0x249b   :  { %2610 = vmatmul.mubr.msk.f32.vlgmr.msra.gmra.mrb[20].mxu0 %vm207_vm2, %v2070_v37 }
0x249c   :  { %2789 = vmatpush1.bf16.msra.mxu0 %v3464_v62  ;;  %2409 = vmatprep.mubr.f32.mxu0 %v3071_v0  ;;  %v2174_v48 = vpop.permute.xlu1 %2173 }
0x249d   :  { %2791 = vmatprep.subr.bf16.mxu0 %v3466_v63 }
0x24a0   :  { %2793 = vmatpush1.bf16.msra.mxu0 %v3473_v3 }
0x256e   :  { %v2148_v25 = vpop.f32.mrb[20].mxu0 }
0x256f   :  { %v2150_v41 = vpop.f32.mrb[21].mxu0 }
0x2570   :  { %v2162_v42 = vsel %vm88_vm3, %v2148_v25, %v2150_v41 }
0x2571   :  { %v2163_v43 = vadd.f32 %v2162_v42, %v2161_v30 }
0x2573   :  { %2923 = vtanh.f32 %v2163_v43  ;;  %v2611_v44 = vmul.f32 -1.442695, %v2163_v43 }
0x2575   :  { %2925 = vpow2.f32 %v2611_v44 }
0x257d   :  { %v2924_v62 = vpop.eup %2923 }
0x257e   :  { %2178 = vrot.lane.b32.xlu0 %v2924_v62, %s3072_s3 }
0x257f   :  { %v2926_v63 = vpop.eup %2925 }
0x2580   :  { %v2167_v3 = vadd.f32 1.0, %v2926_v63 }
0x2582   :  { %2927 = vrcp.f32 %v2167_v3  ;;  %v2473_v3 = vld [vmem:[%s3680_s7] sm:$0xff] }
0x258c   :  { %v2928_v45 = vpop.eup %2927 }
0x258d   :  { %v2176_v49 = vmul.f32 %v2928_v45, %v2174_v48  ;;  %v3075_v48 = vmov 0.0|0.0  }
0x258e   :  { %2794 = vmatprep.subr.bf16.mxu1 %v3075_v48 }
0x25f0   :  { %v2179_v46 = vpop.permute.xlu0 %2178 }
0x25f1   :  { %v2181_v47 = vmul.f32 %v2928_v45, %v2179_v46  ;;  %v2475_v46 = vld [vmem:[%s3680_s7 + $0x10] sm:$0xff] }
0x25f3   :  { %2183 = vrot.lane.b32.xlu0 %v2181_v47, %s3073_s19 }
0x2665   :  { %v2184_v50 = vpop.permute.xlu0 %2183 }
0x2666   :  { %v2186_v51 = vadd.f32 %v2184_v50, %v2176_v49  ;;  %v2476_v50 = vld [vmem:[%s3680_s7 + $0x18] sm:$0xff] }
0x2668   :  { %2929 = vtanh.f32 %v2186_v51 }
0x2672   :  { %v2930_v52 = vpop.eup %2929 }
0x2673   :  { %2189 = vrot.lane.b32.xlu1 %v2930_v52, %s3072_s3  ;;  %v2477_v52 = vld [vmem:[%s3680_s7 + $0x20] sm:$0xff] }
0x2677   :  { %2194 = vrot.lane.b32.xlu1 %v2186_v51, %s3074_s20  ;;  %v2798_v51 = vpack.c.bf16 %v2476_v50, %v2475_v46 }
0x26e5   :  { %v2190_v53 = vpop.permute.xlu1 %2189 }
0x26e6   :  { %v2192_v57 = vmul.f32 %v2928_v45, %v2190_v53  ;;  %v2474_v45 = vld [vmem:[%s3680_s7 + $0x8] sm:$0xff] }
0x26e7   :  { %v2795_v49 = vpack.c.bf16 %v2474_v45, %v2473_v3  ;;  %v2478_v53 = vld [vmem:[%s3680_s7 + $0x28] sm:$0xff] }
0x26e8   :  { %2199 = vrot.lane.b32.xlu0 %v2192_v57, %s3073_s19  ;;  %v2801_v57 = vpack.c.bf16 %v2478_v53, %v2477_v52 }
0x26e9   :  { %v2195_v60 = vpop.permute.xlu1 %2194 }
0x26ea   :  { %2197 = vst.msk [vmem:[#allocation5] sm:$0xf] %vm195_vm0, %v2195_v60  ;;  %v2479_v60 = vld [vmem:[%s3680_s7 + $0x30] sm:$0xff] }
0x26f1   :  { %v2301_v61 = vld [vmem:[#allocation5] sm:$0xf] }
0x26f2   :  { %2303 = vrot.lane.b32.xlu1 %v2301_v61, %s3073_s19  ;;  %v2480_v61 = vld [vmem:[%s3680_s7 + $0x38] sm:$0xff]  ;;  %s3077_s7 = smov [#allocation14]  }
0x275a   :  { %v2200_v1 = vpop.permute.xlu0 %2199 }
0x275b   :  { %2202 = vst.msk [vmem:[#allocation4] sm:$0xf] %vm195_vm0, %v2200_v1  ;;  %v2804_v1 = vpack.c.bf16 %v2480_v61, %v2479_v60 }
0x2762   :  { %v2203_v2 = vld [vmem:[#allocation4] sm:$0xf] }
0x2763   :  { %2612 = vmatmul.mubr.msk.f32.vlgmr.msra.gmra.mrb[14].mxu1 %vm207_vm2, %v2203_v2 }
0x2764   :  { %v2304_v13 = vpop.permute.xlu1 %2303  ;;  %2796 = vmatpush3.bf16.msra.mxu1 %v2795_v49  ;;  %2643 = vmatprep.mubr.msk.f32.mxu1 %vm3076_vm8, %v3071_v0 }
0x2765   :  { %2797 = vmatprep.subr.bf16.mxu1 %v3075_v48 }
0x2768   :  { %2799 = vmatpush3.bf16.msra.mxu1 %v2798_v51 }
0x2769   :  { %2800 = vmatprep.subr.bf16.mxu1 %v3075_v48 }
0x276c   :  { %2802 = vmatpush3.bf16.msra.mxu1 %v2801_v57 }
0x276d   :  { %2803 = vmatprep.subr.bf16.mxu1 %v3075_v48 }
0x2770   :  { %2805 = vmatpush3.bf16.msra.mxu1 %v2804_v1 }
0x2836   :  { %v2281_v5 = vpop.f32.mrb[14].mxu1 }
0x2837   :  { %v2283_v6 = vpop.f32.mrb[15].mxu1 }
0x2838   :  { %v2292_v7 = vsel %vm88_vm3, %v2281_v5, %v2283_v6 }
0x2839   :  { %v2293_v58 = vadd.f32 %v2292_v7, %v2291_v15  ;;  %v2616_v15 = vld [vmem:[#allocation12] ss:$0 sm:$0xff] }
0x283b   :  { %2931 = vtanh.f32 %v2293_v58  ;;  %v2613_v20 = vmul.f32 -1.442695, %v2293_v58 }
0x283d   :  { %2933 = vpow2.f32 %v2613_v20 }
0x2845   :  { %v2932_v16 = vpop.eup %2931 }
0x2846   :  { %2308 = vrot.lane.b32.xlu0 %v2932_v16, %s3072_s3 }
0x2847   :  { %v2934_v8 = vpop.eup %2933 }
0x2848   :  { %v2297_v9 = vadd.f32 1.0, %v2934_v8 }
0x284a   :  { %2935 = vrcp.f32 %v2297_v9 }
0x2854   :  { %v2936_v11 = vpop.eup %2935 }
0x2855   :  { %v2306_v14 = vmul.f32 %v2936_v11, %v2304_v13 }
0x28b8   :  { %v2309_v10 = vpop.permute.xlu0 %2308 }
0x28b9   :  { %v2311_v12 = vmul.f32 %v2936_v11, %v2309_v10 }
0x28bb   :  { %2313 = vrot.lane.b32.xlu0 %v2311_v12, %s3073_s19 }
0x292d   :  { %v2314_v54 = vpop.permute.xlu0 %2313 }
0x292e   :  { %v2316_v59 = vadd.f32 %v2314_v54, %v2306_v14 }
0x2930   :  { %2937 = vtanh.f32 %v2316_v59 }
0x293a   :  { %v2938_v56 = vpop.eup %2937 }
0x293b   :  { %2319 = vrot.lane.b32.xlu1 %v2938_v56, %s3072_s3 }
0x293f   :  { %2324 = vrot.lane.b32.xlu1 %v2316_v59, %s3074_s20 }
0x29ad   :  { %v2320_v17 = vpop.permute.xlu1 %2319 }
0x29ae   :  { %v2322_v18 = vmul.f32 %v2936_v11, %v2320_v17 }
0x29b0   :  { %2329 = vrot.lane.b32.xlu0 %v2322_v18, %s3073_s19 }
0x29b1   :  { %v2325_v21 = vpop.permute.xlu1 %2324 }
0x29b2   :  { %2327 = vst.msk [vmem:[#allocation5] sm:$0xf] %vm195_vm0, %v2325_v21 }
0x29b9   :  { %v2434_v24 = vld [vmem:[#allocation5] sm:$0xf] }
0x29ba   :  { %2436 = vrot.lane.b32.xlu1 %v2434_v24, %s3073_s19 }
0x2a22   :  { %v2330_v22 = vpop.permute.xlu0 %2329 }
0x2a23   :  { %2332 = vst.msk [vmem:[#allocation4] sm:$0xf] %vm195_vm0, %v2330_v22 }
0x2a2a   :  { %v2333_v26 = vld [vmem:[#allocation4] sm:$0xf] }
0x2a2b   :  { %2614 = vmatmul.mubr.msk.f32.vlgmr.msra.gmra.mrb[22].mxu0 %vm207_vm2, %v2333_v26 }
0x2a2c   :  { %v2437_v42 = vpop.permute.xlu1 %2436 }
0x2afe   :  { %v2411_v32 = vpop.f32.mrb[22].mxu0 }
0x2aff   :  { %v2413_v34 = vpop.f32.mrb[23].mxu0 }
0x2b00   :  { %v2425_v36 = vsel %vm88_vm3, %v2411_v32, %v2413_v34 }
0x2b01   :  { %v2426_v37 = vadd.f32 %v2425_v36, %v2424_v35 }
0x2b03   :  { %2939 = vtanh.f32 %v2426_v37  ;;  %v2615_v39 = vmul.f32 -1.442695, %v2426_v37 }
0x2b05   :  { %2941 = vpow2.f32 %v2615_v39 }
0x2b0d   :  { %v2940_v38 = vpop.eup %2939 }
0x2b0e   :  { %2441 = vrot.lane.b32.xlu0 %v2940_v38, %s3072_s3 }
0x2b0f   :  { %v2942_v40 = vpop.eup %2941 }
0x2b10   :  { %v2430_v25 = vadd.f32 1.0, %v2942_v40 }
0x2b12   :  { %2943 = vrcp.f32 %v2430_v25 }
0x2b1c   :  { %v2944_v19 = vpop.eup %2943 }
0x2b1d   :  { %v2439_v43 = vmul.f32 %v2944_v19, %v2437_v42 }
0x2b80   :  { %v2442_v41 = vpop.permute.xlu0 %2441 }
0x2b81   :  { %v2444_v30 = vmul.f32 %v2944_v19, %v2442_v41 }
0x2b83   :  { %2446 = vrot.lane.b32.xlu0 %v2444_v30, %s3073_s19 }
0x2bf5   :  { %v2447_v62 = vpop.permute.xlu0 %2446 }
0x2bf6   :  { %v2449_v23 = vadd.f32 %v2447_v62, %v2439_v43 }
0x2bf8   :  { %2945 = vtanh.f32 %v2449_v23 }
0x2c02   :  { %v2946_v44 = vpop.eup %2945 }
0x2c03   :  { %2452 = vrot.lane.b32.xlu1 %v2946_v44, %s3072_s3 }
0x2c75   :  { %v2453_v63 = vpop.permute.xlu1 %2452 }
0x2c76   :  { %v2455_v47 = vmul.f32 %v2944_v19, %v2453_v63 }
0x2c78   :  { %2462 = vrot.lane.b32.xlu0 %v2455_v47, %s3073_s19 }
0x2c7c   :  { %2457 = vrot.lane.b32.xlu0 %v2449_v23, %s3074_s20  ;;  %s2569_s20 = sshll.u32 %s3077_s7, 4  ;;  %s2570_s20 = int_to_ptr.vmem [resolvable:$true] %s2569_s20 }
0x2c7d   :  { %s3035_s18 = scalar_lea.vmem %s2570_s20, 32  ;;  %p3040_p5 = scmp.lt.s32.totalorder %s2570_s20, %s2570_s20 }
0x2c7e   :  { %p3036_p4 = scmp.ne.s32.totalorder %s2570_s20, %s3035_s18  ;;  %p3041_p6 = scmp.lt.s32.totalorder %s3035_s18, %s3035_s18 }
0x2c80   :  { %p3042_p7 = por %p3041_p6, %p3040_p5 }
0x2c82   :  { %p3043_p8 = pnand %p3042_p7, %p3036_p4 }
0x2cea   :  { %v2463_v2 = vpop.permute.xlu0 %2462 }
0x2ceb   :  { %2465 = vst.msk [vmem:[#allocation4] sm:$0xf] %vm195_vm0, %v2463_v2 }
0x2cee   :  { %v2458_v4 = vpop.permute.xlu0 %2457 }
0x2cef   :  { %2460 = vst.msk [vmem:[#allocation5] sm:$0xf] %vm195_vm0, %v2458_v4 }
0x2cf2   :  { %v2466_v27 = vld [vmem:[#allocation4] sm:$0xf] }
0x2cf3   :  { %v2468_v5 = vrot.slane %v2466_v27, 2 }
0x2cf5   :  { %2469 = vrot.lane.b32.xlu1 %v2468_v5, %s3073_s19 }
0x2d67   :  { %v2470_v6 = vpop.permute.xlu1 %2469 }
0x2d68   :  { %v2472_v55 = vsel %vm207_vm2, %v2466_v27, %v2470_v6 }
0x2d69   :  { %2644 = vmatmul.mubr.msk.f32.vlgmr.msra.gmra.mrb[16].mxu1 %vm1324_vm7, %v2472_v55 }
0x2e3c   :  { %v2557_v7 = vpop.f32.mrb[16].mxu1 }
0x2e3d   :  { %v2558_v0 = vadd.f32 %v2616_v15, %v2557_v7  ;;  %v2645_v58 = vpop.f32.mrb[17].mxu1 }
0x2e3f   :  { %2562 = vst.msk [vmem:[#allocation14] sm:$0x3] %vm2561_vm9, %v2558_v0 }
0x2e40   :  { %3046 = shalt.err (!%p3043_p8)
}
0x2e41   :  { %s3047_s24 = scalar_lea.hbm %s3682_s9, 32 }
0x2e42   :  { %p3048_p9 = scmp.ne.s32.totalorder %s3682_s9, %s3047_s24  ;;  %p3051_p10 = scmp.lt.u32.totalorder %s3047_s24, %s3682_s9 }
0x2e44   :  { %p3053_p11 = pnand %p3051_p10, %p3048_p9 }
0x2e46   :  { %3056 = shalt.err (!%p3053_p11)
}
0x2e47   :  { %2572 = dma.vmem_to_hbm [thread:$0]  %s2570_s20, 32, %s3682_s9, [#allocation8]  }
0x2e48   :  { %3063 = dma.done.wait [#allocation8], 32  }
0x2e49   :  { %3064 = vsyncadd [#allocation8], 4294967264 }
0x2e4a   :  { %2576 = vsyncpa [#allocation7], 1 }
0x2e4b   :  { %2577 = vsyncpa [#allocation10], 1 }
0x2e4c   :  { %2578 = vsyncpa [#allocation13], 1 }
0x2e4d   :  { %2579 = vsyncpa [#allocation8], 1 }

</bundles_post_ra>
